<compile_context>
chip_gen: v7x
topology: tpu7x:2x2x1
jax: 0.10.0
libtpu: 0.0.40
codegen_flags: <defaults>
</compile_context>

<pallas_src>
import jax
import jax.numpy as jnp
from jax.experimental import pallas as pl
from jax.experimental.pallas import tpu as pltpu

_INV_SQRT2 = 0.7071067811865476
_INV_1414 = 1.0 / 1.414
_GN_EPS = 1e-5
_MXU_DTYPE = jnp.float32  # set to jnp.bfloat16 on v6e/v7x if tolerance allows


def _gelu_exact(x):
    # exact (erf-based) GELU == torch.nn.GELU() default
    return 0.5 * x * (1.0 + jax.lax.erf(x * _INV_SQRT2))


def _conv3x3_im2col(xpad_ref, w_ref):
    """3x3 / stride 1 / pad 1 conv as ONE MXU matmul.

    xpad_ref: (Cin, H+2, W+2) zero-bordered VMEM ref (channel-major).
    w_ref:    (Cout, 9*Cin) VMEM ref, columns ordered (ky, kx, cin).
    Returns   (Cout, H*W) float32 (lane-dense along H*W).
    """
    Cin, Hp2, Wp2 = xpad_ref.shape
    H, W = Hp2 - 2, Wp2 - 2
    # 9 shifted taps; concat along the leading (untiled) axis is cheap.
    taps = [xpad_ref[:, ky:ky + H, kx:kx + W]          # (Cin, H, W) each
            for ky in range(3) for kx in range(3)]
    pat = jnp.concatenate(taps, axis=0)                # (9*Cin, H, W)
    pat = pat.reshape(9 * Cin, H * W)                  # (9*Cin, H*W) im2col matrix
    return jnp.dot(w_ref[...].astype(_MXU_DTYPE), pat.astype(_MXU_DTYPE),
                   preferred_element_type=jnp.float32)  # (Cout, H*W)


def _gn1_gelu(h, gamma, beta):
    """GroupNorm(num_groups=1) over the whole sample, then exact GELU.

    h: (C, H*W) float32 (lane-dense); gamma/beta: (C, 1).
    """
    inv_n = 1.0 / (h.shape[0] * h.shape[1])
    mean = jnp.sum(h) * inv_n
    d = h - mean
    var = jnp.sum(d * d) * inv_n          # shifted two-pass variance (no cancellation)
    hn = d * jax.lax.rsqrt(var + _GN_EPS)
    return _gelu_exact(hn * gamma + beta)


def _down_kernel(x_ref, w1_ref, w2_ref, pv_ref, out_ref, xpad_ref, h1pad_ref):
    Cin, H, W = x_ref.shape
    Cout = w1_ref.shape[0]
    Hh, Wh = H // 2, W // 2

    pv = pv_ref[...]                                    # (Cout, 6) packed params
    b1, g1, be1 = pv[:, 0:1], pv[:, 1:2], pv[:, 2:3]
    b2, g2, be2 = pv[:, 3:4], pv[:, 4:5], pv[:, 5:6]

    # ---- conv1: Conv2d(Cin,Cout,3,1,1) -> GroupNorm(1,Cout) -> GELU ----
    # One full zero store + one interior store build the zero border (no HBM pad,
    # no per-border masked stores, correct under megacore batch splitting).
    xpad_ref[...] = jnp.zeros_like(xpad_ref)
    xpad_ref[:, 1:H + 1, 1:W + 1] = x_ref[...]
    h1 = _conv3x3_im2col(xpad_ref, w1_ref) + b1         # (Cout, H*W)
    h1 = _gn1_gelu(h1, g1, be1)

    # ---- conv2: Conv2d(Cout,Cout,3,1,1) -> GroupNorm(1,Cout) -> GELU ----
    h1pad_ref[...] = jnp.zeros_like(h1pad_ref)
    h1pad_ref[:, 1:H + 1, 1:W + 1] = h1.reshape(Cout, H, W)
    h2 = _conv3x3_im2col(h1pad_ref, w2_ref) + b2        # (Cout, H*W)
    h2 = _gn1_gelu(h2, g2, be2)

    # ---- DoubleConv residual (static shape check, mirrors the PyTorch forward) ----
    if Cin == Cout:
        res = x_ref[...].reshape(Cin, H * W)
    else:  # conv2 always maps chout -> chout, so this branch is the usual one
        res = h1
    y = (h2 + res) * _INV_1414                          # (Cout, H*W), lane-dense

    # ---- MaxPool2d(2): fully in registers, no scratch round trip ----
    r = y.reshape(Cout, Hh, 2 * W)                      # row i covers image rows 2i,2i+1
    t = jnp.maximum(r[:, :, :W], r[:, :, W:])           # (Cout, Hh, W)  row pairs
    t = t.reshape(Cout, Hh, Wh, 2)
    p = jnp.max(t, axis=-1)                             # (Cout, Hh, Wh) col pairs
    out_ref[...] = p.reshape(out_ref.shape).astype(out_ref.dtype)


def down_forward(x_nchw, params):
    """Down(chin, chout).forward: DoubleConv(chin, chout) followed by MaxPool2d(2).

    x_nchw: (N, Cin, H, W) float32 -> (N, Cout, H//2, W//2) float32.
    """
    N, Cin, H, W = x_nchw.shape
    Cout = params["w1"].shape[0]
    assert H % 2 == 0 and W % 2 == 0
    Hh, Wh = H // 2, W // 2

    # Lane-dense per-sample output slab; flat order is (c, h, w) = NCHW order.
    out_cols = 128 if (Cout * Hh * Wh) % 128 == 0 else Hh * Wh
    out_rows = (Cout * Hh * Wh) // out_cols

    x = x_nchw.astype(jnp.float32)        # NCHW straight in: no transpose, no HBM pad

    # im2col weights: (Cout, 9*Cin) with columns ordered (ky, kx, cin)
    w1 = jnp.transpose(params["w1"], (0, 2, 3, 1)).reshape(Cout, 9 * Cin).astype(jnp.float32)
    w2 = jnp.transpose(params["w2"], (0, 2, 3, 1)).reshape(Cout, 9 * Cout).astype(jnp.float32)
    # bias/gamma/beta packed into a single (Cout, 6) input
    pvec = jnp.stack([params[k].astype(jnp.float32)
                      for k in ("b1", "g1", "be1", "b2", "g2", "be2")], axis=1)

    out = pl.pallas_call(
        _down_kernel,
        out_shape=jax.ShapeDtypeStruct((N, out_rows, out_cols), jnp.float32),
        grid_spec=pltpu.PrefetchScalarGridSpec(
            num_scalar_prefetch=0,
            grid=(N,),
            in_specs=[
                pl.BlockSpec((None, Cin, H, W), lambda n: (n, 0, 0, 0)),
                pl.BlockSpec((Cout, 9 * Cin), lambda n: (0, 0)),
                pl.BlockSpec((Cout, 9 * Cout), lambda n: (0, 0)),
                pl.BlockSpec((Cout, 6), lambda n: (0, 0)),
            ],
            out_specs=pl.BlockSpec((None, out_rows, out_cols), lambda n: (n, 0, 0)),
            scratch_shapes=[
                pltpu.VMEM((Cin, H + 2, W + 2), jnp.float32),    # zero-bordered conv1 input
                pltpu.VMEM((Cout, H + 2, W + 2), jnp.float32),   # zero-bordered conv2 input
            ],
        ),
        compiler_params=pltpu.CompilerParams(
            dimension_semantics=("parallel",),   # batch independent (2 TCs on v7x)
            vmem_limit_bytes=32 * 1024 * 1024),
    )(x, w1, w2, pvec)

    return out.reshape(N, Cout, Hh, Wh)   # free metadata reshape back to NCHW


# ------------------------- pure-JAX reference (NCHW) -------------------------
def _ref_conv3x3(x, w_oihw, b):
    y = jax.lax.conv_general_dilated(
        x, w_oihw, window_strides=(1, 1), padding="SAME",
        dimension_numbers=("NCHW", "OIHW", "NCHW"))
    return y + b[None, :, None, None]


def _ref_groupnorm1(x, gamma, beta):
    m = jnp.mean(x, axis=(1, 2, 3), keepdims=True)
    v = jnp.mean((x - m) ** 2, axis=(1, 2, 3), keepdims=True)
    xn = (x - m) / jnp.sqrt(v + _GN_EPS)
    return xn * gamma[None, :, None, None] + beta[None, :, None, None]


def down_reference(x, p):
    x1 = _gelu_exact(_ref_groupnorm1(_ref_conv3x3(x, p["w1"], p["b1"]), p["g1"], p["be1"]))
    x2 = _gelu_exact(_ref_groupnorm1(_ref_conv3x3(x1, p["w2"], p["b2"]), p["g2"], p["be2"]))
    if x.shape[1] == x2.shape[1]:
        y = (x2 + x) / 1.414
    elif x1.shape[1] == x2.shape[1]:
        y = (x2 + x1) / 1.414
    else:
        y = x2
    return jax.lax.reduce_window(y, -jnp.inf, jax.lax.max,
                                 (1, 1, 2, 2), (1, 1, 2, 2), "VALID")


if __name__ == "__main__":
    N, Cin, Cout, H, W = 2, 4, 8, 16, 16

    key = jax.random.PRNGKey(0)
    ks = jax.random.split(key, 9)
    params = {
        "w1": 0.1 * jax.random.normal(ks[0], (Cout, Cin, 3, 3), jnp.float32),
        "b1": 0.1 * jax.random.normal(ks[1], (Cout,), jnp.float32),
        "g1": 1.0 + 0.1 * jax.random.normal(ks[2], (Cout,), jnp.float32),
        "be1": 0.1 * jax.random.normal(ks[3], (Cout,), jnp.float32),
        "w2": 0.1 * jax.random.normal(ks[4], (Cout, Cout, 3, 3), jnp.float32),
        "b2": 0.1 * jax.random.normal(ks[5], (Cout,), jnp.float32),
        "g2": 1.0 + 0.1 * jax.random.normal(ks[6], (Cout,), jnp.float32),
        "be2": 0.1 * jax.random.normal(ks[7], (Cout,), jnp.float32),
    }
    x = jax.random.normal(ks[8], (N, Cin, H, W), jnp.float32)

    out = jax.block_until_ready(down_forward(x, params))
    ref = jax.block_until_ready(down_reference(x, params))

    assert out.shape == (N, Cout, H // 2, W // 2), out.shape
    assert jnp.allclose(out, ref, atol=1e-3, rtol=1e-3), \
        float(jnp.max(jnp.abs(out - ref)))
    print("KERNEL_OK")
</pallas_src>

<mosaic_0001>
module attributes {stable_mosaic.version = 11 : i64} {
  func.func @_down_kernel(%arg0: i32, %arg1: memref<1x4x16x16xf32, #tpu.memory_space<vmem>>, %arg2: memref<8x36xf32, #tpu.memory_space<vmem>>, %arg3: memref<8x72xf32, #tpu.memory_space<vmem>>, %arg4: memref<8x6xf32, #tpu.memory_space<vmem>>, %arg5: memref<1x4x128xf32, #tpu.memory_space<vmem>>, %arg6: memref<4x18x18xf32, #tpu.memory_space<vmem>>, %arg7: memref<8x18x18xf32, #tpu.memory_space<vmem>>) attributes {dimension_semantics = [#tpu.dimension_semantics<parallel>], iteration_bounds = array<i64: 2>, scalar_prefetch = 0 : i64, scratch_operands = 2 : i64, tpu.core_type = #tpu.core_type<tc>, window_params = [{transform_indices = @transform_0, window_bounds = array<i64: 1, 4, 16, 16>}, {pipeline_mode = #tpu.pipeline_mode<synchronous>, transform_indices = @transform_1, window_bounds = array<i64: 8, 36>}, {pipeline_mode = #tpu.pipeline_mode<synchronous>, transform_indices = @transform_2, window_bounds = array<i64: 8, 72>}, {pipeline_mode = #tpu.pipeline_mode<synchronous>, transform_indices = @transform_3, window_bounds = array<i64: 8, 6>}, {transform_indices = @transform_4, window_bounds = array<i64: 1, 4, 128>}]} {
    %c0 = arith.constant 0 : index
    %c0_0 = arith.constant 0 : index
    %0 = vector.load %arg4[%c0, %c0_0] : memref<8x6xf32, #tpu.memory_space<vmem>>, vector<8x6xf32>
    %1 = vector.extract_strided_slice %0 {offsets = [0, 0], sizes = [8, 1], strides = [1, 1]} : vector<8x6xf32> to vector<8x1xf32>
    %2 = vector.extract_strided_slice %0 {offsets = [0, 1], sizes = [8, 1], strides = [1, 1]} : vector<8x6xf32> to vector<8x1xf32>
    %3 = vector.extract_strided_slice %0 {offsets = [0, 2], sizes = [8, 1], strides = [1, 1]} : vector<8x6xf32> to vector<8x1xf32>
    %4 = vector.extract_strided_slice %0 {offsets = [0, 3], sizes = [8, 1], strides = [1, 1]} : vector<8x6xf32> to vector<8x1xf32>
    %5 = vector.extract_strided_slice %0 {offsets = [0, 4], sizes = [8, 1], strides = [1, 1]} : vector<8x6xf32> to vector<8x1xf32>
    %6 = vector.extract_strided_slice %0 {offsets = [0, 5], sizes = [8, 1], strides = [1, 1]} : vector<8x6xf32> to vector<8x1xf32>
    %cst = arith.constant 0.000000e+00 : f32
    %7 = vector.broadcast %cst : f32 to vector<4x18x18xf32>
    %c0_1 = arith.constant 0 : index
    %c0_2 = arith.constant 0 : index
    %c0_3 = arith.constant 0 : index
    %8 = vector.load %arg6[%c0_1, %c0_2, %c0_3] : memref<4x18x18xf32, #tpu.memory_space<vmem>>, vector<4x18x18xf32>
    tpu.vector_store %arg6[%c0_1, %c0_2, %c0_3], %7 {strides = array<i32>} : memref<4x18x18xf32, #tpu.memory_space<vmem>>, vector<4x18x18xf32>,
    %c0_4 = arith.constant 0 : index
    %c0_5 = arith.constant 0 : index
    %c0_6 = arith.constant 0 : index
    %c0_7 = arith.constant 0 : index
    %9 = vector.load %arg1[%c0_4, %c0_5, %c0_6, %c0_7] : memref<1x4x16x16xf32, #tpu.memory_space<vmem>>, vector<1x4x16x16xf32>
    %10 = vector.shape_cast %9 : vector<1x4x16x16xf32> to vector<4x16x16xf32>
    %c0_8 = arith.constant 0 : index
    %c1 = arith.constant 1 : index
    %c1_9 = arith.constant 1 : index
    %11 = vector.load %arg6[%c0_8, %c1, %c1_9] : memref<4x18x18xf32, #tpu.memory_space<vmem>>, vector<4x16x16xf32>
    tpu.vector_store %arg6[%c0_8, %c1, %c1_9], %10 {strides = array<i32>} : memref<4x18x18xf32, #tpu.memory_space<vmem>>, vector<4x16x16xf32>,
    %c0_10 = arith.constant 0 : index
    %c0_11 = arith.constant 0 : index
    %c0_12 = arith.constant 0 : index
    %12 = vector.load %arg6[%c0_10, %c0_11, %c0_12] : memref<4x18x18xf32, #tpu.memory_space<vmem>>, vector<4x16x16xf32>
    %c0_13 = arith.constant 0 : index
    %c0_14 = arith.constant 0 : index
    %c1_15 = arith.constant 1 : index
    %13 = vector.load %arg6[%c0_13, %c0_14, %c1_15] : memref<4x18x18xf32, #tpu.memory_space<vmem>>, vector<4x16x16xf32>
    %c0_16 = arith.constant 0 : index
    %c0_17 = arith.constant 0 : index
    %c2 = arith.constant 2 : index
    %14 = vector.load %arg6[%c0_16, %c0_17, %c2] : memref<4x18x18xf32, #tpu.memory_space<vmem>>, vector<4x16x16xf32>
    %c0_18 = arith.constant 0 : index
    %c1_19 = arith.constant 1 : index
    %c0_20 = arith.constant 0 : index
    %15 = vector.load %arg6[%c0_18, %c1_19, %c0_20] : memref<4x18x18xf32, #tpu.memory_space<vmem>>, vector<4x16x16xf32>
    %c0_21 = arith.constant 0 : index
    %c1_22 = arith.constant 1 : index
    %c1_23 = arith.constant 1 : index
    %16 = vector.load %arg6[%c0_21, %c1_22, %c1_23] : memref<4x18x18xf32, #tpu.memory_space<vmem>>, vector<4x16x16xf32>
    %c0_24 = arith.constant 0 : index
    %c1_25 = arith.constant 1 : index
    %c2_26 = arith.constant 2 : index
    %17 = vector.load %arg6[%c0_24, %c1_25, %c2_26] : memref<4x18x18xf32, #tpu.memory_space<vmem>>, vector<4x16x16xf32>
    %c0_27 = arith.constant 0 : index
    %c2_28 = arith.constant 2 : index
    %c0_29 = arith.constant 0 : index
    %18 = vector.load %arg6[%c0_27, %c2_28, %c0_29] : memref<4x18x18xf32, #tpu.memory_space<vmem>>, vector<4x16x16xf32>
    %c0_30 = arith.constant 0 : index
    %c2_31 = arith.constant 2 : index
    %c1_32 = arith.constant 1 : index
    %19 = vector.load %arg6[%c0_30, %c2_31, %c1_32] : memref<4x18x18xf32, #tpu.memory_space<vmem>>, vector<4x16x16xf32>
    %c0_33 = arith.constant 0 : index
    %c2_34 = arith.constant 2 : index
    %c2_35 = arith.constant 2 : index
    %20 = vector.load %arg6[%c0_33, %c2_34, %c2_35] : memref<4x18x18xf32, #tpu.memory_space<vmem>>, vector<4x16x16xf32>
    %21 = tpu.concatenate %12, %13, %14, %15, %16, %17, %18, %19, %20 in 0 : vector<4x16x16xf32>, vector<4x16x16xf32>, vector<4x16x16xf32>, vector<4x16x16xf32>, vector<4x16x16xf32>, vector<4x16x16xf32>, vector<4x16x16xf32>, vector<4x16x16xf32>, vector<4x16x16xf32> -> vector<36x16x16xf32>
    %22 = vector.shape_cast %21 : vector<36x16x16xf32> to vector<36x256xf32>
    %c0_36 = arith.constant 0 : index
    %c0_37 = arith.constant 0 : index
    %23 = vector.load %arg2[%c0_36, %c0_37] : memref<8x36xf32, #tpu.memory_space<vmem>>, vector<8x36xf32>
    %cst_38 = arith.constant dense<0.000000e+00> : vector<8x256xf32>
    %24 = tpu.matmul %23, %22, %cst_38 {dimension_numbers = #tpu.dot_dimension_numbers<[1], [0], [0], [1], [0, 0, 1, 1], [], []>} : vector<8x36xf32>, vector<36x256xf32>, vector<8x256xf32> -> vector<8x256xf32>
    %25 = vector.broadcast %1 : vector<8x1xf32> to vector<8x256xf32>
    %26 = arith.addf %24, %25 : vector<8x256xf32>
    %27 = vector.shape_cast %26 : vector<8x256xf32> to vector<1x8x256xf32>
    %cst_39 = arith.constant dense<0.000000e+00> : vector<1xf32>
    %28 = vector.multi_reduction <add>, %27, %cst_39 [1, 2] : vector<1x8x256xf32> to vector<1xf32>
    %29 = vector.shape_cast %28 : vector<1xf32> to vector<1x1x1xf32>
    %30 = vector.extract %29[0, 0, 0] : f32 from vector<1x1x1xf32>
    %cst_40 = arith.constant 4.8828125E-4 : f32
    %31 = arith.mulf %30, %cst_40 : f32
    %32 = vector.broadcast %31 : f32 to vector<8x256xf32>
    %33 = arith.subf %26, %32 : vector<8x256xf32>
    %34 = arith.mulf %33, %33 : vector<8x256xf32>
    %35 = vector.shape_cast %34 : vector<8x256xf32> to vector<1x8x256xf32>
    %cst_41 = arith.constant dense<0.000000e+00> : vector<1xf32>
    %36 = vector.multi_reduction <add>, %35, %cst_41 [1, 2] : vector<1x8x256xf32> to vector<1xf32>
    %37 = vector.shape_cast %36 : vector<1xf32> to vector<1x1x1xf32>
    %38 = vector.extract %37[0, 0, 0] : f32 from vector<1x1x1xf32>
    %cst_42 = arith.constant 4.8828125E-4 : f32
    %39 = arith.mulf %38, %cst_42 : f32
    %cst_43 = arith.constant 9.99999974E-6 : f32
    %40 = arith.addf %39, %cst_43 : f32
    %41 = math.rsqrt %40 : f32
    %42 = vector.broadcast %41 : f32 to vector<8x256xf32>
    %43 = arith.mulf %33, %42 : vector<8x256xf32>
    %44 = vector.broadcast %2 : vector<8x1xf32> to vector<8x256xf32>
    %45 = arith.mulf %43, %44 : vector<8x256xf32>
    %46 = vector.broadcast %3 : vector<8x1xf32> to vector<8x256xf32>
    %47 = arith.addf %45, %46 : vector<8x256xf32>
    %cst_44 = arith.constant 5.000000e-01 : f32
    %48 = vector.broadcast %cst_44 : f32 to vector<8x256xf32>
    %49 = arith.mulf %48, %47 : vector<8x256xf32>
    %cst_45 = arith.constant 0.707106769 : f32
    %50 = vector.broadcast %cst_45 : f32 to vector<8x256xf32>
    %51 = arith.mulf %47, %50 : vector<8x256xf32>
    %52 = math.erf %51 : vector<8x256xf32>
    %cst_46 = arith.constant 1.000000e+00 : f32
    %53 = vector.broadcast %cst_46 : f32 to vector<8x256xf32>
    %54 = arith.addf %53, %52 : vector<8x256xf32>
    %55 = arith.mulf %49, %54 : vector<8x256xf32>
    %cst_47 = arith.constant 0.000000e+00 : f32
    %56 = vector.broadcast %cst_47 : f32 to vector<8x18x18xf32>
    %c0_48 = arith.constant 0 : index
    %c0_49 = arith.constant 0 : index
    %c0_50 = arith.constant 0 : index
    %57 = vector.load %arg7[%c0_48, %c0_49, %c0_50] : memref<8x18x18xf32, #tpu.memory_space<vmem>>, vector<8x18x18xf32>
    tpu.vector_store %arg7[%c0_48, %c0_49, %c0_50], %56 {strides = array<i32>} : memref<8x18x18xf32, #tpu.memory_space<vmem>>, vector<8x18x18xf32>,
    %58 = vector.shape_cast %55 : vector<8x256xf32> to vector<8x16x16xf32>
    %c0_51 = arith.constant 0 : index
    %c1_52 = arith.constant 1 : index
    %c1_53 = arith.constant 1 : index
    %59 = vector.load %arg7[%c0_51, %c1_52, %c1_53] : memref<8x18x18xf32, #tpu.memory_space<vmem>>, vector<8x16x16xf32>
    tpu.vector_store %arg7[%c0_51, %c1_52, %c1_53], %58 {strides = array<i32>} : memref<8x18x18xf32, #tpu.memory_space<vmem>>, vector<8x16x16xf32>,
    %c0_54 = arith.constant 0 : index
    %c0_55 = arith.constant 0 : index
    %c0_56 = arith.constant 0 : index
    %60 = vector.load %arg7[%c0_54, %c0_55, %c0_56] : memref<8x18x18xf32, #tpu.memory_space<vmem>>, vector<8x16x16xf32>
    %c0_57 = arith.constant 0 : index
    %c0_58 = arith.constant 0 : index
    %c1_59 = arith.constant 1 : index
    %61 = vector.load %arg7[%c0_57, %c0_58, %c1_59] : memref<8x18x18xf32, #tpu.memory_space<vmem>>, vector<8x16x16xf32>
    %c0_60 = arith.constant 0 : index
    %c0_61 = arith.constant 0 : index
    %c2_62 = arith.constant 2 : index
    %62 = vector.load %arg7[%c0_60, %c0_61, %c2_62] : memref<8x18x18xf32, #tpu.memory_space<vmem>>, vector<8x16x16xf32>
    %c0_63 = arith.constant 0 : index
    %c1_64 = arith.constant 1 : index
    %c0_65 = arith.constant 0 : index
    %63 = vector.load %arg7[%c0_63, %c1_64, %c0_65] : memref<8x18x18xf32, #tpu.memory_space<vmem>>, vector<8x16x16xf32>
    %c0_66 = arith.constant 0 : index
    %c1_67 = arith.constant 1 : index
    %c1_68 = arith.constant 1 : index
    %64 = vector.load %arg7[%c0_66, %c1_67, %c1_68] : memref<8x18x18xf32, #tpu.memory_space<vmem>>, vector<8x16x16xf32>
    %c0_69 = arith.constant 0 : index
    %c1_70 = arith.constant 1 : index
    %c2_71 = arith.constant 2 : index
    %65 = vector.load %arg7[%c0_69, %c1_70, %c2_71] : memref<8x18x18xf32, #tpu.memory_space<vmem>>, vector<8x16x16xf32>
    %c0_72 = arith.constant 0 : index
    %c2_73 = arith.constant 2 : index
    %c0_74 = arith.constant 0 : index
    %66 = vector.load %arg7[%c0_72, %c2_73, %c0_74] : memref<8x18x18xf32, #tpu.memory_space<vmem>>, vector<8x16x16xf32>
    %c0_75 = arith.constant 0 : index
    %c2_76 = arith.constant 2 : index
    %c1_77 = arith.constant 1 : index
    %67 = vector.load %arg7[%c0_75, %c2_76, %c1_77] : memref<8x18x18xf32, #tpu.memory_space<vmem>>, vector<8x16x16xf32>
    %c0_78 = arith.constant 0 : index
    %c2_79 = arith.constant 2 : index
    %c2_80 = arith.constant 2 : index
    %68 = vector.load %arg7[%c0_78, %c2_79, %c2_80] : memref<8x18x18xf32, #tpu.memory_space<vmem>>, vector<8x16x16xf32>
    %69 = tpu.concatenate %60, %61, %62, %63, %64, %65, %66, %67, %68 in 0 : vector<8x16x16xf32>, vector<8x16x16xf32>, vector<8x16x16xf32>, vector<8x16x16xf32>, vector<8x16x16xf32>, vector<8x16x16xf32>, vector<8x16x16xf32>, vector<8x16x16xf32>, vector<8x16x16xf32> -> vector<72x16x16xf32>
    %70 = vector.shape_cast %69 : vector<72x16x16xf32> to vector<72x256xf32>
    %c0_81 = arith.constant 0 : index
    %c0_82 = arith.constant 0 : index
    %71 = vector.load %arg3[%c0_81, %c0_82] : memref<8x72xf32, #tpu.memory_space<vmem>>, vector<8x72xf32>
    %cst_83 = arith.constant dense<0.000000e+00> : vector<8x256xf32>
    %72 = tpu.matmul %71, %70, %cst_83 {dimension_numbers = #tpu.dot_dimension_numbers<[1], [0], [0], [1], [0, 0, 1, 1], [], []>} : vector<8x72xf32>, vector<72x256xf32>, vector<8x256xf32> -> vector<8x256xf32>
    %73 = vector.broadcast %4 : vector<8x1xf32> to vector<8x256xf32>
    %74 = arith.addf %72, %73 : vector<8x256xf32>
    %75 = vector.shape_cast %74 : vector<8x256xf32> to vector<1x8x256xf32>
    %cst_84 = arith.constant dense<0.000000e+00> : vector<1xf32>
    %76 = vector.multi_reduction <add>, %75, %cst_84 [1, 2] : vector<1x8x256xf32> to vector<1xf32>
    %77 = vector.shape_cast %76 : vector<1xf32> to vector<1x1x1xf32>
    %78 = vector.extract %77[0, 0, 0] : f32 from vector<1x1x1xf32>
    %cst_85 = arith.constant 4.8828125E-4 : f32
    %79 = arith.mulf %78, %cst_85 : f32
    %80 = vector.broadcast %79 : f32 to vector<8x256xf32>
    %81 = arith.subf %74, %80 : vector<8x256xf32>
    %82 = arith.mulf %81, %81 : vector<8x256xf32>
    %83 = vector.shape_cast %82 : vector<8x256xf32> to vector<1x8x256xf32>
    %cst_86 = arith.constant dense<0.000000e+00> : vector<1xf32>
    %84 = vector.multi_reduction <add>, %83, %cst_86 [1, 2] : vector<1x8x256xf32> to vector<1xf32>
    %85 = vector.shape_cast %84 : vector<1xf32> to vector<1x1x1xf32>
    %86 = vector.extract %85[0, 0, 0] : f32 from vector<1x1x1xf32>
    %cst_87 = arith.constant 4.8828125E-4 : f32
    %87 = arith.mulf %86, %cst_87 : f32
    %cst_88 = arith.constant 9.99999974E-6 : f32
    %88 = arith.addf %87, %cst_88 : f32
    %89 = math.rsqrt %88 : f32
    %90 = vector.broadcast %89 : f32 to vector<8x256xf32>
    %91 = arith.mulf %81, %90 : vector<8x256xf32>
    %92 = vector.broadcast %5 : vector<8x1xf32> to vector<8x256xf32>
    %93 = arith.mulf %91, %92 : vector<8x256xf32>
    %94 = vector.broadcast %6 : vector<8x1xf32> to vector<8x256xf32>
    %95 = arith.addf %93, %94 : vector<8x256xf32>
    %cst_89 = arith.constant 5.000000e-01 : f32
    %96 = vector.broadcast %cst_89 : f32 to vector<8x256xf32>
    %97 = arith.mulf %96, %95 : vector<8x256xf32>
    %cst_90 = arith.constant 0.707106769 : f32
    %98 = vector.broadcast %cst_90 : f32 to vector<8x256xf32>
    %99 = arith.mulf %95, %98 : vector<8x256xf32>
    %100 = math.erf %99 : vector<8x256xf32>
    %cst_91 = arith.constant 1.000000e+00 : f32
    %101 = vector.broadcast %cst_91 : f32 to vector<8x256xf32>
    %102 = arith.addf %101, %100 : vector<8x256xf32>
    %103 = arith.mulf %97, %102 : vector<8x256xf32>
    %104 = arith.addf %103, %55 : vector<8x256xf32>
    %cst_92 = arith.constant 0.70721358 : f32
    %105 = vector.broadcast %cst_92 : f32 to vector<8x256xf32>
    %106 = arith.mulf %104, %105 : vector<8x256xf32>
    %107 = vector.shape_cast %106 : vector<8x256xf32> to vector<8x8x32xf32>
    %108 = vector.extract_strided_slice %107 {offsets = [0, 0, 0], sizes = [8, 8, 16], strides = [1, 1, 1]} : vector<8x8x32xf32> to vector<8x8x16xf32>
    %109 = vector.extract_strided_slice %107 {offsets = [0, 0, 16], sizes = [8, 8, 16], strides = [1, 1, 1]} : vector<8x8x32xf32> to vector<8x8x16xf32>
    %110 = arith.maximumf %108, %109 : vector<8x8x16xf32>
    %111 = vector.shape_cast %110 : vector<8x8x16xf32> to vector<8x8x8x2xf32>
    %cst_93 = arith.constant dense<0xFF800000> : vector<8x8x8xf32>
    %112 = vector.multi_reduction <maximumf>, %111, %cst_93 [3] : vector<8x8x8x2xf32> to vector<8x8x8xf32>
    %113 = vector.shape_cast %112 : vector<8x8x8xf32> to vector<4x128xf32>
    %c0_94 = arith.constant 0 : index
    %c0_95 = arith.constant 0 : index
    %c0_96 = arith.constant 0 : index
    %114 = vector.load %arg5[%c0_94, %c0_95, %c0_96] : memref<1x4x128xf32, #tpu.memory_space<vmem>>, vector<1x4x128xf32>
    %115 = vector.shape_cast %114 : vector<1x4x128xf32> to vector<4x128xf32>
    %116 = vector.shape_cast %113 : vector<4x128xf32> to vector<1x4x128xf32>
    tpu.vector_store %arg5[%c0_94, %c0_95, %c0_96], %116 {strides = array<i32>} : memref<1x4x128xf32, #tpu.memory_space<vmem>>, vector<1x4x128xf32>,
    return
  }
  func.func @transform_0(%arg0: i32) -> (i32, i32, i32, i32) {
    %c0_i32 = arith.constant 0 : i32
    %c0_i32_0 = arith.constant 0 : i32
    %c0_i32_1 = arith.constant 0 : i32
    %c0_i32_2 = arith.constant 0 : i32
    return %arg0, %c0_i32, %c0_i32_0, %c0_i32_1 : i32, i32, i32, i32
  }
  func.func @transform_1(%arg0: i32) -> (i32, i32) {
    %c0_i32 = arith.constant 0 : i32
    %c0_i32_0 = arith.constant 0 : i32
    %c0_i32_1 = arith.constant 0 : i32
    return %c0_i32, %c0_i32_0 : i32, i32
  }
  func.func @transform_2(%arg0: i32) -> (i32, i32) {
    %c0_i32 = arith.constant 0 : i32
    %c0_i32_0 = arith.constant 0 : i32
    %c0_i32_1 = arith.constant 0 : i32
    return %c0_i32, %c0_i32_0 : i32, i32
  }
  func.func @transform_3(%arg0: i32) -> (i32, i32) {
    %c0_i32 = arith.constant 0 : i32
    %c0_i32_0 = arith.constant 0 : i32
    %c0_i32_1 = arith.constant 0 : i32
    return %c0_i32, %c0_i32_0 : i32, i32
  }
  func.func @transform_4(%arg0: i32) -> (i32, i32, i32) {
    %c0_i32 = arith.constant 0 : i32
    %c0_i32_0 = arith.constant 0 : i32
    %c0_i32_1 = arith.constant 0 : i32
    return %arg0, %c0_i32, %c0_i32_0 : i32, i32, i32
  }
}

</mosaic_0001>

<bundles_post_ra>
// kernel: tpu_custom_call.1
= control target key start
LH: loop header
LB: loop body
LE: loop exit
PB: predicated region body
PF: predicated region fallthrough
CT: control target
= control target key end

     0   :  { %9 = vsyncpa [#allocation5], 0  ;;  %s14281_s0 = inlined_call_operand.hbm [shape: f32[2,4,16,16], index: 0, kind: input, shape index: {}]   ;;  %s14282_s1 = inlined_call_operand.hbm [shape: f32[8,36], index: 1, kind: input, shape index: {}]   ;;  %s14283_s2 = inlined_call_operand.hbm [shape: f32[8,72], index: 2, kind: input, shape index: {}]   ;;  %s14284_s3 = inlined_call_operand.vmem [shape: f32[8,6], index: 3, kind: input, shape index: {}]   ;;  %s14285_s4 = inlined_call_operand.hbm [shape: f32[2,4,128], index: 4, kind: output, shape index: {}]  }
   0x1   :  { %11 = vsyncpa [#allocation5 + $0x1], 0 }
   0x2   :  { %12 = vsyncpa [#allocation8], 0 }
   0x3   :  { %13 = vsyncpa [#allocation6], 0 }
   0x4   :  { %15 = vsyncpa [#allocation6 + $0x1], 0  ;;  %s9291_s15 = smov 0   ;;  %s9293_s16 = smov 0  }
   0x5   :  { %s9295_s17 = smov 0   ;;  %s9297_s18 = smov 0  }
   0x6 LB: > { %s9312_s19 = sadd.s32 4294967295, %s9233_s18   ;;  %s8420_s20 = sadd.s32 4294967294, %s9233_s18   ;;  %s9233_s18 = sphi %s9297_s18, %s15014_s18   ;;  %s9229_s17 = sphi %s9295_s17, %s15013_s17   ;;  %s9225_s16 = sphi %s9293_s16, %s15012_s16   ;;  %s9221_s15 = sphi %s9291_s15, %s15011_s15  }
   0x7   : > { %s9316_s21 = sadd.s32 1, %s9233_s18   ;;  %s28_s22 = sadd.s32 1, %s9229_s17 }
   0x8   : > { %s25_s23 = ssub.s32 %s9233_s18, %s9316_s21  ;;  %p35_p0 = scmp.ne.s32.totalorder %s9229_s17, %s9225_s16 }
   0x9   : > { %p26_p1 = scmp.eq.s32.totalorder %s25_s23, 0  ;;  %p36_p2 = scmp.eq.s32.totalorder %s9233_s18, 0 }
   0xa   : > { %p41_p3 = scmp.ne.s32.totalorder %s9225_s16, %s9221_s15  ;;  %p14286_p4 = scmp.eq.s32.totalorder %s9312_s19, 0 }
   0xb   : > { %s9328_s24 = scalar_select %p26_p1, %s9229_s17, %s28_s22  }
   0xc   : > { %p9330_p5 = por %p36_p2, %p35_p0  ;;  %p9336_p6 = por %p14286_p4, %p41_p3 }
   0xd   : > { %p128_p7 = scmp.eq.s32.totalorder %s9312_s19, 1  ;;  %p134_p8 = scmp.eq.s32.totalorder %s8420_s20, 1 }
   0xe   : > { %s14528_s26 = scalar_select %p9336_p6, 1, 0 }
   0xf   : > { %p8421_p9 = scmp.ge.s32.totalorder %s9233_s18, 1  ;;  %p141_p10 = scmp.lt.s32.totalorder %s9233_s18, 3 }
  0x10   : > { %p9343_p11 = por %p128_p7, %p35_p0  ;;  %p9347_p12 = por %p134_p8, %p41_p3 }
  0x11   : > { %p9351_p13 = pnand %p8421_p9, %p141_p10  ;;  %s9235_s30 = smov [#allocation7]  }
  0x12   : > { %s14529_s27 = scalar_select %p9343_p11, 1, 0 }
  0x13   : > { %s14530_s28 = scalar_select %p9347_p12, 1, 0 }
  0x14   : > { %s14531_s29 = scalar_select %p9351_p13, 1, 0 }
  0x15   : > { %p8490_p2 = pneg %p9351_p13  ;;  %s154_s5 = sshll.u32 %s9235_s30, 4  ;;  %s155_s5 = int_to_ptr.vmem [resolvable:$true] %s154_s5 }
  0x16   : > { %p8507_p4 = scmp.lt.s32.totalorder %s9233_s18, 2  ;;  %p14532_p0 = scmp.eq.s32.totalorder %s9312_s19, 0 }
  0x17   : > { %s9236_s8 = smov [#allocation9]   ;;  %s9077_s12 = scalar_lea.hbm %s14282_s1, 128 }
  0x18   : > { %p9361_p7 = pnand %p8490_p2, %p14532_p0  ;;  %p9367_p3 = pnand %p8507_p4, %p9330_p5 }
  0x19   : > { %s165_s9 = sshll.u32 %s9236_s8, 4  ;;  %p9078_p8 = scmp.ne.s32.totalorder %s14282_s1, %s9077_s12  ;;  %s9371_s9 = int_to_ptr.vmem [resolvable:$true] %s165_s9 }
  0x1a   : > { %s14534_s7 = scalar_select %p9367_p3, 1, 0 }
  0x1b   : > { %p9079_p9 = pneg %p9361_p7  ;;  %p9084_p10 = scmp.lt.u32.totalorder %s9077_s12, %s14282_s1 }
  0x1d   : > { %p9080_p4 = pnand %p9079_p9, %p9078_p8 }
  0x1f   : > { %p9081_p5 = pneg %p9080_p4 }
  0x21   : > { %p9086_p2 = pnand %p9084_p10, %p9081_p5 }
  0x23   : > { %9089 = shalt.err (!%p9086_p2)
}
  0x24   : > { %s9090_s23 = scalar_lea.vmem %s155_s5, 128  ;;  %p9098_p11 = scmp.lt.s32.totalorder %s155_s5, %s155_s5 }
  0x25   : > { %p9091_p0 = scmp.ne.s32.totalorder %s155_s5, %s9090_s23  ;;  %p9099_p6 = scmp.lt.s32.totalorder %s9090_s23, %s9090_s23 }
  0x27   : > { %p9093_p1 = pnand %p9091_p0, %p9079_p9  ;;  %p9100_p13 = por %p9099_p6, %p9098_p11 }
  0x29   : > { %p9094_p12 = pneg %p9093_p1 }
  0x2b   : > { %p9101_p3 = pnand %p9100_p13, %p9094_p12 }
  0x2d   : > { %9104 = shalt.err (!%p9101_p3)
}
  0x2e   : > { %8493 = dma.hbm_to_vmem [thread:$0]  (!%p9361_p7), %s14282_s1, 128, %s155_s5, [#allocation8]  }
  0x2f   : > { %s179_s8 = sand.u32 1, %s9229_s17   ;;  %s9105_s12 = scalar_lea.hbm %s14283_s2, 128 }
  0x30   : > { %p9106_p1 = scmp.ne.s32.totalorder %s14283_s2, %s9105_s12  ;;  %p9112_p12 = scmp.lt.u32.totalorder %s9105_s12, %s14283_s2 }
  0x32   : > { %p9108_p6 = pnand %p9106_p1, %p9079_p9 }
  0x34   : > { %p9109_p11 = pneg %p9108_p6 }
  0x36   : > { %p9114_p13 = pnand %p9112_p12, %p9109_p11 }
  0x38   : > { %9117 = shalt.err (!%p9114_p13)
}
  0x39   : > { %s9118_s5 = scalar_lea.vmem %s9371_s9, 128  ;;  %p9126_p5 = scmp.lt.s32.totalorder %s9371_s9, %s9371_s9 }
  0x3a   : > { %p9119_p3 = scmp.ne.s32.totalorder %s9371_s9, %s9118_s5  ;;  %p9127_p10 = scmp.lt.s32.totalorder %s9118_s5, %s9118_s5 }
  0x3c   : > { %p9121_p8 = pnand %p9119_p3, %p9079_p9  ;;  %p9128_p2 = por %p9127_p10, %p9126_p5 }
  0x3e   : > { %p9122_p4 = pneg %p9121_p8 }
  0x40   : > { %p9129_p0 = pnand %p9128_p2, %p9122_p4 }
  0x42   : > { %9132 = shalt.err (!%p9129_p0)
}
  0x43   : > { %8496 = dma.hbm_to_vmem [thread:$0]  (!%p9361_p7), %s14283_s2, 128, %s9371_s9, [#allocation8]  }
  0x44   : > { %s8425_s30 = sshll.u32 %s179_s8, 6  ;;  %s8441_s10 = sshll.u32 %s9233_s18, 10 }
  0x45   : > { %s9425_s13 = scalar_lea.hbm %s14281_s0, %s8441_s10  ;;  %s183_s6 = scalar_lea.vmem [#allocation4], %s8425_s30 }
  0x46   : > { %s190_s14 = sshll.u32 %s183_s6, 4  ;;  %s9429_s20 = scalar_lea.sflag [#allocation5], %s179_s8  ;;  %s9427_s14 = int_to_ptr.vmem [resolvable:$true] %s190_s14 }
  0x47   : > { %s9133_s22 = scalar_lea.hbm %s9425_s13, 1024  ;;  %p14535_p7 = scmp.ne.s32.totalorder %s14534_s7, 0 }
  0x48   : > { %p9134_p9 = scmp.ne.s32.totalorder %s9425_s13, %s9133_s22  ;;  %s9138_s23 = scalar_lea.hbm %s14281_s0, 2048 }
  0x49   : > { %p9135_p1 = pneg %p14535_p7  ;;  %p9139_p12 = scmp.lt.u32.totalorder %s9425_s13, %s14281_s0 }
  0x4a   : > { %p9140_p13 = scmp.lt.u32.totalorder %s9138_s23, %s9133_s22  ;;  %p9142_p8 = scmp.lt.u32.totalorder %s9133_s22, %s9425_s13 }
  0x4b   : > { %p9136_p6 = pnand %p9135_p1, %p9134_p9 }
  0x4c   : > { %p9141_p3 = por %p9140_p13, %p9139_p12 }
  0x4d   : > { %p9137_p11 = pneg %p9136_p6 }
  0x4e   : > { %p9143_p4 = por %p9142_p8, %p9141_p3 }
  0x50   : > { %p9144_p5 = pnand %p9143_p4, %p9137_p11 }
  0x52   : > { %9147 = shalt.err (!%p9144_p5)
}
  0x53   : > { %s9148_s8 = scalar_lea.vmem %s9427_s14, 1024  ;;  %s9237_s30 = smov [#allocation4]  }
  0x54   : > { %p9149_p10 = scmp.ne.s32.totalorder %s9427_s14, %s9148_s8  ;;  %s9153_s11 = sshll.u32 %s9237_s30, 4  ;;  %s9154_s11 = int_to_ptr.vmem [resolvable:$false] %s9153_s11 }
  0x55   : > { %s9155_s12 = scalar_lea.vmem %s9154_s11, 2048  ;;  %p9156_p9 = scmp.lt.s32.totalorder %s9427_s14, %s9154_s11 }
  0x56   : > { %p9151_p2 = pnand %p9149_p10, %p9135_p1  ;;  %p9157_p6 = scmp.lt.s32.totalorder %s9155_s12, %s9148_s8 }
  0x58   : > { %p9152_p0 = pneg %p9151_p2  ;;  %p9158_p12 = por %p9157_p6, %p9156_p9 }
  0x5a   : > { %p9159_p13 = pnand %p9158_p12, %p9152_p0 }
  0x5c   : > { %9162 = shalt.err (!%p9159_p13)
}
  0x5d   : > { %s9238_s6 = smov 128   ;;  %s9239_s22 = smov 8  }
  0x5e   : > { %8500 = dma.hbm_to_vmem [thread:$0]  (!%p14535_p7), %s9425_s13, 1024, %s9427_s14, %s9429_s20, %s9238_s6, %s9238_s6, %s9239_s22  }
  0x5f   : > { %p14536_p1 = scmp.ne.s32.totalorder %s14531_s29, 0 }
  0x61   : > { %202 = sbr.rel (%p14536_p1) target bundleno = 3651 (0xe43), region = 36 }
  0x68   : > { %s9460_s9 = sand.u32 1, %s9225_s16   ;;  %p14537_p11 = scmp.ne.s32.totalorder %s14528_s26, 0 }
  0x69   : > { %s8429_s5 = sshll.u32 %s9460_s9, 6  ;;  %s205_s23 = scalar_lea.sflag [#allocation5], %s9460_s9 }
  0x6a   : > { %s9464_s25 = scalar_lea.vmem [#allocation4], %s8429_s5 }
  0x6b   : > { %9208 = dma.done.wait (%p14537_p11), %s205_s23, 1024  }
  0x6c   : > { %9210 = vsyncadd (%p14537_p11), %s205_s23, 4294966272  ;;  %p14538_p7 = scmp.eq.s32.totalorder %s9312_s19, 0 }
  0x6e   : > { %9212 = dma.done.wait (%p14538_p7), [#allocation8], 256   ;;  %p14539_p3 = pmov %p14538_p7 }
  0x6f   : > { %vm242_vm0 = vcmask 146432   ;;  %v14292_v0 = vmov 0.0   ;;  %vm245_vm1 = vcmask 140288   ;;  %v258_v1 = vld [vmem:[%s9464_s25 + $0x10] sm:$0xff]  ;;  %v256_v2 = vld [vmem:[%s9464_s25] sm:$0xff]  ;;  %s9241_s26 = smov 1   ;;  %v14291_v21 = vlaneseq }
  0x70   : > { %9214 = vsyncadd (%p14539_p3), [#allocation8], 4294967040  ;;  %247 = vst.msk [vmem:[#allocation2 + $0x18] sm:$0xff] %vm242_vm0, %v14292_v0  ;;  %2159 = vmatprep.mubr.f32.mxu0 %v14292_v0  ;;  %6177 = vmatprep.mubr.f32.mxu1 %v14292_v0  ;;  %v259_v3 = vld [vmem:[%s9464_s25 + $0x18] sm:$0xff]  ;;  %v257_v4 = vld [vmem:[%s9464_s25 + $0x8] sm:$0xff]  ;;  %vm296_vm2 = vcmask 138248  }
  0x71   : > { %248 = vst.msk [vmem:[#allocation2 + $0x20] sm:$0xff] %vm242_vm0, %v14292_v0  ;;  %243 = vst.msk [vmem:[#allocation2] sm:$0xff] %vm242_vm0, %v14292_v0  ;;  %276 = vrot.lane.b32.xlu1 %v258_v1, %s9241_s26  ;;  %272 = vrot.lane.b32.xlu0 %v256_v2, %s9241_s26  ;;  %v261_v5 = vld [vmem:[%s9464_s25 + $0x28] sm:$0xff]  ;;  %v260_v6 = vld [vmem:[%s9464_s25 + $0x20] sm:$0xff]  ;;  %s9242_s29 = smov 127   ;;  %v9580_v34 = vshrl.u32 %v14291_v21, 7 }
  0x72   : > { %244 = vst.msk [vmem:[#allocation2 + $0x8] sm:$0xff] %vm242_vm0, %v14292_v0  ;;  %250 = vst.msk [vmem:[#allocation2 + $0x30] sm:$0xff] %vm242_vm0, %v14292_v0  ;;  %v263_v7 = vld [vmem:[%s9464_s25 + $0x38] sm:$0xff]  ;;  %v262_v8 = vld [vmem:[%s9464_s25 + $0x30] sm:$0xff]  ;;  %v9243_v19 = vmov 1983009808  }
  0x73   : > { %251 = vst.msk [vmem:[#allocation2 + $0x38] sm:$0xff] %vm242_vm0, %v14292_v0  ;;  %253 = vst.msk [vmem:[#allocation2 + $0x48] sm:$0xff] %vm242_vm0, %v14292_v0  ;;  %v500_v20 = vunpack.c.l.s4 %v9243_v19  ;;  %s9244_s7 = smov 126   ;;  %s9246_s13 = smov 32   ;;  %vm2001_vm3 = vcmask 130048   ;;  %vm2007_vm4 = vcmask 261120  }
  0x74   : > { %254 = vst.msk [vmem:[#allocation2 + $0x50] sm:$0xff] %vm242_vm0, %v14292_v0  ;;  %2222 = vst.msk [vmem:[#allocation3] sm:$0xff] %vm242_vm0, %v14292_v0  ;;  %s9247_s14 = smov 64   ;;  %s9248_s20 = smov 96   ;;  %vm2013_vm5 = vcmask 392192   ;;  %vm2019_vm6 = vcmask 523264  }
  0x75   : > { %2223 = vst.msk [vmem:[#allocation3 + $0x8] sm:$0xff] %vm242_vm0, %v14292_v0  ;;  %2225 = vst.msk [vmem:[#allocation3 + $0x18] sm:$0xff] %vm242_vm0, %v14292_v0  ;;  %278 = vrot.lane.b32.xlu1 %v259_v3, %s9241_s26  ;;  %274 = vrot.lane.b32.xlu0 %v257_v4, %s9241_s26  ;;  %v501_v33 = vunpack.c.0.s8 %v500_v20  ;;  %s9249_s10 = smov 16   ;;  %s9250_s8 = smov 48   ;;  %vm2025_vm7 = vcmask 654336   ;;  %vm2031_vm8 = vcmask 785408  }
  0x76   : > { %2226 = vst.msk [vmem:[#allocation3 + $0x20] sm:$0xff] %vm242_vm0, %v14292_v0  ;;  %2228 = vst.msk [vmem:[#allocation3 + $0x30] sm:$0xff] %vm242_vm0, %v14292_v0  ;;  %s9251_s30 = smov 80   ;;  %s9252_s11 = smov 112   ;;  %vm2037_vm9 = vcmask 916480   ;;  %vm2088_vm10 = vcmask 1043456  }
  0x77   : > { %2229 = vst.msk [vmem:[#allocation3 + $0x38] sm:$0xff] %vm242_vm0, %v14292_v0  ;;  %2231 = vst.msk [vmem:[#allocation3 + $0x48] sm:$0xff] %vm242_vm0, %v14292_v0  ;;  %v9595_v47 = vsub.s32 %v501_v33, %v9580_v34  ;;  %vm2084_vm11 = vcmask 293888   ;;  %vm6109_vm12 = vcmask 588800   ;;  %vm7704_vm13 = vcmask 15360   ;;  %p15008_p4 = scmp.ne.s32.totalorder %s14529_s27, 0 }
  0x78   : > { %2232 = vst.msk [vmem:[#allocation3 + $0x50] sm:$0xff] %vm242_vm0, %v14292_v0  ;;  %2234 = vst.msk [vmem:[#allocation3 + $0x60] sm:$0xff] %vm242_vm0, %v14292_v0  ;;  %vm7972_vm14 = vcmask 130112   ;;  %vm7979_vm15 = vcmask 195712  }
  0x79   : > { %2235 = vst.msk [vmem:[#allocation3 + $0x68] sm:$0xff] %vm242_vm0, %v14292_v0  ;;  %2237 = vst.msk [vmem:[#allocation3 + $0x78] sm:$0xff] %vm242_vm0, %v14292_v0  ;;  %282 = vrot.lane.b32.xlu1 %v261_v5, %s9241_s26  ;;  %280 = vrot.lane.b32.xlu0 %v260_v6, %s9241_s26 }
  0x7a   : > { %2238 = vst.msk [vmem:[#allocation3 + $0x80] sm:$0xff] %vm242_vm0, %v14292_v0  ;;  %2240 = vst.msk [vmem:[#allocation3 + $0x90] sm:$0xff] %vm242_vm0, %v14292_v0 }
  0x7b   : > { %2241 = vst.msk [vmem:[#allocation3 + $0x98] sm:$0xff] %vm242_vm0, %v14292_v0  ;;  %2243 = vst.msk [vmem:[#allocation3 + $0xa8] sm:$0xff] %vm242_vm0, %v14292_v0 }
  0x7c   : > { %2244 = vst.msk [vmem:[#allocation3 + $0xb0] sm:$0xff] %vm242_vm0, %v14292_v0  ;;  %14540 = vst [vmem:[#allocation14_spill] sm:$0xff] %v9580_v34  ;;  %vm7986_vm0 = vcmask 261312  }
  0x7d   : > { %249 = vst.msk [vmem:[#allocation2 + $0x28] sm:$0x3] %vm245_vm1, %v14292_v0  ;;  %246 = vst.msk [vmem:[#allocation2 + $0x10] sm:$0x3] %vm245_vm1, %v14292_v0  ;;  %286 = vrot.lane.b32.xlu1 %v263_v7, %s9241_s26  ;;  %284 = vrot.lane.b32.xlu0 %v262_v8, %s9241_s26 }
  0x7e   : > { %252 = vst.msk [vmem:[#allocation2 + $0x40] sm:$0x3] %vm245_vm1, %v14292_v0  ;;  %255 = vst.msk [vmem:[#allocation2 + $0x58] sm:$0x3] %vm245_vm1, %v14292_v0 }
  0x7f   : > { %2224 = vst.msk [vmem:[#allocation3 + $0x10] sm:$0x3] %vm245_vm1, %v14292_v0  ;;  %2227 = vst.msk [vmem:[#allocation3 + $0x28] sm:$0x3] %vm245_vm1, %v14292_v0 }
  0x80   : > { %2230 = vst.msk [vmem:[#allocation3 + $0x40] sm:$0x3] %vm245_vm1, %v14292_v0  ;;  %2233 = vst.msk [vmem:[#allocation3 + $0x58] sm:$0x3] %vm245_vm1, %v14292_v0 }
  0x81   : > { %2236 = vst.msk [vmem:[#allocation3 + $0x70] sm:$0x3] %vm245_vm1, %v14292_v0  ;;  %2239 = vst.msk [vmem:[#allocation3 + $0x88] sm:$0x3] %vm245_vm1, %v14292_v0 }
  0x82   : > { %2242 = vst.msk [vmem:[#allocation3 + $0xa0] sm:$0x3] %vm245_vm1, %v14292_v0  ;;  %2245 = vst.msk [vmem:[#allocation3 + $0xb8] sm:$0x3] %vm245_vm1, %v14292_v0  ;;  %vm7993_vm1 = vcmask 326912  }
  0xe3   : > { %v277_v9 = vpop.permute.xlu1 %276  ;;  %v273_v10 = vpop.permute.xlu0 %272 }
  0xe4   : > { %299 = vst.msk [vmem:[#allocation2 + $0x19] sm:$0xff] %vm296_vm2, %v277_v9  ;;  %297 = vst.msk [vmem:[#allocation2 + $0x1] sm:$0xff] %vm296_vm2, %v273_v10 }
  0xe7   : > { %v279_v11 = vpop.permute.xlu1 %278  ;;  %v275_v12 = vpop.permute.xlu0 %274 }
  0xe8   : > { %300 = vst.msk [vmem:[#allocation2 + $0x21] sm:$0xff] %vm296_vm2, %v279_v11  ;;  %298 = vst.msk [vmem:[#allocation2 + $0x9] sm:$0xff] %vm296_vm2, %v275_v12 }
  0xeb   : > { %v283_v13 = vpop.permute.xlu1 %282  ;;  %v281_v14 = vpop.permute.xlu0 %280  ;;  %v9562_v22 = vld [vmem:[#allocation2] sm:$0xff]  ;;  %v9582_v35 = vld [vmem:[#allocation2 + $0x18] sm:$0xff] }
  0xec   : > { %302 = vst.msk [vmem:[#allocation2 + $0x39] sm:$0xff] %vm296_vm2, %v283_v13  ;;  %301 = vst.msk [vmem:[#allocation2 + $0x31] sm:$0xff] %vm296_vm2, %v281_v14  ;;  %v9599_v49 = vld [vmem:[#allocation2 + $0x1] sm:$0xff]  ;;  %v9606_v51 = vld [vmem:[#allocation2 + $0x19] sm:$0xff] }
  0xef   : > { %v287_v15 = vpop.permute.xlu1 %286  ;;  %v285_v16 = vpop.permute.xlu0 %284  ;;  %v308_v17 = vld [vmem:[#allocation2 + $0x20] sm:$0xff]  ;;  %v306_v18 = vld [vmem:[#allocation2 + $0x8] sm:$0xff] }
  0xf0   : > { %304 = vst.msk [vmem:[#allocation2 + $0x51] sm:$0xff] %vm296_vm2, %v287_v15  ;;  %303 = vst.msk [vmem:[#allocation2 + $0x49] sm:$0xff] %vm296_vm2, %v285_v16  ;;  %343 = vrot.lane.b32.xlu1 %v308_v17, %s9242_s29  ;;  %339 = vrot.lane.b32.xlu0 %v306_v18, %s9242_s29  ;;  %v9573_v30 = vld [vmem:[#allocation2 + $0x9] sm:$0xff]  ;;  %v316_v42 = vld [vmem:[#allocation2 + $0x21] sm:$0xff] }
  0xf3   : > { %v310_v23 = vld [vmem:[#allocation2 + $0x38] sm:$0xff]  ;;  %v9564_v24 = vld [vmem:[#allocation2 + $0x30] sm:$0xff] }
  0xf4   : > { %v9566_v25 = vld [vmem:[#allocation2 + $0x39] sm:$0xff]  ;;  %347 = vrot.lane.b32.xlu0 %v310_v23, %s9242_s29  ;;  %v1109_v26 = vcombine.low %v306_v18, %v310_v23  ;;  %v1110_v27 = vcombine.high %v306_v18, %v310_v23  ;;  %v497_v28 = vcombine.low %v9562_v22, %v9564_v24  ;;  %v498_v29 = vcombine.high %v9562_v22, %v9564_v24  ;;  %v9592_v46 = vld [vmem:[#allocation2 + $0x31] sm:$0xff] }
  0xf5   : > { %v1277_v31 = vcombine.low %v9573_v30, %v9566_v25  ;;  %v1278_v32 = vcombine.high %v9573_v30, %v9566_v25  ;;  %v665_v52 = vcombine.low %v9599_v49, %v9592_v46  ;;  %v666_v53 = vcombine.high %v9599_v49, %v9592_v46 }
  0xf6   : > { %v9623_v58 = vrot.slane %v1109_v26, %v9595_v47  ;;  %v9626_v59 = vrot.slane %v1110_v27, %v9595_v47  ;;  %v9635_v62 = vrot.slane %v497_v28, %v9595_v47  ;;  %v9679_v14 = vrot.slane %v498_v29, %v9595_v47  ;;  %v9728_v28 = vld [vmem:[#allocation2 + $0x3a] sm:$0xff] }
  0xf7   : > { %v312_v36 = vld [vmem:[#allocation2 + $0x50] sm:$0xff]  ;;  %v311_v37 = vld [vmem:[#allocation2 + $0x48] sm:$0xff]  ;;  %v9638_v63 = vrot.slane %v1277_v31, %v9595_v47  ;;  %v9641_v1 = vrot.slane %v1278_v32, %v9595_v47  ;;  %v9653_v4 = vrot.slane %v665_v52, %v9595_v47  ;;  %v9682_v15 = vrot.slane %v666_v53, %v9595_v47 }
  0xf8   : > { %v9584_v38 = vld [vmem:[#allocation2 + $0x51] sm:$0xff]  ;;  %351 = vrot.lane.b32.xlu1 %v312_v36, %s9242_s29  ;;  %v1125_v39 = vcombine.low %v308_v17, %v312_v36  ;;  %v1126_v40 = vcombine.high %v308_v17, %v312_v36  ;;  %363 = vrot.lane.b32.xlu0 %v306_v18, %s9244_s7  ;;  %v513_v41 = vcombine.low %v9582_v35, %v311_v37  ;;  %v9597_v48 = vld [vmem:[#allocation2 + $0x49] sm:$0xff] }
  0xf9   : > { %v514_v43 = vcombine.high %v9582_v35, %v311_v37  ;;  %v1293_v44 = vcombine.low %v316_v42, %v9584_v38  ;;  %v1294_v45 = vcombine.high %v316_v42, %v9584_v38  ;;  %v681_v56 = vcombine.low %v9606_v51, %v9597_v48  ;;  %v9734_v29 = vld [vmem:[#allocation2 + $0x52] sm:$0xff]  ;;  %v9766_v32 = vld [vmem:[#allocation2 + $0x4a] sm:$0xff] }
  0xfa   : > { %v9602_v50 = vrot.slane %v1125_v39, %v9595_v47  ;;  %v9613_v54 = vrot.slane %v513_v41, %v9595_v47  ;;  %v682_v57 = vcombine.high %v9606_v51, %v9597_v48  ;;  %v9629_v60 = vrot.slane %v1126_v40, %v9595_v47  ;;  %v9760_v31 = vld [vmem:[#allocation2 + $0x32] sm:$0xff]  ;;  %14544 = vst [vmem:[#allocation18_spill] sm:$0xff] %v9766_v32 }
  0xfb   : > { %v9616_v55 = vrot.slane %v1293_v44, %v9595_v47  ;;  %v9632_v61 = vrot.slane %v1294_v45, %v9595_v47  ;;  %v9644_v2 = vrot.slane %v681_v56, %v9595_v47  ;;  %v9650_v3 = vrot.slane %v514_v43, %v9595_v47  ;;  %14543 = vst [vmem:[#allocation17_spill] sm:$0xff] %v9760_v31 }
  0xfc   : > { %367 = vrot.lane.b32.xlu1 %v308_v17, %s9244_s7  ;;  %371 = vrot.lane.b32.xlu0 %v310_v23, %s9244_s7  ;;  %v1173_v5 = vcombine.low %v9623_v58, %v9602_v50  ;;  %v1174_v7 = vcombine.high %v9623_v58, %v9602_v50  ;;  %v561_v9 = vcombine.low %v9635_v62, %v9613_v54 }
  0xfd   : > { %v1341_v6 = vcombine.low %v9638_v63, %v9616_v55  ;;  %v1342_v8 = vcombine.high %v9638_v63, %v9616_v55  ;;  %v9666_v10 = vrot.slane %v682_v57, %v9595_v47  ;;  %v729_v11 = vcombine.low %v9653_v4, %v9644_v2 }
  0xfe   : > { %v1189_v12 = vcombine.low %v9626_v59, %v9629_v60  ;;  %v1357_v13 = vcombine.low %v9641_v1, %v9632_v61  ;;  %v562_v16 = vcombine.high %v9635_v62, %v9613_v54  ;;  %v730_v17 = vcombine.high %v9653_v4, %v9644_v2 }
  0xff   : > { %v577_v18 = vcombine.low %v9679_v14, %v9650_v3  ;;  %v745_v19 = vcombine.low %v9682_v15, %v9666_v10  ;;  %v1190_v20 = vcombine.high %v9626_v59, %v9629_v60  ;;  %v1358_v23 = vcombine.high %v9641_v1, %v9632_v61 }
 0x100   : > { %375 = vrot.lane.b32.xlu1 %v312_v36, %s9244_s7  ;;  %337 = vrot.lane.b32.xlu0 %v9562_v22, %s9242_s29  ;;  %v578_v26 = vcombine.high %v9679_v14, %v9650_v3 }
 0x104   : > { %341 = vrot.lane.b32.xlu1 %v9582_v35, %s9242_s29  ;;  %345 = vrot.lane.b32.xlu0 %v9564_v24, %s9242_s29 }
 0x108   : > { %349 = vrot.lane.b32.xlu1 %v311_v37, %s9242_s29  ;;  %361 = vrot.lane.b32.xlu0 %v9562_v22, %s9244_s7  ;;  %v9720_v22 = vld [vmem:[#allocation2 + $0xa] sm:$0xff] }
 0x10c   : > { %365 = vrot.lane.b32.xlu1 %v9582_v35, %s9244_s7  ;;  %369 = vrot.lane.b32.xlu0 %v9564_v24, %s9244_s7  ;;  %v9726_v24 = vld [vmem:[#allocation2 + $0x22] sm:$0xff]  ;;  %v9245_v35 = vmov 1934713408  }
 0x10d   : > { %v564_v36 = vunpack.c.l.s4 %v9245_v35 }
 0x10f   : > { %v565_v40 = vunpack.c.0.s8 %v564_v36 }
 0x110   : > { %373 = vrot.lane.b32.xlu1 %v311_v37, %s9244_s7  ;;  %395 = vrot.lane.b32.xlu0 %v9573_v30, %s9242_s29 }
 0x114   : > { %399 = vrot.lane.b32.xlu1 %v316_v42, %s9242_s29  ;;  %403 = vrot.lane.b32.xlu0 %v9566_v25, %s9242_s29 }
 0x118   : > { %407 = vrot.lane.b32.xlu1 %v9584_v38, %s9242_s29  ;;  %419 = vrot.lane.b32.xlu0 %v9573_v30, %s9244_s7  ;;  %v9758_v30 = vld [vmem:[#allocation2 + $0x1a] sm:$0xff] }
 0x119   : > { %14542 = vst [vmem:[#allocation16_spill] sm:$0xff] %v9758_v30 }
 0x11c   : > { %423 = vrot.lane.b32.xlu1 %v316_v42, %s9244_s7  ;;  %427 = vrot.lane.b32.xlu0 %v9566_v25, %s9244_s7  ;;  %v9752_v25 = vld [vmem:[#allocation2 + $0x2] sm:$0xff] }
 0x11d   : > { %14541 = vst [vmem:[#allocation15_spill] sm:$0xff] %v9752_v25 }
 0x120   : > { %431 = vrot.lane.b32.xlu1 %v9584_v38, %s9244_s7  ;;  %451 = vrot.lane.b32.xlu0 %v9720_v22, %s9242_s29 }
 0x124   : > { %455 = vrot.lane.b32.xlu1 %v9726_v24, %s9242_s29  ;;  %459 = vrot.lane.b32.xlu0 %v9728_v28, %s9242_s29 }
 0x128   : > { %463 = vrot.lane.b32.xlu1 %v9734_v29, %s9242_s29  ;;  %393 = vrot.lane.b32.xlu0 %v9599_v49, %s9242_s29 }
 0x12c   : > { %397 = vrot.lane.b32.xlu1 %v9606_v51, %s9242_s29  ;;  %401 = vrot.lane.b32.xlu0 %v9592_v46, %s9242_s29 }
 0x130   : > { %405 = vrot.lane.b32.xlu1 %v9597_v48, %s9242_s29  ;;  %417 = vrot.lane.b32.xlu0 %v9599_v49, %s9244_s7 }
 0x134   : > { %421 = vrot.lane.b32.xlu1 %v9606_v51, %s9244_s7  ;;  %425 = vrot.lane.b32.xlu0 %v9592_v46, %s9244_s7  ;;  %v9790_v51 = vsub.s32 %v565_v40, %v9580_v34 }
 0x136   : > { %v1365_v58 = vrot.slane %v1357_v13, %v9790_v51  ;;  %v753_v54 = vrot.slane %v745_v19, %v9790_v51  ;;  %v592_v62 = vrot.slane %v578_v26, %v9790_v51  ;;  %v14559_v26 = vcombine.high %v9682_v15, %v9666_v10 }
 0x138   : > { %429 = vrot.lane.b32.xlu1 %v9597_v48, %s9244_s7  ;;  %449 = vrot.lane.b32.xlu0 %v9752_v25, %s9242_s29 }
 0x13c   : > { %453 = vrot.lane.b32.xlu1 %v9758_v30, %s9242_s29  ;;  %457 = vrot.lane.b32.xlu0 %v9760_v31, %s9242_s29 }
 0x140   : > { %461 = vrot.lane.b32.xlu1 %v9766_v32, %s9242_s29  ;;  %475 = vrot.lane.b32.xlu0 %v9720_v22, %s9244_s7 }
 0x144   : > { %479 = vrot.lane.b32.xlu1 %v9726_v24, %s9244_s7  ;;  %483 = vrot.lane.b32.xlu0 %v9728_v28, %s9244_s7 }
 0x148   : > { %487 = vrot.lane.b32.xlu1 %v9734_v29, %s9244_s7  ;;  %473 = vrot.lane.b32.xlu0 %v9752_v25, %s9244_s7 }
 0x14c   : > { %477 = vrot.lane.b32.xlu1 %v9758_v30, %s9244_s7  ;;  %481 = vrot.lane.b32.xlu0 %v9760_v31, %s9244_s7 }
 0x150   : > { %485 = vrot.lane.b32.xlu1 %v9766_v32, %s9244_s7 }
 0x162   : > { %v340_v33 = vpop.permute.xlu0 %339  ;;  %v344_v37 = vpop.permute.xlu1 %343 }
 0x166   : > { %v348_v38 = vpop.permute.xlu0 %347 }
 0x167   : > { %v1141_v39 = vcombine.low %v340_v33, %v348_v38  ;;  %v1142_v41 = vcombine.high %v340_v33, %v348_v38 }
 0x169   : > { %v1149_v46 = vrot.slane %v1141_v39, %v9595_v47  ;;  %v1156_v52 = vrot.slane %v1142_v41, %v9595_v47  ;;  %v9806_v41 = vrot.slane %v1341_v6, %v9790_v51  ;;  %v1197_v6 = vrot.slane %v1189_v12, %v9790_v51 }
 0x16a   : > { %v352_v42 = vpop.permute.xlu1 %351  ;;  %v364_v43 = vpop.permute.xlu0 %363 }
 0x16b   : > { %v1157_v44 = vcombine.low %v344_v37, %v352_v42  ;;  %v1158_v45 = vcombine.high %v344_v37, %v352_v42  ;;  %v9797_v37 = vrot.slane %v1173_v5, %v9790_v51  ;;  %14547 = vst [vmem:[#allocation21_spill] sm:$0xff] %v9806_v41 }
 0x16d   : > { %v1165_v48 = vrot.slane %v1157_v44, %v9595_v47  ;;  %v1172_v49 = vrot.slane %v1158_v45, %v9595_v47  ;;  %14545 = vst [vmem:[#allocation19_spill] sm:$0xff] %v9797_v37 }
 0x16e   : > { %v368_v53 = vpop.permute.xlu1 %367  ;;  %v372_v56 = vpop.permute.xlu0 %371 }
 0x16f   : > { %v1205_v57 = vcombine.low %v1149_v46, %v1165_v48  ;;  %v1206_v35 = vcombine.high %v1149_v46, %v1165_v48  ;;  %v1221_v33 = vcombine.low %v1156_v52, %v1172_v49  ;;  %v1245_v36 = vcombine.low %v364_v43, %v372_v56 }
 0x170   : > { %v1246_v38 = vcombine.high %v364_v43, %v372_v56  ;;  %v1222_v40 = vcombine.high %v1156_v52, %v1172_v49  ;;  %v1188_v43 = vrot.slane %v1174_v7, %v9790_v51  ;;  %v1356_v48 = vrot.slane %v1342_v8, %v9790_v51 }
 0x171   : > { %v9800_v39 = vrot.slane %v1205_v57, %v9790_v51  ;;  %v1220_v49 = vrot.slane %v1206_v35, %v9790_v51  ;;  %v1229_v50 = vrot.slane %v1221_v33, %v9790_v51  ;;  %v1253_v7 = vrot.slane %v1245_v36, %v9595_v47 }
 0x172   : > { %v376_v42 = vpop.permute.xlu1 %375  ;;  %v338_v44 = vpop.permute.xlu0 %337  ;;  %v1260_v52 = vrot.slane %v1246_v38, %v9595_v47  ;;  %v1204_v56 = vrot.slane %v1190_v20, %v9790_v51  ;;  %v1236_v13 = vrot.slane %v1222_v40, %v9790_v51  ;;  %v1372_v57 = vrot.slane %v1358_v23, %v9790_v51 }
 0x173   : > { %14546 = vst [vmem:[#allocation20_spill] sm:$0xff] %v9800_v39  ;;  %v1261_v45 = vcombine.low %v368_v53, %v376_v42  ;;  %v1262_v5 = vcombine.high %v368_v53, %v376_v42  ;;  %v1238_v12 = vcombine.high %v9797_v37, %v9800_v39  ;;  %v1241_v21 = vcombine.low %v1197_v6, %v1229_v50 }
 0x175   : > { %v1269_v55 = vrot.slane %v1261_v45, %v9595_v47  ;;  %v1276_v63 = vrot.slane %v1262_v5, %v9595_v47  ;;  %v1239_v45 = vcombine.low %v1188_v43, %v1220_v49  ;;  %v1240_v5 = vcombine.high %v1188_v43, %v1220_v49 }
 0x176   : > { %v342_v8 = vpop.permute.xlu1 %341  ;;  %v346_v53 = vpop.permute.xlu0 %345 }
 0x177   : > { %v1309_v35 = vcombine.low %v1253_v7, %v1269_v55  ;;  %v1310_v33 = vcombine.high %v1253_v7, %v1269_v55  ;;  %v1325_v36 = vcombine.low %v1260_v52, %v1276_v63  ;;  %v1326_v38 = vcombine.high %v1260_v52, %v1276_v63 }
 0x178   : > { %v529_v42 = vcombine.low %v338_v44, %v346_v53  ;;  %v530_v40 = vcombine.high %v338_v44, %v346_v53  ;;  %v1242_v7 = vcombine.high %v1197_v6, %v1229_v50  ;;  %v1243_v52 = vcombine.low %v1204_v56, %v1236_v13 }
 0x179   : > { %v9844_v46 = vrot.slane %v1309_v35, %v9790_v51  ;;  %v1324_v59 = vrot.slane %v1310_v33, %v9790_v51  ;;  %v1333_v60 = vrot.slane %v1325_v36, %v9790_v51  ;;  %v1340_v20 = vrot.slane %v1326_v38, %v9790_v51 }
 0x17a   : > { %v537_v61 = vrot.slane %v529_v42, %v9595_v47  ;;  %v350_v1 = vpop.permute.xlu1 %349  ;;  %v362_v23 = vpop.permute.xlu0 %361 }
 0x17b   : > { %14548 = vst [vmem:[#allocation22_spill] sm:$0xff] %v9844_v46  ;;  %v545_v55 = vcombine.low %v342_v8, %v350_v1  ;;  %v546_v63 = vcombine.high %v342_v8, %v350_v1  ;;  %v1374_v49 = vcombine.high %v9844_v46, %v9806_v41  ;;  %v1375_v35 = vcombine.low %v1324_v59, %v1356_v48 }
 0x17c   : > { %v1376_v33 = vcombine.high %v1324_v59, %v1356_v48  ;;  %v1377_v36 = vcombine.low %v1333_v60, %v1365_v58  ;;  %v1378_v0 = vcombine.high %v1333_v60, %v1365_v58  ;;  %v1379_v6 = vcombine.low %v1340_v20, %v1372_v57 }
 0x17d   : > { %v553_v44 = vrot.slane %v545_v55, %v9595_v47  ;;  %v560_v53 = vrot.slane %v546_v63, %v9595_v47  ;;  %v9856_v38 = vpack.i.bf16 %v1374_v49, %v1238_v12  ;;  %v9858_v8 = vpack.i.bf16 %v1375_v35, %v1239_v45 }
 0x17e   : > { %v366_v50 = vpop.permute.xlu1 %365  ;;  %v370_v42 = vpop.permute.xlu0 %369  ;;  %v9860_v1 = vpack.i.bf16 %v1376_v33, %v1240_v5  ;;  %v9862_v43 = vpack.i.bf16 %v1377_v36, %v1241_v21  ;;  %v9864_v27 = vpack.i.bf16 %v1378_v0, %v1242_v7  ;;  %v544_v58 = vrot.slane %v530_v40, %v9595_v47 }
 0x17f   : > { %v593_v48 = vcombine.low %v537_v61, %v553_v44  ;;  %v9867_v59 = vpack.i.bf16 %v1379_v6, %v1243_v52  ;;  %v1244_v60 = vcombine.high %v1204_v56, %v1236_v13  ;;  %v1380_v55 = vcombine.high %v1340_v20, %v1372_v57 }
 0x180   : > { %14549 = vst [vmem:[#allocation23_spill] sm:$0xff] %v9864_v27  ;;  %v633_v12 = vcombine.low %v362_v23, %v370_v42  ;;  %v634_v63 = vcombine.high %v362_v23, %v370_v42  ;;  %v9873_v45 = vrot.slane %v561_v9, %v9790_v51  ;;  %v594_v0 = vcombine.high %v537_v61, %v553_v44 }
 0x181   : > { %14550 = vst [vmem:[#allocation24_spill] sm:$0xff] %v9867_v59  ;;  %v9876_v21 = vrot.slane %v593_v48, %v9790_v51  ;;  %v609_v5 = vcombine.low %v544_v58, %v560_v53  ;;  %v9880_v40 = vpack.i.bf16 %v1380_v55, %v1244_v60  ;;  %v610_v20 = vcombine.high %v544_v58, %v560_v53 }
 0x182   : > { %14551 = vst [vmem:[#allocation25_spill] sm:$0xff] %v9873_v45  ;;  %v374_v7 = vpop.permute.xlu1 %373  ;;  %v9878_v49 = vpop.permute.xlu0 %395  ;;  %v9888_v9 = vrot.slane %v729_v11, %v9790_v51  ;;  %v641_v61 = vrot.slane %v633_v12, %v9595_v47  ;;  %v648_v23 = vrot.slane %v634_v63, %v9595_v47  ;;  %v576_v44 = vrot.slane %v562_v16, %v9790_v51 }
 0x183   : > { %14552 = vst [vmem:[#allocation26_spill] sm:$0xff] %v9876_v21  ;;  %14553 = vst [vmem:[#allocation27_spill] sm:$0xff] %v9878_v49  ;;  %v649_v56 = vcombine.low %v366_v50, %v374_v7  ;;  %v650_v13 = vcombine.high %v366_v50, %v374_v7  ;;  %v608_v11 = vrot.slane %v594_v0, %v9790_v51 }
 0x184   : > { %14554 = vst [vmem:[#allocation28_spill] sm:$0xff] %v9880_v40  ;;  %14555 = vst [vmem:[#allocation29_spill] sm:$0xff] %v9888_v9  ;;  %v744_v53 = vrot.slane %v730_v17, %v9790_v51  ;;  %v617_v6 = vrot.slane %v609_v5, %v9790_v51  ;;  %v585_v60 = vrot.slane %v577_v18, %v9790_v51 }
 0x185   : > { %v657_v52 = vrot.slane %v649_v56, %v9595_v47  ;;  %v664_v35 = vrot.slane %v650_v13, %v9595_v47  ;;  %v624_v2 = vrot.slane %v610_v20, %v9790_v51  ;;  %v626_v19 = vcombine.high %v9873_v45, %v9876_v21 }
 0x186   : > { %v9894_v33 = vpop.permute.xlu1 %399  ;;  %v9896_v36 = vpop.permute.xlu0 %403  ;;  %v627_v3 = vcombine.low %v576_v44, %v608_v11  ;;  %v628_v14 = vcombine.high %v576_v44, %v608_v11  ;;  %v760_v63 = vrot.slane %v14559_v26, %v9790_v51  ;;  %v629_v7 = vcombine.low %v585_v60, %v617_v6 }
 0x187   : > { %14556 = vst [vmem:[#allocation30_spill] sm:$0xff] %v9896_v36  ;;  %v697_v50 = vcombine.low %v641_v61, %v657_v52  ;;  %v698_v42 = vcombine.high %v641_v61, %v657_v52  ;;  %v713_v48 = vcombine.low %v648_v23, %v664_v35  ;;  %v714_v58 = vcombine.high %v648_v23, %v664_v35 }
 0x188   : > { %v630_v56 = vcombine.high %v585_v60, %v617_v6  ;;  %v631_v44 = vcombine.low %v592_v62, %v624_v2  ;;  %v632_v60 = vcombine.high %v592_v62, %v624_v2  ;;  %v1533_v62 = vcombine.low %v9726_v24, %v9734_v29 }
 0x189   : > { %v9922_v4 = vrot.slane %v697_v50, %v9790_v51  ;;  %v712_v16 = vrot.slane %v698_v42, %v9790_v51  ;;  %v721_v17 = vrot.slane %v713_v48, %v9790_v51  ;;  %v728_v18 = vrot.slane %v714_v58, %v9790_v51 }
 0x18a   : > { %v9927_v55 = vpop.permute.xlu1 %407  ;;  %v9929_v12 = vpop.permute.xlu0 %419  ;;  %v1381_v48 = vcombine.low %v9878_v49, %v9896_v36  ;;  %v921_v46 = vcombine.low %v9758_v30, %v9766_v32 }
 0x18b   : > { %14557 = vst [vmem:[#allocation31_spill] sm:$0xff] %v9922_v4  ;;  %14558 = vst [vmem:[#allocation32_spill] sm:$0xff] %v9929_v12  ;;  %v762_v5 = vcombine.high %v9922_v4, %v9888_v9  ;;  %v763_v13 = vcombine.low %v712_v16, %v744_v53  ;;  %v764_v20 = vcombine.high %v712_v16, %v744_v53 }
 0x18c   : > { %v765_v61 = vcombine.low %v721_v17, %v753_v54  ;;  %v766_v23 = vcombine.high %v721_v17, %v753_v54  ;;  %v1397_v52 = vcombine.low %v9894_v33, %v9927_v55  ;;  %v767_v10 = vcombine.low %v728_v18, %v760_v63 }
 0x18d   : > { %v9943_v35 = vpack.i.bf16 %v762_v5, %v626_v19  ;;  %v9949_v50 = vpack.i.bf16 %v763_v13, %v627_v3  ;;  %v9951_v42 = vpack.i.bf16 %v764_v20, %v628_v14  ;;  %v768_v54 = vcombine.high %v728_v18, %v760_v63 }
 0x18e   : > { %v9945_v15 = vpop.permute.xlu1 %423  ;;  %v9947_v11 = vpop.permute.xlu0 %427  ;;  %v9953_v6 = vpack.i.bf16 %v765_v61, %v629_v7  ;;  %v9955_v53 = vpack.i.bf16 %v766_v23, %v630_v56  ;;  %v9959_v58 = vpack.i.bf16 %v767_v10, %v631_v44  ;;  %v9962_v16 = vrot.slane %v1397_v52, %v9595_v47 }
 0x18f   : > { %14560 = vst [vmem:[#allocation33_spill] sm:$0xff] %v9947_v11  ;;  %v1413_v17 = vcombine.low %v9929_v12, %v9947_v11  ;;  %v9970_v14 = vpack.i.bf16 %v768_v54, %v632_v60  ;;  %v9973_v26 = vrot.slane %v1381_v48, %v9595_v47  ;;  %v1517_v13 = vcombine.low %v9720_v22, %v9728_v28 }
 0x190   : > { %14561 = vst [vmem:[#allocation34_spill] sm:$0xff] %v9955_v53  ;;  %14562 = vst [vmem:[#allocation35_spill] sm:$0xff] %v9959_v58  ;;  %v9996_v61 = vrot.slane %v1533_v62, %v9595_v47 }
 0x191   : > { %14563 = vst [vmem:[#allocation36_spill] sm:$0xff] %v9970_v14  ;;  %v1445_v2 = vcombine.low %v9973_v26, %v9962_v16  ;;  %v9982_v18 = vrot.slane %v1413_v17, %v9595_v47  ;;  %v10011_v60 = vrot.slane %v1517_v13, %v9595_v47 }
 0x192   : > { %v9966_v19 = vpop.permute.xlu1 %431  ;;  %v9968_v3 = vpop.permute.xlu0 %451 }
 0x193   : > { %v1429_v5 = vcombine.low %v9945_v15, %v9966_v19  ;;  %v10001_v52 = vrot.slane %v1445_v2, %v9790_v51  ;;  %v1581_v2 = vcombine.low %v10011_v60, %v9996_v61 }
 0x195   : > { %v9985_v63 = vrot.slane %v1429_v5, %v9595_v47  ;;  %v10032_v0 = vrot.slane %v1581_v2, %v9790_v51 }
 0x196   : > { %v9987_v7 = vpop.permute.xlu1 %455  ;;  %v9989_v56 = vpop.permute.xlu0 %459 }
 0x197   : > { %v1477_v20 = vcombine.low %v9982_v18, %v9985_v63  ;;  %v1549_v23 = vcombine.low %v9968_v3, %v9989_v56 }
 0x199   : > { %v10004_v44 = vrot.slane %v1477_v20, %v9790_v51  ;;  %v10018_v5 = vrot.slane %v1549_v23, %v9595_v47 }
 0x19a   : > { %v10006_v10 = vpop.permute.xlu1 %463  ;;  %v10008_v48 = vpop.permute.xlu0 %393 }
 0x19b   : > { %14564 = vst [vmem:[#allocation37_spill] sm:$0xff] %v10008_v48  ;;  %v1565_v54 = vcombine.low %v9987_v7, %v10006_v10 }
 0x19d   : > { %v10021_v62 = vrot.slane %v1565_v54, %v9595_v47 }
 0x19e   : > { %v10025_v20 = vpop.permute.xlu1 %397  ;;  %v10027_v57 = vpop.permute.xlu0 %401 }
 0x19f   : > { %14565 = vst [vmem:[#allocation38_spill] sm:$0xff] %v10025_v20  ;;  %14566 = vst [vmem:[#allocation39_spill] sm:$0xff] %v10027_v57  ;;  %v1613_v13 = vcombine.low %v10018_v5, %v10021_v62  ;;  %v769_v2 = vcombine.low %v10008_v48, %v10027_v57  ;;  %v10084_v57 = vrot.slane %v921_v46, %v9595_v47 }
 0x1a1   : > { %v10035_v17 = vrot.slane %v1613_v13, %v9790_v51  ;;  %v10061_v34 = vrot.slane %v769_v2, %v9595_v47  ;;  %v905_v2 = vcombine.low %v9752_v25, %v9760_v31 }
 0x1a2   : > { %v10037_v23 = vpop.permute.xlu1 %405  ;;  %v10039_v54 = vpop.permute.xlu0 %417 }
 0x1a3   : > { %14567 = vst [vmem:[#allocation40_spill] sm:$0xff] %v10037_v23  ;;  %14568 = vst [vmem:[#allocation41_spill] sm:$0xff] %v10039_v54  ;;  %v785_v21 = vcombine.low %v10025_v20, %v10037_v23  ;;  %v10097_v23 = vrot.slane %v905_v2, %v9595_v47 }
 0x1a5   : > { %v10052_v13 = vrot.slane %v785_v21, %v9595_v47 }
 0x1a6   : > { %v10045_v45 = vpop.permute.xlu1 %421  ;;  %v10047_v9 = vpop.permute.xlu0 %425 }
 0x1a7   : > { %14569 = vst [vmem:[#allocation42_spill] sm:$0xff] %v10045_v45  ;;  %14570 = vst [vmem:[#allocation43_spill] sm:$0xff] %v10047_v9  ;;  %v801_v4 = vcombine.low %v10039_v54, %v10047_v9  ;;  %v833_v21 = vcombine.low %v10061_v34, %v10052_v13 }
 0x1a9   : > { %v10070_v14 = vrot.slane %v801_v4, %v9595_v47  ;;  %v10089_v54 = vrot.slane %v833_v21, %v9790_v51 }
 0x1aa   : > { %v10056_v39 = vpop.permute.xlu1 %429  ;;  %v10058_v37 = vpop.permute.xlu0 %449 }
 0x1ab   : > { %14571 = vst [vmem:[#allocation44_spill] sm:$0xff] %v10056_v39  ;;  %14572 = vst [vmem:[#allocation45_spill] sm:$0xff] %v10058_v37  ;;  %v817_v41 = vcombine.low %v10045_v45, %v10056_v39 }
 0x1ad   : > { %v10073_v40 = vrot.slane %v817_v41, %v9595_v47 }
 0x1ae   : > { %v10075_v58 = vpop.permute.xlu1 %453  ;;  %v10077_v59 = vpop.permute.xlu0 %457 }
 0x1af   : > { %14573 = vst [vmem:[#allocation46_spill] sm:$0xff] %v10075_v58  ;;  %14574 = vst [vmem:[#allocation47_spill] sm:$0xff] %v10077_v59  ;;  %v865_v48 = vcombine.low %v10070_v14, %v10073_v40  ;;  %v937_v4 = vcombine.low %v10058_v37, %v10077_v59 }
 0x1b1   : > { %v10092_v41 = vrot.slane %v865_v48, %v9790_v51  ;;  %v10104_v31 = vrot.slane %v937_v4, %v9595_v47  ;;  %v969_v48 = vcombine.low %v10097_v23, %v10084_v57 }
 0x1b2   : > { %v10094_v9 = vpop.permute.xlu1 %461  ;;  %v476_v20 = vpop.permute.xlu0 %475 }
 0x1b3   : > { %14575 = vst [vmem:[#allocation48_spill] sm:$0xff] %v10094_v9  ;;  %v953_v25 = vcombine.low %v10075_v58, %v10094_v9  ;;  %v10114_v45 = vrot.slane %v969_v48, %v9790_v51 }
 0x1b5   : > { %v10107_v21 = vrot.slane %v953_v25, %v9595_v47 }
 0x1b6   : > { %v480_v53 = vpop.permute.xlu1 %479  ;;  %v484_v37 = vpop.permute.xlu0 %483 }
 0x1b7   : > { %v1001_v2 = vcombine.low %v10104_v31, %v10107_v21  ;;  %v1653_v59 = vcombine.low %v476_v20, %v484_v37  ;;  %v1654_v30 = vcombine.high %v476_v20, %v484_v37 }
 0x1b9   : > { %v10117_v46 = vrot.slane %v1001_v2, %v9790_v51  ;;  %v10122_v9 = vrot.slane %v1653_v59, %v9595_v47  ;;  %v1668_v2 = vrot.slane %v1654_v30, %v9595_v47 }
 0x1ba   : > { %v488_v4 = vpop.permute.xlu1 %487  ;;  %v474_v39 = vpop.permute.xlu0 %473 }
 0x1bb   : > { %v1669_v25 = vcombine.low %v480_v53, %v488_v4  ;;  %v1670_v32 = vcombine.high %v480_v53, %v488_v4  ;;  %14576 = vst [vmem:[#allocation49_spill] sm:$0xff] %v10122_v9 }
 0x1bd   : > { %v10125_v27 = vrot.slane %v1669_v25, %v9595_v47  ;;  %v1684_v48 = vrot.slane %v1670_v32, %v9595_v47 }
 0x1be   : > { %v478_v49 = vpop.permute.xlu1 %477  ;;  %v482_v36 = vpop.permute.xlu0 %481 }
 0x1bf   : > { %v1686_v37 = vcombine.high %v10122_v9, %v10125_v27  ;;  %v1041_v20 = vcombine.low %v474_v39, %v482_v36  ;;  %v1701_v4 = vcombine.low %v1668_v2, %v1684_v48  ;;  %v1042_v59 = vcombine.high %v474_v39, %v482_v36 }
 0x1c0   : > { %v1702_v32 = vcombine.high %v1668_v2, %v1684_v48 }
 0x1c1   : > { %v10132_v53 = vrot.slane %v1686_v37, %v9790_v51  ;;  %v10137_v25 = vrot.slane %v1041_v20, %v9595_v47  ;;  %v10144_v37 = vrot.slane %v1701_v4, %v9790_v51  ;;  %v1056_v39 = vrot.slane %v1042_v59, %v9595_v47 }
 0x1c2   : > { %v486_v58 = vpop.permute.xlu1 %485  ;;  %v10152_v36 = vrot.slane %v1702_v32, %v9790_v51  ;;  %v1582_v20 = vcombine.high %v10011_v60, %v9996_v61  ;;  %v1034_v61 = vcombine.high %v10114_v45, %v10117_v46  ;;  %v1550_v4 = vcombine.high %v9968_v3, %v9989_v56 }
 0x1c3   : > { %v1057_v12 = vcombine.low %v478_v49, %v486_v58  ;;  %v1058_v11 = vcombine.high %v478_v49, %v486_v58  ;;  %1894 = vrot.lane.b32.xlu0 %v10132_v53, %s9246_s13 }
 0x1c5   : > { %v10140_v30 = vrot.slane %v1057_v12, %v9595_v47  ;;  %v1072_v9 = vrot.slane %v1058_v11, %v9595_v47 }
 0x1c7   : > { %1934 = vrot.lane.b32.xlu0 %v10144_v37, %s9247_s14  ;;  %v1074_v49 = vcombine.high %v10137_v25, %v10140_v30  ;;  %v1089_v58 = vcombine.low %v1056_v39, %v1072_v9  ;;  %v1090_v48 = vcombine.high %v1056_v39, %v1072_v9  ;;  %v1646_v9 = vcombine.high %v10032_v0, %v10035_v17  ;;  %v14579_v39 = vld [vmem:[#allocation30_spill] sm:$0xff] }
 0x1c9   : > { %v10155_v12 = vrot.slane %v1074_v49, %v9790_v51  ;;  %v10162_v11 = vrot.slane %v1089_v58, %v9790_v51  ;;  %v10169_v2 = vrot.slane %v1090_v48, %v9790_v51  ;;  %v14580_v49 = vld [vmem:[#allocation27_spill] sm:$0xff] }
 0x1cb   : > { %1974 = vrot.lane.b32.xlu0 %v10152_v36, %s9248_s20  ;;  %1754 = vrot.lane.b32.xlu1 %v10155_v12, %s9246_s13 }
 0x1cf   : > { %8573 = vrot.lane.b32.xlu0 %v9856_v38, %s9249_s10  ;;  %1794 = vrot.lane.b32.xlu1 %v10162_v11, %s9247_s14  ;;  %v1614_v38 = vcombine.high %v10018_v5, %v10021_v62  ;;  %v1002_v5 = vcombine.high %v10104_v31, %v10107_v21  ;;  %v898_v31 = vcombine.high %v10089_v54, %v10092_v41 }
 0x1d0   : > { %v1430_v21 = vcombine.high %v9945_v15, %v9966_v19  ;;  %v14578_v15 = vld [vmem:[#allocation32_spill] sm:$0xff] }
 0x1d3   : > { %8583 = vrot.lane.b32.xlu0 %v9858_v8, %s9246_s13  ;;  %1834 = vrot.lane.b32.xlu1 %v10169_v2, %s9248_s20  ;;  %v1478_v8 = vcombine.high %v9982_v18, %v9985_v63  ;;  %v1628_v18 = vrot.slane %v1614_v38, %v9790_v51  ;;  %v866_v63 = vcombine.high %v10070_v14, %v10073_v40 }
 0x1d4   : > { %v10217_v14 = vrot.slane %v1002_v5, %v9790_v51 }
 0x1d7   : > { %8593 = vrot.lane.b32.xlu0 %v9860_v1, %s9250_s8  ;;  %8578 = vrot.lane.b32.xlu1 %v9943_v35, %s9249_s10  ;;  %v1510_v1 = vcombine.high %v10001_v52, %v10004_v44  ;;  %v1446_v35 = vcombine.high %v9973_v26, %v9962_v16  ;;  %v1492_v16 = vrot.slane %v1478_v8, %v9790_v51  ;;  %v14582_v8 = vld [vmem:[#allocation48_spill] sm:$0xff] }
 0x1d8   : > { %v1566_v26 = vcombine.high %v9987_v7, %v10006_v10  ;;  %v880_v7 = vrot.slane %v866_v63, %v9790_v51 }
 0x1d9   : > { %v8612_v62 = vpack.i.bf16 %v1646_v9, %v1510_v1  ;;  %v1460_v60 = vrot.slane %v1446_v35, %v9790_v51  ;;  %v14583_v1 = vld [vmem:[#allocation46_spill] sm:$0xff] }
 0x1da   : > { %v10237_v3 = vrot.slane %v1566_v26, %v9595_v47  ;;  %v954_v35 = vcombine.high %v14583_v1, %v14582_v8 }
 0x1db   : > { %8603 = vrot.lane.b32.xlu0 %v9862_v43, %s9247_s14  ;;  %8588 = vrot.lane.b32.xlu1 %v9949_v50, %s9246_s13  ;;  %v1596_v43 = vrot.slane %v1582_v20, %v9790_v51  ;;  %v970_v50 = vcombine.high %v10097_v23, %v10084_v57  ;;  %v834_v57 = vcombine.high %v10061_v34, %v10052_v13 }
 0x1dc   : > { %v8622_v23 = vpack.i.bf16 %v1034_v61, %v898_v31  ;;  %v1511_v34 = vcombine.low %v1460_v60, %v1492_v16  ;;  %v1518_v13 = vcombine.high %v9720_v22, %v9728_v28  ;;  %v1382_v22 = vcombine.high %v14580_v49, %v14579_v39  ;;  %v14584_v61 = vld [vmem:[#allocation18_spill] sm:$0xff]  ;;  %v14595_v49 = vld [vmem:[#allocation43_spill] sm:$0xff] }
 0x1dd   : > { %v1647_v40 = vcombine.low %v1596_v43, %v1628_v18  ;;  %v984_v10 = vrot.slane %v970_v50, %v9790_v51  ;;  %v1444_v28 = vrot.slane %v1430_v21, %v9595_v47  ;;  %v14585_v50 = vld [vmem:[#allocation16_spill] sm:$0xff]  ;;  %v14588_v21 = vld [vmem:[#allocation47_spill] sm:$0xff] }
 0x1de   : > { %v1532_v48 = vrot.slane %v1518_v13, %v9595_v47  ;;  %v922_v63 = vcombine.high %v14585_v50, %v14584_v61  ;;  %v1396_v31 = vrot.slane %v1382_v22, %v9595_v47  ;;  %v14590_v13 = vld [vmem:[#allocation34_spill] sm:$0xff]  ;;  %v14596_v22 = vld [vmem:[#allocation41_spill] sm:$0xff] }
 0x1df   : > { %8613 = vrot.lane.b32.xlu0 %v8612_v62, %s9249_s10  ;;  %8598 = vrot.lane.b32.xlu1 %v9951_v42, %s9250_s8  ;;  %v1534_v42 = vcombine.high %v9726_v24, %v9734_v29  ;;  %v1398_v24 = vcombine.high %v9894_v33, %v9927_v55  ;;  %v14577_v29 = vld [vmem:[#allocation33_spill] sm:$0xff]  ;;  %v8632_v56 = vpack.i.bf16 %v1647_v40, %v1511_v34  ;;  %v14581_v55 = vld [vmem:[#allocation23_spill] sm:$0xff]  ;;  %v14587_v40 = vld [vmem:[#allocation42_spill] sm:$0xff] }
 0x1e0   : > { %v1414_v19 = vcombine.high %v14578_v15, %v14577_v29  ;;  %v1035_v59 = vcombine.low %v984_v10, %v10217_v14  ;;  %v1564_v33 = vrot.slane %v1550_v4, %v9595_v47  ;;  %v1648_v62 = vcombine.high %v1596_v43, %v1628_v18  ;;  %v14589_v4 = vld [vmem:[#allocation45_spill] sm:$0xff] }
 0x1e1   : > { %v10242_v32 = vrot.slane %v1534_v42, %v9595_v47  ;;  %v10253_v38 = vrot.slane %v1398_v24, %v9595_v47  ;;  %v938_v34 = vcombine.high %v14589_v4, %v14588_v21  ;;  %v1512_v18 = vcombine.high %v1460_v60, %v1492_v16  ;;  %v14591_v43 = vld [vmem:[#allocation17_spill] sm:$0xff]  ;;  %v14592_v24 = vld [vmem:[#allocation15_spill] sm:$0xff] }
 0x1e2   : > { %v1428_v9 = vrot.slane %v1414_v19, %v9595_v47  ;;  %v1629_v20 = vcombine.low %v1564_v33, %v10237_v3  ;;  %v906_v29 = vcombine.high %v14592_v24, %v14591_v43  ;;  %v14593_v19 = vld [vmem:[#allocation40_spill] sm:$0xff]  ;;  %v1036_v1 = vcombine.high %v984_v10, %v10217_v14  ;;  %v14597_v60 = vld [vmem:[#allocation39_spill] sm:$0xff] }
 0x1e3   : > { %8623 = vrot.lane.b32.xlu0 %v8622_v23, %s9249_s10  ;;  %8608 = vrot.lane.b32.xlu1 %v9953_v6, %s9247_s14  ;;  %v848_v6 = vrot.slane %v834_v57, %v9790_v51  ;;  %v1597_v57 = vcombine.low %v1532_v48, %v10242_v32  ;;  %v14586_v23 = vld [vmem:[#allocation44_spill] sm:$0xff]  ;;  %v1461_v15 = vcombine.low %v1396_v31, %v10253_v38 }
 0x1e4   : > { %v1493_v26 = vcombine.low %v1428_v9, %v1444_v28  ;;  %v818_v42 = vcombine.high %v14587_v40, %v14586_v23  ;;  %v1637_v39 = vrot.slane %v1629_v20, %v9790_v51  ;;  %v8652_v8 = vpack.i.bf16 %v1648_v62, %v1512_v18 }
 0x1e5   : > { %v899_v58 = vcombine.low %v848_v6, %v880_v7  ;;  %v10281_v16 = vrot.slane %v922_v63, %v9595_v47  ;;  %v1605_v23 = vrot.slane %v1597_v57, %v9790_v51  ;;  %v952_v40 = vrot.slane %v938_v34, %v9595_v47 }
 0x1e6   : > { %v1501_v50 = vrot.slane %v1493_v26, %v9790_v51  ;;  %v832_v20 = vrot.slane %v818_v42, %v9595_v47  ;;  %v900_v14 = vcombine.high %v848_v6, %v880_v7  ;;  %v920_v10 = vrot.slane %v906_v29, %v9595_v47 }
 0x1e7   : > { %8633 = vrot.lane.b32.xlu0 %v8632_v56, %s9246_s13  ;;  %8618 = vrot.lane.b32.xlu1 %v14581_v55, %s9251_s30  ;;  %v8642_v5 = vpack.i.bf16 %v1035_v59, %v899_v58  ;;  %v14594_v56 = vld [vmem:[#allocation38_spill] sm:$0xff]  ;;  %v802_v55 = vcombine.high %v14596_v22, %v14595_v49  ;;  %v968_v58 = vrot.slane %v954_v35, %v9595_v47  ;;  %v14599_v35 = vld [vmem:[#allocation24_spill] sm:$0xff]  ;;  %v14602_v22 = vld [vmem:[#allocation49_spill] sm:$0xff] }
 0x1e8   : > { %v786_v59 = vcombine.high %v14594_v56, %v14593_v19  ;;  %v1630_v62 = vcombine.high %v1564_v33, %v10237_v3  ;;  %v1469_v63 = vrot.slane %v1461_v15, %v9790_v51  ;;  %v1649_v21 = vcombine.low %v1605_v23, %v1637_v39  ;;  %v14600_v3 = vld [vmem:[#allocation35_spill] sm:$0xff]  ;;  %v14601_v19 = vld [vmem:[#allocation28_spill] sm:$0xff] }
 0x1e9   : > { %v816_v57 = vrot.slane %v802_v55, %v9595_v47  ;;  %v1017_v42 = vcombine.low %v952_v40, %v968_v58  ;;  %v8662_v4 = vpack.i.bf16 %v1036_v1, %v900_v14  ;;  %v1494_v34 = vcombine.high %v1428_v9, %v1444_v28 }
 0x1ea   : > { %v800_v26 = vrot.slane %v786_v59, %v9595_v47  ;;  %v985_v18 = vcombine.low %v920_v10, %v10281_v16  ;;  %v1513_v33 = vcombine.low %v1469_v63, %v1501_v50  ;;  %v1462_v43 = vcombine.high %v1396_v31, %v10253_v38 }
 0x1eb   : > { %8643 = vrot.lane.b32.xlu0 %v8642_v5, %s9246_s13  ;;  %8628 = vrot.lane.b32.xlu1 %v14590_v13, %s9251_s30  ;;  %v14598_v5 = vld [vmem:[#allocation37_spill] sm:$0xff]  ;;  %v1598_v13 = vcombine.high %v1532_v48, %v10242_v32  ;;  %v881_v6 = vcombine.low %v816_v57, %v832_v20  ;;  %v1644_v24 = vrot.slane %v1630_v62, %v9790_v51 }
 0x1ec   : > { %v770_v61 = vcombine.high %v14598_v5, %v14597_v60  ;;  %v8672_v15 = vpack.i.bf16 %v1649_v21, %v1513_v33  ;;  %v1650_v28 = vcombine.high %v1605_v23, %v1637_v39  ;;  %v1025_v32 = vrot.slane %v1017_v42, %v9790_v51 }
 0x1ed   : > { %v1508_v48 = vrot.slane %v1494_v34, %v9790_v51  ;;  %v1612_v9 = vrot.slane %v1598_v13, %v9790_v51  ;;  %v1514_v56 = vcombine.high %v1469_v63, %v1501_v50  ;;  %v889_v38 = vrot.slane %v881_v6, %v9790_v51  ;;  %v14603_v50 = vld [vmem:[#allocation36_spill] sm:$0xff] }
 0x1ee   : > { %v784_v7 = vrot.slane %v770_v61, %v9595_v47  ;;  %v993_v31 = vrot.slane %v985_v18, %v9790_v51  ;;  %v1018_v59 = vcombine.high %v952_v40, %v968_v58  ;;  %v1476_v39 = vrot.slane %v1462_v43, %v9790_v51 }
 0x1ef   : > { %8653 = vrot.lane.b32.xlu0 %v8652_v8, %s9250_s8  ;;  %8638 = vrot.lane.b32.xlu1 %v14599_v35, %s9248_s20  ;;  %v1651_v49 = vcombine.low %v1612_v9, %v1644_v24  ;;  %v1685_v55 = vcombine.low %v14602_v22, %v10125_v27  ;;  %v8682_v8 = vpack.i.bf16 %v1650_v28, %v1514_v56 }
 0x1f0   : > { %v849_v29 = vcombine.low %v784_v7, %v800_v26  ;;  %v1037_v60 = vcombine.low %v993_v31, %v1025_v32  ;;  %v1515_v5 = vcombine.low %v1476_v39, %v1508_v48  ;;  %v882_v61 = vcombine.high %v816_v57, %v832_v20 }
 0x1f1   : > { %v986_v58 = vcombine.high %v920_v10, %v10281_v16  ;;  %v850_v40 = vcombine.high %v784_v7, %v800_v26  ;;  %v1032_v14 = vrot.slane %v1018_v59, %v9790_v51  ;;  %v1073_v27 = vcombine.low %v10137_v25, %v10140_v30 }
 0x1f2   : > { %v857_v1 = vrot.slane %v849_v29, %v9790_v51  ;;  %v8692_v35 = vpack.i.bf16 %v1651_v49, %v1515_v5  ;;  %v10325_v63 = vrot.slane %v1685_v55, %v9790_v51  ;;  %v1038_v20 = vcombine.high %v993_v31, %v1025_v32 }
 0x1f3   : > { %8663 = vrot.lane.b32.xlu0 %v8662_v4, %s9250_s8  ;;  %8648 = vrot.lane.b32.xlu1 %v14600_v3, %s9248_s20  ;;  %v896_v57 = vrot.slane %v882_v61, %v9790_v51  ;;  %v1000_v16 = vrot.slane %v986_v58, %v9790_v51  ;;  %v864_v10 = vrot.slane %v850_v40, %v9790_v51  ;;  %v14604_v26 = vmov 0.0  }
 0x1f4   : > { %v901_v23 = vcombine.low %v857_v1, %v889_v38  ;;  %v902_v21 = vcombine.high %v857_v1, %v889_v38  ;;  %v1717_v42 = vcombine.high %v10325_v63, %v14604_v26  ;;  %v10335_v30 = vrot.slane %v1073_v27, %v9790_v51 }
 0x1f5   : > { %v1039_v4 = vcombine.low %v1000_v16, %v1032_v14  ;;  %v903_v34 = vcombine.low %v864_v10, %v896_v57  ;;  %v1652_v7 = vcombine.high %v1612_v9, %v1644_v24  ;;  %v1516_v6 = vcombine.high %v1476_v39, %v1508_v48 }
 0x1f6   : > { %v8677_v62 = vpack.i.bf16 %v1037_v60, %v901_v23  ;;  %v8687_v25 = vpack.i.bf16 %v1038_v20, %v902_v21  ;;  %v1105_v13 = vcombine.high %v10335_v30, %v14604_v26  ;;  %v1718_v3 = vcombine.high %v10132_v53, %v14604_v26 }
 0x1f7   : > { %8673 = vrot.lane.b32.xlu0 %v8672_v15, %s9247_s14  ;;  %8658 = vrot.lane.b32.xlu1 %v14601_v19, %s9252_s11  ;;  %v8697_v18 = vpack.i.bf16 %v1039_v4, %v903_v34  ;;  %v8702_v33 = vpack.i.bf16 %v1652_v7, %v1516_v6  ;;  %v1040_v43 = vcombine.high %v1000_v16, %v1032_v14  ;;  %v9253_v32 = vmov 0  }
 0x1f8   : > { %v904_v29 = vcombine.high %v864_v10, %v896_v57  ;;  %v1719_v15 = vcombine.high %v10144_v37, %v14604_v26  ;;  %v1720_v24 = vcombine.high %v10152_v36, %v14604_v26  ;;  %v1106_v53 = vcombine.high %v10155_v12, %v14604_v26  ;;  %8712 = vset.pattern.permute.xlu0 %v9253_v32  ;;  %v10360_v37 = vld [vmem:[%s14284_s3] sm:$0xff] }
 0x1f9   : > { %v1107_v48 = vcombine.high %v10162_v11, %v14604_v26  ;;  %v1108_v36 = vcombine.high %v10169_v2, %v14604_v26 }
 0x1fa   : > { %v8707_v28 = vpack.i.bf16 %v1040_v43, %v904_v29 }
 0x1fb   : > { %8683 = vrot.lane.b32.xlu0 %v8682_v8, %s9251_s30  ;;  %8668 = vrot.lane.b32.xlu1 %v14603_v50, %s9252_s11 }
 0x1ff   : > { %8693 = vrot.lane.b32.xlu0 %v8692_v35, %s9248_s20  ;;  %8678 = vrot.lane.b32.xlu1 %v8677_v62, %s9247_s14 }
 0x203   : > { %1874 = vrot.lane.b32.xlu0 %v1717_v42, %s9249_s10  ;;  %8688 = vrot.lane.b32.xlu1 %v8687_v25, %s9251_s30  ;;  %v14605_v42 = vld [vmem:[#allocation22_spill] sm:$0xff]  ;;  %v14606_v25 = vld [vmem:[#allocation21_spill] sm:$0xff] }
 0x204   : > { %v14607_v4 = vcombine.low %v14605_v42, %v14606_v25 }
 0x207   : > { %1734 = vrot.lane.b32.xlu0 %v1105_v13, %s9249_s10  ;;  %8698 = vrot.lane.b32.xlu1 %v8697_v18, %s9248_s20  ;;  %v14608_v13 = vld [vmem:[#allocation19_spill] sm:$0xff]  ;;  %v14609_v18 = vld [vmem:[#allocation20_spill] sm:$0xff] }
 0x208   : > { %v14610_v7 = vcombine.low %v14608_v13, %v14609_v18 }
 0x20b   : > { %1914 = vrot.lane.b32.xlu0 %v1718_v3, %s9250_s8  ;;  %8703 = vrot.lane.b32.xlu1 %v8702_v33, %s9252_s11 }
 0x20f   : > { %1954 = vrot.lane.b32.xlu0 %v1719_v15, %s9251_s30  ;;  %8708 = vrot.lane.b32.xlu1 %v8707_v28, %s9252_s11 }
 0x213   : > { %1994 = vrot.lane.b32.xlu0 %v1720_v24, %s9252_s11  ;;  %1774 = vrot.lane.b32.xlu1 %v1106_v53, %s9250_s8 }
 0x217   : > { %1814 = vrot.lane.b32.xlu1 %v1107_v48, %s9251_s30  ;;  %2081 = vperm.xlu0 %8712, %v10360_v37  }
 0x21b   : > { %1854 = vrot.lane.b32.xlu1 %v1108_v36, %s9252_s11  ;;  %v14611_v36 = vld [vmem:[#allocation31_spill] sm:$0xff] }
 0x235   : > { %v10369_v12 = vpop.permute.xlu0 %1894 }
 0x239   : > { %v10371_v9 = vpop.permute.xlu0 %1934 }
 0x23d   : > { %v10373_v19 = vpop.permute.xlu1 %1754  ;;  %v10375_v56 = vpop.permute.xlu0 %1974 }
 0x241   : > { %v10377_v38 = vpop.permute.xlu1 %1794  ;;  %v8574_v11 = vpop.permute.xlu0 %8573 }
 0x242   : > { %v8576_v58 = vunpack.i.h.bf16 %v8574_v11  ;;  %v8575_v40 = vunpack.i.l.bf16 %v8574_v11  ;;  %v14612_v11 = vld [vmem:[#allocation29_spill] sm:$0xff] }
 0x244   : > { %v2044_v34 = vsel %vm2001_vm3, %v14607_v4, %v8576_v58  ;;  %v2043_v6 = vsel %vm2001_vm3, %v14610_v7, %v8575_v40 }
 0x245   : > { %v10379_v31 = vpop.permute.xlu1 %1834  ;;  %v8584_v59 = vpop.permute.xlu0 %8583 }
 0x246   : > { %v8586_v35 = vunpack.i.h.bf16 %v8584_v59  ;;  %v8585_v14 = vunpack.i.l.bf16 %v8584_v59  ;;  %v14613_v59 = vcombine.low %v14611_v36, %v14612_v11 }
 0x248   : > { %v2048_v43 = vsel %vm2007_vm4, %v2043_v6, %v8585_v14  ;;  %v2049_v29 = vsel %vm2007_vm4, %v2044_v34, %v8586_v35 }
 0x249   : > { %v8594_v39 = vpop.permute.xlu0 %8593  ;;  %v8579_v49 = vpop.permute.xlu1 %8578 }
 0x24a   : > { %v8596_v20 = vunpack.i.h.bf16 %v8594_v39  ;;  %v8595_v21 = vunpack.i.l.bf16 %v8594_v39  ;;  %v8581_v57 = vunpack.i.h.bf16 %v8579_v49  ;;  %v8580_v16 = vunpack.i.l.bf16 %v8579_v49  ;;  %v14614_v49 = vld [vmem:[#allocation25_spill] sm:$0xff] }
 0x24c   : > { %v2053_v32 = vsel %vm2013_vm5, %v2048_v43, %v8595_v21  ;;  %v2054_v48 = vsel %vm2013_vm5, %v2049_v29, %v8596_v20  ;;  %v2003_v39 = vsel %vm2001_vm3, %v14613_v59, %v8581_v57 }
 0x24d   : > { %v8604_v22 = vpop.permute.xlu0 %8603  ;;  %v8589_v2 = vpop.permute.xlu1 %8588 }
 0x24e   : > { %v8591_v10 = vunpack.i.h.bf16 %v8589_v2  ;;  %v8590_v26 = vunpack.i.l.bf16 %v8589_v2  ;;  %v8606_v3 = vunpack.i.h.bf16 %v8604_v22  ;;  %v8605_v33 = vunpack.i.l.bf16 %v8604_v22  ;;  %v14615_v22 = vld [vmem:[#allocation26_spill] sm:$0xff] }
 0x24f   : > { %v14616_v2 = vcombine.low %v14614_v49, %v14615_v22 }
 0x250   : > { %v2058_v42 = vsel %vm2019_vm6, %v2053_v32, %v8605_v33  ;;  %v2059_v25 = vsel %vm2019_vm6, %v2054_v48, %v8606_v3 }
 0x251   : > { %v10381_v55 = vpop.permute.xlu0 %8613  ;;  %v10383_v8 = vpop.permute.xlu1 %8598  ;;  %v2002_v58 = vsel %vm2001_vm3, %v14616_v2, %v8580_v16 }
 0x252   : > { %v2008_v40 = vsel %vm2007_vm4, %v2002_v58, %v8590_v26  ;;  %v8601_v21 = vunpack.i.h.bf16 %v10383_v8  ;;  %v8600_v20 = vunpack.i.l.bf16 %v10383_v8 }
 0x255   : > { %v10385_v1 = vpop.permute.xlu0 %8623  ;;  %v10387_v60 = vpop.permute.xlu1 %8608 }
 0x256   : > { %v8611_v57 = vunpack.i.h.bf16 %v10387_v60  ;;  %v8610_v4 = vunpack.i.l.bf16 %v10387_v60  ;;  %v2014_v60 = vsel %vm2013_vm5, %v2008_v40, %v8600_v20  ;;  %v8626_v20 = vunpack.i.h.bf16 %v10385_v1 }
 0x259   : > { %v10389_v5 = vpop.permute.xlu0 %8633  ;;  %v8619_v61 = vpop.permute.xlu1 %8618 }
 0x25a   : > { %v8621_v15 = vunpack.i.h.bf16 %v8619_v61  ;;  %v8620_v28 = vunpack.i.l.bf16 %v8619_v61  ;;  %v2009_v61 = vsel %vm2007_vm4, %v2003_v39, %v8591_v10 }
 0x25b   : > { %v2015_v43 = vsel %vm2013_vm5, %v2009_v61, %v8601_v21  ;;  %v8615_v21 = vunpack.i.l.bf16 %v10381_v55 }
 0x25c   : > { %v2063_v26 = vsel %vm2025_vm7, %v2058_v42, %v8620_v28  ;;  %v2064_v10 = vsel %vm2025_vm7, %v2059_v25, %v8621_v15  ;;  %v2020_v28 = vsel %vm2019_vm6, %v2014_v60, %v8610_v4  ;;  %v8625_v42 = vunpack.i.l.bf16 %v10385_v1 }
 0x25d   : > { %v10391_v50 = vpop.permute.xlu0 %8643  ;;  %v10393_v23 = vpop.permute.xlu1 %8628  ;;  %v8635_v25 = vunpack.i.l.bf16 %v10389_v5  ;;  %v14618_v1 = vcombine.low %v10001_v52, %v10004_v44 }
 0x25e   : > { %v8630_v13 = vunpack.i.l.bf16 %v10393_v23  ;;  %v8646_v4 = vunpack.i.h.bf16 %v10391_v50 }
 0x260   : > { %v2026_v59 = vsel %vm2025_vm7, %v2020_v28, %v8630_v13 }
 0x261   : > { %v10395_v27 = vpop.permute.xlu0 %8653  ;;  %v8639_v62 = vpop.permute.xlu1 %8638 }
 0x262   : > { %v8641_v35 = vunpack.i.h.bf16 %v8639_v62  ;;  %v8640_v14 = vunpack.i.l.bf16 %v8639_v62  ;;  %v8631_v62 = vunpack.i.h.bf16 %v10393_v23  ;;  %v2021_v23 = vsel %vm2019_vm6, %v2015_v43, %v8611_v57 }
 0x263   : > { %v8636_v57 = vunpack.i.h.bf16 %v10389_v5  ;;  %v8656_v13 = vunpack.i.h.bf16 %v10395_v27  ;;  %v2045_v5 = vsel %vm2001_vm3, %v14618_v1, %v8615_v21 }
 0x264   : > { %v2068_v3 = vsel %vm2031_vm8, %v2063_v26, %v8640_v14  ;;  %v2069_v33 = vsel %vm2031_vm8, %v2064_v10, %v8641_v35  ;;  %v2027_v39 = vsel %vm2025_vm7, %v2021_v23, %v8631_v62  ;;  %v8616_v14 = vunpack.i.h.bf16 %v10381_v55 }
 0x265   : > { %v10407_v24 = vpop.permute.xlu0 %8663  ;;  %v8649_v53 = vpop.permute.xlu1 %8648  ;;  %v14617_v62 = vcombine.low %v10032_v0, %v10035_v17  ;;  %v14620_v17 = vcombine.low %v10089_v54, %v10092_v41 }
 0x266   : > { %v8651_v7 = vunpack.i.h.bf16 %v8649_v53  ;;  %v8650_v6 = vunpack.i.l.bf16 %v8649_v53  ;;  %v8665_v0 = vunpack.i.l.bf16 %v10407_v24 }
 0x267   : > { %v2046_v55 = vsel %vm2001_vm3, %v14617_v62, %v8616_v14 }
 0x268   : > { %v2032_v49 = vsel %vm2031_vm8, %v2026_v59, %v8650_v6  ;;  %v2033_v22 = vsel %vm2031_vm8, %v2027_v39, %v8651_v7  ;;  %v8666_v7 = vunpack.i.h.bf16 %v10407_v24  ;;  %v2004_v6 = vsel %vm2001_vm3, %v14620_v17, %v8625_v42 }
 0x269   : > { %v10427_v34 = vpop.permute.xlu0 %8673  ;;  %v8659_v16 = vpop.permute.xlu1 %8658 }
 0x26a   : > { %v8661_v8 = vunpack.i.h.bf16 %v8659_v16  ;;  %v8660_v18 = vunpack.i.l.bf16 %v8659_v16  ;;  %v8645_v16 = vunpack.i.l.bf16 %v10391_v50  ;;  %v8676_v52 = vunpack.i.h.bf16 %v10427_v34 }
 0x26b   : > { %v8675_v44 = vunpack.i.l.bf16 %v10427_v34 }
 0x26c   : > { %v2073_v29 = vsel %vm2037_vm9, %v2068_v3, %v8660_v18  ;;  %v2074_v15 = vsel %vm2037_vm9, %v2069_v33, %v8661_v8  ;;  %v8655_v8 = vunpack.i.l.bf16 %v10395_v27  ;;  %v14619_v18 = vcombine.low %v10114_v45, %v10117_v46 }
 0x26d   : > { %v10441_v32 = vpop.permute.xlu0 %8683  ;;  %v8669_v48 = vpop.permute.xlu1 %8668  ;;  %v8442_v53 = vpack.c.bf16 %v2074_v15, %v2073_v29  ;;  %v2050_v27 = vsel %vm2007_vm4, %v2045_v5, %v8635_v25  ;;  %v2051_v3 = vsel %vm2007_vm4, %v2046_v55, %v8636_v57  ;;  %v2010_v45 = vsel %vm2007_vm4, %v2004_v6, %v8645_v16 }
 0x26e   : > { %v8671_v36 = vunpack.i.h.bf16 %v8669_v48  ;;  %v8670_v11 = vunpack.i.l.bf16 %v8669_v48  ;;  %v2005_v50 = vsel %vm2001_vm3, %v14619_v18, %v8626_v20  ;;  %v8685_v33 = vunpack.i.l.bf16 %v10441_v32 }
 0x26f   : > { %8443 = vmatprep.subr.bf16.mxu0 %v8442_v53  ;;  %v2011_v46 = vsel %vm2007_vm4, %v2005_v50, %v8646_v4  ;;  %v2055_v54 = vsel %vm2013_vm5, %v2050_v27, %v8655_v8  ;;  %v2056_v41 = vsel %vm2013_vm5, %v2051_v3, %v8656_v13  ;;  %v8686_v43 = vunpack.i.h.bf16 %v10441_v32 }
 0x270   : > { %v2038_v2 = vsel %vm2037_vm9, %v2032_v49, %v8670_v11  ;;  %v2039_v58 = vsel %vm2037_vm9, %v2033_v22, %v8671_v36  ;;  %v2016_v34 = vsel %vm2013_vm5, %v2010_v45, %v8665_v0  ;;  %v2017_v15 = vsel %vm2013_vm5, %v2011_v46, %v8666_v7 }
 0x271   : > { %v8694_v40 = vpop.permute.xlu0 %8693  ;;  %v8679_v61 = vpop.permute.xlu1 %8678  ;;  %v8444_v35 = vpack.c.bf16 %v2039_v58, %v2038_v2  ;;  %v2060_v48 = vsel %vm2019_vm6, %v2055_v54, %v8675_v44  ;;  %v2061_v53 = vsel %vm2019_vm6, %v2056_v41, %v8676_v52 }
 0x272   : > { %v8696_v28 = vunpack.i.h.bf16 %v8694_v40  ;;  %v8695_v23 = vunpack.i.l.bf16 %v8694_v40  ;;  %v8681_v36 = vunpack.i.h.bf16 %v8679_v61  ;;  %v8680_v11 = vunpack.i.l.bf16 %v8679_v61 }
 0x273   : > { %8445 = vmatpush1.bf16.msra.mxu0 %v8444_v35  ;;  %v2065_v59 = vsel %vm2025_vm7, %v2060_v48, %v8685_v33  ;;  %v2066_v2 = vsel %vm2025_vm7, %v2061_v53, %v8686_v43 }
 0x274   : > { %v2070_v20 = vsel %vm2031_vm8, %v2065_v59, %v8695_v23  ;;  %v2071_v61 = vsel %vm2031_vm8, %v2066_v2, %v8696_v28  ;;  %v2023_v42 = vsel %vm2019_vm6, %v2017_v15, %v8681_v36  ;;  %v2022_v25 = vsel %vm2019_vm6, %v2016_v34, %v8680_v11 }
 0x275   : > { %v1875_v26 = vpop.permute.xlu0 %1874  ;;  %v8689_v10 = vpop.permute.xlu1 %8688 }
 0x276   : > { %v2047_v29 = vsel %vm2001_vm3, %v10325_v63, %v1875_v26  ;;  %v8691_v39 = vunpack.i.h.bf16 %v8689_v10  ;;  %v8690_v49 = vunpack.i.l.bf16 %v8689_v10 }
 0x277   : > { %v2052_v32 = vsel %vm2007_vm4, %v2047_v29, %v10369_v12 }
 0x278   : > { %v2028_v4 = vsel %vm2025_vm7, %v2022_v25, %v8690_v49  ;;  %v2029_v16 = vsel %vm2025_vm7, %v2023_v42, %v8691_v39 }
 0x279   : > { %v1735_v24 = vpop.permute.xlu0 %1734  ;;  %v8699_v60 = vpop.permute.xlu1 %8698 }
 0x27a   : > { %v8701_v14 = vunpack.i.h.bf16 %v8699_v60  ;;  %v8700_v21 = vunpack.i.l.bf16 %v8699_v60  ;;  %v2006_v13 = vsel %vm2001_vm3, %v10335_v30, %v1735_v24 }
 0x27b   : > { %v2012_v30 = vsel %vm2007_vm4, %v2006_v13, %v10373_v19  ;;  %v2078_v19 = vld [vmem:[#allocation7] sm:$0xff] }
 0x27c   : > { %v2034_v18 = vsel %vm2031_vm8, %v2028_v4, %v8700_v21  ;;  %v2035_v50 = vsel %vm2031_vm8, %v2029_v16, %v8701_v14 }
 0x27d   : > { %v1915_v63 = vpop.permute.xlu0 %1914  ;;  %v8704_v22 = vpop.permute.xlu1 %8703 }
 0x27e   : > { %v2057_v58 = vsel %vm2013_vm5, %v2052_v32, %v1915_v63  ;;  %v8706_v40 = vunpack.i.h.bf16 %v8704_v22  ;;  %v8705_v35 = vunpack.i.l.bf16 %v8704_v22  ;;  %v9254_v63 = vmov 1  }
 0x27f   : > { %v2062_v26 = vsel %vm2019_vm6, %v2057_v58, %v10371_v9  ;;  %8713 = vset.pattern.permute.xlu1 %v9254_v63  ;;  %v9255_v22 = vmov 2  }
 0x280   : > { %v2075_v12 = vsel %vm2037_vm9, %v2070_v20, %v8705_v35  ;;  %v2076_v57 = vsel %vm2037_vm9, %v2071_v61, %v8706_v40  ;;  %8714 = vset.pattern.permute.xlu0 %v9255_v22 }
 0x281   : > { %v1955_v10 = vpop.permute.xlu0 %1954  ;;  %v8709_v62 = vpop.permute.xlu1 %8708  ;;  %v8446_v55 = vpack.c.bf16 %v2076_v57, %v2075_v12 }
 0x282   : > { %v2067_v8 = vsel %vm2025_vm7, %v2062_v26, %v1955_v10  ;;  %v8711_v1 = vunpack.i.h.bf16 %v8709_v62  ;;  %v8710_v5 = vunpack.i.l.bf16 %v8709_v62 }
 0x283   : > { %8447 = vmatprep.subr.bf16.mxu0 %v8446_v55  ;;  %v2072_v9 = vsel %vm2031_vm8, %v2067_v8, %v10375_v56 }
 0x284   : > { %v2040_v7 = vsel %vm2037_vm9, %v2034_v18, %v8710_v5  ;;  %v2041_v0 = vsel %vm2037_vm9, %v2035_v50, %v8711_v1 }
 0x285   : > { %v1995_v17 = vpop.permute.xlu0 %1994  ;;  %v1775_v6 = vpop.permute.xlu1 %1774  ;;  %v8448_v27 = vpack.c.bf16 %v2041_v0, %v2040_v7 }
 0x286   : > { %v2077_v52 = vsel %vm2037_vm9, %v2072_v9, %v1995_v17  ;;  %v2018_v44 = vsel %vm2013_vm5, %v2012_v30, %v1775_v6 }
 0x287   : > { %8449 = vmatpush1.bf16.msra.mxu0 %v8448_v27  ;;  %v2024_v3 = vsel %vm2019_vm6, %v2018_v44, %v10377_v38 }
 0x288   : > { %8433 = vmatprep.subr.msk.mxu0 %vm2088_vm10, %v2077_v52 }
 0x289   : > { %v1815_v45 = vpop.permute.xlu1 %1814 }
 0x28a   : > { %v2030_v46 = vsel %vm2025_vm7, %v2024_v3, %v1815_v45 }
 0x28b   : > { %v2036_v56 = vsel %vm2031_vm8, %v2030_v46, %v10379_v31 }
 0x28d   : > { %v1855_v33 = vpop.permute.xlu1 %1854 }
 0x28e   : > { %v2042_v24 = vsel %vm2037_vm9, %v2036_v56, %v1855_v33 }
 0x28f   : > { %8434 = vmatpush1.msk.msra.mxu0 %vm2088_vm10, %v2042_v24  ;;  %vm8056_vm10 = vcmask 917312  }
 0x290   : > { %8435 = vmatmul.mubr.msk.f32.vlgmr.msra.gmra.mrb[0].mxu0 %vm2084_vm11, %v2078_v19  ;;  %vm8063_vm11 = vcmask 982912  }
 0x296   : > { %v2082_v60 = vpop.permute.xlu0 %2081 }
 0x363   : > { %v2161_v54 = vpop.f32.mrb[0].mxu0 }
 0x364   : > { %v2162_v41 = vadd.f32 %v2161_v54, %v2082_v60  ;;  %v2163_v43 = vpop.f32.mrb[1].mxu0 }
 0x365   : > { %v2164_v29 = vadd.f32 %v2163_v43, %v2082_v60 }
 0x367   : > { %v2166_v34 = vadd.f32 %v2164_v29, %v2162_v41 }
 0x369   : > { %2167 = vadd.xlane.f32.xlu1 %v2166_v34 }
 0x37a   : > { %2201 = vperm.xlu1 %8713, %v10360_v37  }
 0x3f6   : > { %v2168_v38 = vpop.xlane.xlu1 %2167 }
 0x3f7   : > { %v2169_v15 = vrot.slane %v2168_v38, 4 }
 0x3f9   : > { %v2170_v28 = vadd.f32 %v2169_v15, %v2168_v38 }
 0x3fa   : > { %v2202_v12 = vpop.permute.xlu1 %2201 }
 0x3fb   : > { %v2171_v23 = vrot.slane %v2170_v28, 2 }
 0x3fd   : > { %v2172_v48 = vadd.f32 %v2171_v23, %v2170_v28 }
 0x3ff   : > { %v2173_v31 = vrot.slane %v2172_v48, 1 }
 0x401   : > { %v2174_v53 = vadd.f32 %v2173_v31, %v2172_v48 }
 0x403   : > { %8466 = vpush %v2174_v53 }
 0x434   : > { %s8467_s22 = spop %8466 }
 0x435   : > { %s2176_s5 = smul.f32 0.00048828125, %s8467_s22 }
 0x437   : > { %v2177_v36 = vstv %s2176_s5 }
 0x438   : > { %v2178_v11 = vsub.f32 %v2162_v41, %v2177_v36  ;;  %v2179_v59 = vsub.f32 %v2164_v29, %v2177_v36 }
 0x43a   : > { %v2180_v39 = vmul.f32 %v2178_v11, %v2178_v11  ;;  %v2181_v49 = vmul.f32 %v2179_v59, %v2179_v59 }
 0x43c   : > { %v2182_v32 = vadd.f32 %v2181_v49, %v2180_v39 }
 0x43e   : > { %2183 = vadd.xlane.f32.xlu0 %v2182_v32 }
 0x454   : > { %2207 = vperm.xlu0 %8714, %v10360_v37  }
 0x4cb   : > { %v2184_v2 = vpop.xlane.xlu0 %2183 }
 0x4cc   : > { %v2185_v58 = vrot.slane %v2184_v2, 4 }
 0x4ce   : > { %v2186_v40 = vadd.f32 %v2185_v58, %v2184_v2 }
 0x4d0   : > { %v2187_v35 = vrot.slane %v2186_v40, 2 }
 0x4d2   : > { %v2188_v14 = vadd.f32 %v2187_v35, %v2186_v40 }
 0x4d3   : > { %v2208_v4 = vpop.permute.xlu0 %2207 }
 0x4d4   : > { %v2189_v21 = vrot.slane %v2188_v14, 1 }
 0x4d6   : > { %v2190_v20 = vadd.f32 %v2189_v21, %v2188_v14 }
 0x4d8   : > { %8468 = vpush %v2190_v20 }
 0x509   : > { %s8469_s23 = spop %8468 }
 0x50a   : > { %s2192_s25 = smul.f32 0.00048828125, %s8469_s23 }
 0x50c   : > { %s2193_s12 = sadd.f32 1e-05, %s2192_s25  ;;  %s9264_s25 = smov 114  }
 0x50e   : > { %v2194_v61 = vstv %s2193_s12  ;;  %s8432_s12 = sshll.u32 %s9460_s9, 2 }
 0x50f   : > { %9064 = vrsqrt.f32 %v2194_v61 }
 0x519   : > { %v9065_v42 = vpop.eup %9064 }
 0x51a   : > { %8470 = vpush %v9065_v42 }
 0x54b   : > { %s8471_s6 = spop %8470 }
 0x54c   : > { %v2197_v25 = vstv %s8471_s6  ;;  %s8438_s6 = sshll.u32 %s9312_s19, 6  ;;  %s8318_s19 = scalar_lea.sflag [#allocation6], %s9460_s9 }
 0x54d   : > { %v2198_v57 = vmul.f32 %v2197_v25, %v2178_v11  ;;  %v2199_v37 = vmul.f32 %v2197_v25, %v2179_v59 }
 0x54f   : > { %v2204_v16 = vmul.f32 %v2202_v12, %v2198_v57  ;;  %v2205_v26 = vmul.f32 %v2202_v12, %v2199_v37 }
 0x551   : > { %v2210_v10 = vadd.f32 %v2208_v4, %v2204_v16  ;;  %v2211_v62 = vadd.f32 %v2208_v4, %v2205_v26 }
 0x553   : > { %v2214_v55 = vmul.f32 0.70710677, %v2210_v10  ;;  %v2215_v13 = vmul.f32 0.70710677, %v2211_v62  ;;  %v2212_v5 = vmul.f32 0.5, %v2210_v10  ;;  %v2213_v50 = vmul.f32 0.5, %v2211_v62 }
 0x555   : > { %9066 = verf.f32 %v2214_v55 }
 0x556   : > { %9068 = verf.f32 %v2215_v13 }
 0x55f   : > { %v9067_v8 = vpop.eup %9066 }
 0x560   : > { %v9069_v1 = vpop.eup %9068  ;;  %v2218_v18 = vadd.f32 1.0, %v9067_v8 }
 0x561   : > { %v2219_v7 = vadd.f32 1.0, %v9069_v1 }
 0x562   : > { %v10529_v0 = vmul.f32 %v2218_v18, %v2212_v5 }
 0x563   : > { %v10531_v9 = vmul.f32 %v2219_v7, %v2213_v50 }
 0x564   : > { %14621 = vst [vmem:[#allocation33_spill] sm:$0xff] %v10529_v0  ;;  %2247 = vrot.lane.b32.xlu1 %v10529_v0, %s9252_s11 }
 0x565   : > { %14622 = vst [vmem:[#allocation32_spill] sm:$0xff] %v10531_v9  ;;  %2272 = vrot.lane.b32.xlu0 %v10531_v9, %s9248_s20 }
 0x568   : > { %2250 = vrot.lane.b32.xlu1 %v10529_v0, %s9248_s20 }
 0x569   : > { %2278 = vrot.lane.b32.xlu0 %v10531_v9, %s9247_s14 }
 0x56c   : > { %2253 = vrot.lane.b32.xlu1 %v10529_v0, %s9251_s30 }
 0x56d   : > { %2284 = vrot.lane.b32.xlu0 %v10531_v9, %s9246_s13 }
 0x570   : > { %2256 = vrot.lane.b32.xlu1 %v10529_v0, %s9247_s14 }
 0x574   : > { %2259 = vrot.lane.b32.xlu1 %v10529_v0, %s9250_s8 }
 0x578   : > { %2262 = vrot.lane.b32.xlu1 %v10529_v0, %s9246_s13 }
 0x57c   : > { %2265 = vrot.lane.b32.xlu1 %v10529_v0, %s9249_s10 }
 0x580   : > { %2269 = vrot.lane.b32.xlu1 %v10531_v9, %s9252_s11 }
 0x584   : > { %2275 = vrot.lane.b32.xlu1 %v10531_v9, %s9251_s30 }
 0x588   : > { %2281 = vrot.lane.b32.xlu1 %v10531_v9, %s9250_s8 }
 0x58c   : > { %2287 = vrot.lane.b32.xlu1 %v10531_v9, %s9249_s10 }
 0x5d6   : > { %v2248_v17 = vpop.permute.xlu1 %2247 }
 0x5d7   : > { %v10562_v46 = vpop.permute.xlu0 %2272 }
 0x5d8   : > { %v2426_v32 = vcombine.low %v10531_v9, %v10562_v46 }
 0x5da   : > { %v2251_v30 = vpop.permute.xlu1 %2250  ;;  %v2434_v42 = vrot.slane %v2426_v32, %v9595_v47 }
 0x5db   : > { %v2290_v45 = vcombine.low %v10529_v0, %v2251_v30  ;;  %v2279_v34 = vpop.permute.xlu0 %2278  ;;  %v2291_v22 = vcombine.high %v10529_v0, %v2251_v30 }
 0x5dd   : > { %v2298_v24 = vrot.slane %v2290_v45, %v9595_v47  ;;  %v2305_v12 = vrot.slane %v2291_v22, %v9595_v47  ;;  %v2427_v45 = vcombine.high %v10531_v9, %v10562_v46 }
 0x5de   : > { %v2254_v6 = vpop.permute.xlu1 %2253 }
 0x5df   : > { %v2306_v44 = vcombine.low %v2248_v17, %v2254_v6  ;;  %v2285_v36 = vpop.permute.xlu0 %2284  ;;  %v2307_v11 = vcombine.high %v2248_v17, %v2254_v6 }
 0x5e0   : > { %v2458_v35 = vcombine.low %v2279_v34, %v2285_v36 }
 0x5e1   : > { %v2314_v56 = vrot.slane %v2306_v44, %v9595_v47  ;;  %v2321_v14 = vrot.slane %v2307_v11, %v9595_v47 }
 0x5e2   : > { %v2257_v27 = vpop.permute.xlu1 %2256  ;;  %v2466_v16 = vrot.slane %v2458_v35, %v9595_v47 }
 0x5e3   : > { %v2354_v54 = vcombine.low %v2298_v24, %v2314_v56  ;;  %v2355_v59 = vcombine.high %v2298_v24, %v2314_v56  ;;  %v2370_v26 = vcombine.low %v2305_v12, %v2321_v14 }
 0x5e5   : > { %v2362_v15 = vrot.slane %v2354_v54, %v9790_v51  ;;  %v2369_v61 = vrot.slane %v2355_v59, %v9790_v51  ;;  %v2378_v1 = vrot.slane %v2370_v26, %v9790_v51 }
 0x5e6   : > { %v2260_v52 = vpop.permute.xlu1 %2259 }
 0x5ea   : > { %v2263_v3 = vpop.permute.xlu1 %2262 }
 0x5eb   : > { %v2322_v33 = vcombine.low %v2257_v27, %v2263_v3  ;;  %v2323_v39 = vcombine.high %v2257_v27, %v2263_v3  ;;  %v2459_v27 = vcombine.high %v2279_v34, %v2285_v36 }
 0x5ed   : > { %v2330_v41 = vrot.slane %v2322_v33, %v9595_v47  ;;  %v2337_v21 = vrot.slane %v2323_v39, %v9595_v47  ;;  %v2473_v54 = vrot.slane %v2459_v27, %v9595_v47 }
 0x5ee   : > { %v2266_v19 = vpop.permute.xlu1 %2265 }
 0x5ef   : > { %v2338_v60 = vcombine.low %v2260_v52, %v2266_v19  ;;  %v2339_v48 = vcombine.high %v2260_v52, %v2266_v19  ;;  %v2371_v52 = vcombine.high %v2305_v12, %v2321_v14 }
 0x5f1   : > { %v2346_v43 = vrot.slane %v2338_v60, %v9595_v47  ;;  %v2353_v2 = vrot.slane %v2339_v48, %v9595_v47 }
 0x5f2   : > { %v10568_v29 = vpop.permute.xlu1 %2269 }
 0x5f3   : > { %v2386_v38 = vcombine.low %v2330_v41, %v2346_v43  ;;  %v2387_v31 = vcombine.high %v2330_v41, %v2346_v43  ;;  %v2402_v57 = vcombine.low %v2337_v21, %v2353_v2  ;;  %v2403_v50 = vcombine.high %v2337_v21, %v2353_v2 }
 0x5f4   : > { %v2385_v43 = vrot.slane %v2371_v52, %v9790_v51 }
 0x5f5   : > { %v2394_v28 = vrot.slane %v2386_v38, %v9790_v51  ;;  %v2401_v40 = vrot.slane %v2387_v31, %v9790_v51  ;;  %v2410_v8 = vrot.slane %v2402_v57, %v9790_v51  ;;  %v2417_v56 = vrot.slane %v2403_v50, %v9790_v51 }
 0x5f6   : > { %v2276_v23 = vpop.permute.xlu1 %2275 }
 0x5f7   : > { %v2418_v53 = vcombine.low %v2362_v15, %v2394_v28  ;;  %v2442_v49 = vcombine.low %v10568_v29, %v2276_v23  ;;  %v2419_v58 = vcombine.high %v2362_v15, %v2394_v28  ;;  %v2420_v4 = vcombine.low %v2369_v61, %v2401_v40 }
 0x5f8   : > { %v2421_v13 = vcombine.high %v2369_v61, %v2401_v40  ;;  %v2422_v30 = vcombine.low %v2378_v1, %v2410_v8  ;;  %v2443_v44 = vcombine.high %v10568_v29, %v2276_v23  ;;  %v2423_v19 = vcombine.high %v2378_v1, %v2410_v8 }
 0x5f9   : > { %2578 = vrot.lane.b32.xlu0 %v2418_v53, %s9241_s26  ;;  %v2450_v20 = vrot.slane %v2442_v49, %v9595_v47  ;;  %v2441_v29 = vrot.slane %v2427_v45, %v9595_v47  ;;  %v2424_v38 = vcombine.low %v2385_v43, %v2417_v56  ;;  %v2425_v23 = vcombine.high %v2385_v43, %v2417_v56 }
 0x5fa   : > { %v2282_v63 = vpop.permute.xlu1 %2281  ;;  %v2457_v41 = vrot.slane %v2443_v44, %v9595_v47 }
 0x5fb   : > { %v2490_v10 = vcombine.low %v2434_v42, %v2450_v20  ;;  %v2491_v3 = vcombine.high %v2434_v42, %v2450_v20 }
 0x5fc   : > { %v2506_v28 = vcombine.low %v2441_v29, %v2457_v41  ;;  %v2507_v59 = vcombine.high %v2441_v29, %v2457_v41 }
 0x5fd   : > { %2582 = vrot.lane.b32.xlu0 %v2419_v58, %s9241_s26  ;;  %v2498_v5 = vrot.slane %v2490_v10, %v9790_v51  ;;  %v2505_v46 = vrot.slane %v2491_v3, %v9790_v51 }
 0x5fe   : > { %v2288_v25 = vpop.permute.xlu1 %2287  ;;  %v2514_v53 = vrot.slane %v2506_v28, %v9790_v51  ;;  %v2521_v32 = vrot.slane %v2507_v59, %v9790_v51 }
 0x5ff   : > { %v2474_v37 = vcombine.low %v2282_v63, %v2288_v25  ;;  %v2475_v7 = vcombine.high %v2282_v63, %v2288_v25 }
 0x601   : > { %v2482_v62 = vrot.slane %v2474_v37, %v9595_v47  ;;  %2586 = vrot.lane.b32.xlu0 %v2420_v4, %s9241_s26  ;;  %v2489_v33 = vrot.slane %v2475_v7, %v9595_v47 }
 0x603   : > { %v2522_v55 = vcombine.low %v2466_v16, %v2482_v62  ;;  %v2523_v17 = vcombine.high %v2466_v16, %v2482_v62  ;;  %v2538_v34 = vcombine.low %v2473_v54, %v2489_v33  ;;  %v2539_v36 = vcombine.high %v2473_v54, %v2489_v33 }
 0x605   : > { %2590 = vrot.lane.b32.xlu0 %v2421_v13, %s9241_s26  ;;  %v2530_v18 = vrot.slane %v2522_v55, %v9790_v51  ;;  %v2537_v60 = vrot.slane %v2523_v17, %v9790_v51  ;;  %v2546_v31 = vrot.slane %v2538_v34, %v9790_v51  ;;  %v2553_v49 = vrot.slane %v2539_v36, %v9790_v51 }
 0x607   : > { %v2554_v6 = vcombine.low %v2498_v5, %v2530_v18  ;;  %v2555_v24 = vcombine.high %v2498_v5, %v2530_v18  ;;  %v2556_v15 = vcombine.low %v2505_v46, %v2537_v60  ;;  %v2557_v48 = vcombine.high %v2505_v46, %v2537_v60 }
 0x608   : > { %v2558_v11 = vcombine.low %v2514_v53, %v2546_v31  ;;  %v2559_v39 = vcombine.high %v2514_v53, %v2546_v31  ;;  %v2560_v63 = vcombine.low %v2521_v32, %v2553_v49  ;;  %v2561_v22 = vcombine.high %v2521_v32, %v2553_v49 }
 0x609   : > { %2594 = vrot.lane.b32.xlu0 %v2422_v30, %s9241_s26  ;;  %2580 = vrot.lane.b32.xlu1 %v2554_v6, %s9241_s26 }
 0x60d   : > { %2598 = vrot.lane.b32.xlu0 %v2423_v19, %s9241_s26  ;;  %2584 = vrot.lane.b32.xlu1 %v2555_v24, %s9241_s26 }
 0x611   : > { %2602 = vrot.lane.b32.xlu0 %v2424_v38, %s9241_s26  ;;  %2588 = vrot.lane.b32.xlu1 %v2556_v15, %s9241_s26 }
 0x615   : > { %2606 = vrot.lane.b32.xlu0 %v2425_v23, %s9241_s26  ;;  %2592 = vrot.lane.b32.xlu1 %v2557_v48, %s9241_s26 }
 0x619   : > { %2596 = vrot.lane.b32.xlu1 %v2558_v11, %s9241_s26 }
 0x61d   : > { %2600 = vrot.lane.b32.xlu1 %v2559_v39, %s9241_s26 }
 0x621   : > { %2604 = vrot.lane.b32.xlu1 %v2560_v63, %s9241_s26 }
 0x625   : > { %2608 = vrot.lane.b32.xlu1 %v2561_v22, %s9241_s26  ;;  %s240_s26 = scalar_lea.vmem [#allocation10], %s8432_s12 }
 0x66b   : > { %v2579_v2 = vpop.permute.xlu0 %2578 }
 0x66c   : > { %2626 = vst.msk [vmem:[#allocation3 + $0x1] sm:$0xff] %vm296_vm2, %v2579_v2 }
 0x66f   : > { %v2583_v58 = vpop.permute.xlu0 %2582 }
 0x670   : > { %2628 = vst.msk [vmem:[#allocation3 + $0x19] sm:$0xff] %vm296_vm2, %v2583_v58 }
 0x673   : > { %v2587_v40 = vpop.permute.xlu0 %2586  ;;  %v10725_v11 = vld [vmem:[#allocation3] sm:$0xff] }
 0x674   : > { %2630 = vst.msk [vmem:[#allocation3 + $0x31] sm:$0xff] %vm296_vm2, %v2587_v40 }
 0x677   : > { %v2591_v35 = vpop.permute.xlu0 %2590 }
 0x678   : > { %2632 = vst.msk [vmem:[#allocation3 + $0x49] sm:$0xff] %vm296_vm2, %v2591_v35 }
 0x67b   : > { %v2595_v14 = vpop.permute.xlu0 %2594  ;;  %v2581_v21 = vpop.permute.xlu1 %2580  ;;  %v10745_v58 = vld [vmem:[#allocation3 + $0x30] sm:$0xff] }
 0x67c   : > { %2634 = vst.msk [vmem:[#allocation3 + $0x61] sm:$0xff] %vm296_vm2, %v2595_v14  ;;  %2627 = vst.msk [vmem:[#allocation3 + $0x9] sm:$0xff] %vm296_vm2, %v2581_v21 }
 0x67f   : > { %v2599_v20 = vpop.permute.xlu0 %2598  ;;  %v2585_v61 = vpop.permute.xlu1 %2584 }
 0x680   : > { %2636 = vst.msk [vmem:[#allocation3 + $0x79] sm:$0xff] %vm296_vm2, %v2599_v20  ;;  %2629 = vst.msk [vmem:[#allocation3 + $0x21] sm:$0xff] %vm296_vm2, %v2585_v61  ;;  %v10753_v20 = vld [vmem:[#allocation3 + $0x18] sm:$0xff]  ;;  %v10757_v61 = vld [vmem:[#allocation3 + $0x48] sm:$0xff] }
 0x683   : > { %v2603_v42 = vpop.permute.xlu0 %2602  ;;  %v2589_v25 = vpop.permute.xlu1 %2588  ;;  %v10629_v12 = vld [vmem:[#allocation3 + $0x8] sm:$0xff]  ;;  %v10643_v10 = vld [vmem:[#allocation3 + $0x60] sm:$0xff] }
 0x684   : > { %2638 = vst.msk [vmem:[#allocation3 + $0x91] sm:$0xff] %vm296_vm2, %v2603_v42  ;;  %2631 = vst.msk [vmem:[#allocation3 + $0x39] sm:$0xff] %vm296_vm2, %v2589_v25  ;;  %2708 = vrot.lane.b32.xlu0 %v10629_v12, %s9242_s29 }
 0x687   : > { %v2607_v57 = vpop.permute.xlu0 %2606  ;;  %v2593_v37 = vpop.permute.xlu1 %2592  ;;  %v10635_v4 = vld [vmem:[#allocation3 + $0x20] sm:$0xff]  ;;  %v10660_v50 = vld [vmem:[#allocation3 + $0x78] sm:$0xff] }
 0x688   : > { %2640 = vst.msk [vmem:[#allocation3 + $0xa9] sm:$0xff] %vm296_vm2, %v2607_v57  ;;  %2633 = vst.msk [vmem:[#allocation3 + $0x51] sm:$0xff] %vm296_vm2, %v2593_v37  ;;  %2712 = vrot.lane.b32.xlu1 %v10635_v4, %s9242_s29  ;;  %v3026_v57 = vcombine.low %v10725_v11, %v10745_v58  ;;  %v3042_v37 = vcombine.low %v10753_v20, %v10757_v61 }
 0x68a   : > { %v10840_v15 = vrot.slane %v3042_v37, %v9595_v47 }
 0x68b   : > { %v2597_v16 = vpop.permute.xlu1 %2596  ;;  %v10641_v26 = vld [vmem:[#allocation3 + $0x38] sm:$0xff]  ;;  %v10645_v62 = vld [vmem:[#allocation3 + $0x90] sm:$0xff] }
 0x68c   : > { %2635 = vst.msk [vmem:[#allocation3 + $0x69] sm:$0xff] %vm296_vm2, %v2597_v16  ;;  %2716 = vrot.lane.b32.xlu0 %v10641_v26, %s9242_s29  ;;  %v4250_v55 = vcombine.low %v10629_v12, %v10641_v26  ;;  %v4251_v13 = vcombine.high %v10629_v12, %v10641_v26  ;;  %v3058_v8 = vcombine.low %v10643_v10, %v10645_v62  ;;  %v10773_v16 = vld [vmem:[#allocation3 + $0x39] sm:$0xff] }
 0x68d   : > { %v3059_v1 = vcombine.high %v10643_v10, %v10645_v62 }
 0x68e   : > { %v4258_v52 = vrot.slane %v4250_v55, %v9595_v47  ;;  %v10677_v44 = vrot.slane %v4251_v13, %v9595_v47  ;;  %v10692_v60 = vrot.slane %v3058_v8, %v9595_v47  ;;  %v10775_v55 = vld [vmem:[#allocation3 + $0x1] sm:$0xff]  ;;  %v10777_v13 = vld [vmem:[#allocation3 + $0x31] sm:$0xff]  ;;  %v10779_v8 = vld [vmem:[#allocation3 + $0x49] sm:$0xff] }
 0x68f   : > { %v2601_v5 = vpop.permute.xlu1 %2600  ;;  %v10658_v18 = vld [vmem:[#allocation3 + $0x50] sm:$0xff]  ;;  %v10662_v7 = vld [vmem:[#allocation3 + $0xa8] sm:$0xff]  ;;  %v10695_v54 = vrot.slane %v3059_v1, %v9595_v47  ;;  %14629 = vst [vmem:[#allocation16_spill] sm:$0xff] %v10779_v8 }
 0x690   : > { %2637 = vst.msk [vmem:[#allocation3 + $0x81] sm:$0xff] %vm296_vm2, %v2601_v5  ;;  %2720 = vrot.lane.b32.xlu1 %v10658_v18, %s9242_s29  ;;  %v4266_v17 = vcombine.low %v10635_v4, %v10658_v18  ;;  %v4267_v30 = vcombine.high %v10635_v4, %v10658_v18  ;;  %v3074_v6 = vcombine.low %v10660_v50, %v10662_v7  ;;  %14625 = vst [vmem:[#allocation23_spill] sm:$0xff] %v10692_v60 }
 0x691   : > { %v3075_v27 = vcombine.high %v10660_v50, %v10662_v7  ;;  %14626 = vst [vmem:[#allocation48_spill] sm:$0xff] %v10695_v54 }
 0x692   : > { %v4274_v3 = vrot.slane %v4266_v17, %v9595_v47  ;;  %v10681_v45 = vrot.slane %v4267_v30, %v9595_v47  ;;  %v10684_v56 = vrot.slane %v3074_v6, %v9595_v47  ;;  %v10791_v6 = vld [vmem:[#allocation3 + $0x19] sm:$0xff] }
 0x693   : > { %v10687_v33 = vrot.slane %v3075_v27, %v9595_v47  ;;  %v2605_v19 = vpop.permute.xlu1 %2604  ;;  %v10689_v24 = vld [vmem:[#allocation3 + $0x68] sm:$0xff]  ;;  %v10793_v27 = vld [vmem:[#allocation3 + $0x91] sm:$0xff]  ;;  %v3450_v38 = vcombine.low %v10791_v6, %v10779_v8 }
 0x694   : > { %14623 = vst [vmem:[#allocation30_spill] sm:$0xff] %v10684_v56  ;;  %v4314_v41 = vcombine.low %v4258_v52, %v4274_v3  ;;  %v4315_v43 = vcombine.high %v4258_v52, %v4274_v3  ;;  %v4330_v46 = vcombine.low %v10677_v44, %v10681_v45  ;;  %2639 = vst.msk [vmem:[#allocation3 + $0x99] sm:$0xff] %vm296_vm2, %v2605_v19  ;;  %2724 = vrot.lane.b32.xlu0 %v10689_v24, %s9242_s29  ;;  %v10795_v52 = vld [vmem:[#allocation3 + $0x79] sm:$0xff]  ;;  %v10797_v3 = vld [vmem:[#allocation3 + $0xa9] sm:$0xff] }
 0x695   : > { %14624 = vst [vmem:[#allocation27_spill] sm:$0xff] %v10687_v33  ;;  %14632 = vst [vmem:[#allocation47_spill] sm:$0xff] %v10793_v27  ;;  %v10801_v19 = vld [vmem:[#allocation3 + $0x9] sm:$0xff]  ;;  %v3482_v1 = vcombine.low %v10795_v52, %v10797_v3  ;;  %v14648_v8 = vcombine.high %v10677_v44, %v10681_v45 }
 0x696   : > { %v10762_v42 = vrot.slane %v4314_v41, %v9790_v51  ;;  %v10784_v5 = vrot.slane %v4315_v43, %v9790_v51  ;;  %14633 = vst [vmem:[#allocation45_spill] sm:$0xff] %v10795_v52  ;;  %14634 = vst [vmem:[#allocation34_spill] sm:$0xff] %v10797_v3  ;;  %v10803_v41 = vld [vmem:[#allocation3 + $0x51] sm:$0xff]  ;;  %v10856_v37 = vld [vmem:[#allocation3 + $0x69] sm:$0xff] }
 0x697   : > { %v2609_v23 = vpop.permute.xlu1 %2608  ;;  %v10712_v48 = vld [vmem:[#allocation3 + $0x80] sm:$0xff]  ;;  %v10805_v43 = vld [vmem:[#allocation3 + $0x52] sm:$0xff]  ;;  %v10880_v33 = vld [vmem:[#allocation3 + $0x6a] sm:$0xff] }
 0x698   : > { %2641 = vst.msk [vmem:[#allocation3 + $0xb1] sm:$0xff] %vm296_vm2, %v2609_v23  ;;  %2728 = vrot.lane.b32.xlu1 %v10712_v48, %s9242_s29  ;;  %14627 = vst [vmem:[#allocation46_spill] sm:$0xff] %v10762_v42  ;;  %v10850_v21 = vld [vmem:[#allocation3 + $0x82] sm:$0xff]  ;;  %v10862_v0 = vld [vmem:[#allocation3 + $0x7a] sm:$0xff]  ;;  %vm8000_vm2 = vcmask 392512  }
 0x699   : > { %14630 = vst [vmem:[#allocation44_spill] sm:$0xff] %v10784_v5  ;;  %14635 = vst [vmem:[#allocation17_spill] sm:$0xff] %v10805_v43  ;;  %v10878_v3 = vld [vmem:[#allocation3 + $0x22] sm:$0xff]  ;;  %v10892_v52 = vld [vmem:[#allocation3 + $0x1a] sm:$0xff] }
 0x69a   : > { %14642 = vst [vmem:[#allocation37_spill] sm:$0xff] %v10850_v21  ;;  %14644 = vst [vmem:[#allocation35_spill] sm:$0xff] %v10862_v0 }
 0x69b   : > { %v10717_v31 = vld [vmem:[#allocation3 + $0x98] sm:$0xff]  ;;  %14645 = vst [vmem:[#allocation28_spill] sm:$0xff] %v10878_v3  ;;  %14646 = vst [vmem:[#allocation49_spill] sm:$0xff] %v10880_v33 }
 0x69c   : > { %2732 = vrot.lane.b32.xlu0 %v10717_v31, %s9242_s29  ;;  %v4282_v53 = vcombine.low %v10689_v24, %v10717_v31  ;;  %v4283_v36 = vcombine.high %v10689_v24, %v10717_v31  ;;  %v10848_v34 = vld [vmem:[#allocation3 + $0x9a] sm:$0xff]  ;;  %v10860_v9 = vld [vmem:[#allocation3 + $0x92] sm:$0xff] }
 0x69d   : > { %14641 = vst [vmem:[#allocation39_spill] sm:$0xff] %v10848_v34  ;;  %14643 = vst [vmem:[#allocation24_spill] sm:$0xff] %v10860_v9 }
 0x69e   : > { %v4290_v32 = vrot.slane %v4282_v53, %v9595_v47  ;;  %v10739_v63 = vrot.slane %v4283_v36, %v9595_v47 }
 0x69f   : > { %v10727_v59 = vld [vmem:[#allocation3 + $0xb0] sm:$0xff] }
 0x6a0   : > { %2706 = vrot.lane.b32.xlu0 %v10725_v11, %s9242_s29  ;;  %2736 = vrot.lane.b32.xlu1 %v10727_v59, %s9242_s29  ;;  %v4298_v39 = vcombine.low %v10712_v48, %v10727_v59  ;;  %v4299_v49 = vcombine.high %v10712_v48, %v10727_v59  ;;  %v10789_v30 = vld [vmem:[#allocation3 + $0xb1] sm:$0xff] }
 0x6a1   : > { %v10807_v23 = vld [vmem:[#allocation3 + $0xb2] sm:$0xff]  ;;  %v10828_v28 = vld [vmem:[#allocation3 + $0xaa] sm:$0xff] }
 0x6a2   : > { %v4306_v22 = vrot.slane %v4298_v39, %v9595_v47  ;;  %v10743_v2 = vrot.slane %v4299_v49, %v9595_v47  ;;  %14636 = vst [vmem:[#allocation15_spill] sm:$0xff] %v10807_v23  ;;  %v10814_v39 = vrot.slane %v3026_v57, %v9595_v47  ;;  %v10818_v49 = vld [vmem:[#allocation3 + $0x21] sm:$0xff]  ;;  %14638 = vst [vmem:[#allocation38_spill] sm:$0xff] %v10828_v28 }
 0x6a3   : > { %v10834_v57 = vrot.slane %v4330_v46, %v9790_v51  ;;  %v10852_v46 = vld [vmem:[#allocation3 + $0x4a] sm:$0xff]  ;;  %v5114_v29 = vcombine.low %v10850_v21, %v10807_v23  ;;  %v10876_v21 = vld [vmem:[#allocation3 + $0x3a] sm:$0xff]  ;;  %v3890_v54 = vcombine.low %v10862_v0, %v10828_v28  ;;  %v10900_v28 = vrot.slane %v14648_v8, %v9790_v51 }
 0x6a4   : > { %v4346_v40 = vcombine.low %v4290_v32, %v4306_v22  ;;  %v4347_v35 = vcombine.high %v4290_v32, %v4306_v22  ;;  %v4362_v14 = vcombine.low %v10739_v63, %v10743_v2  ;;  %2714 = vrot.lane.b32.xlu0 %v10745_v58, %s9242_s29  ;;  %2710 = vrot.lane.b32.xlu1 %v10753_v20, %s9242_s29  ;;  %v10820_v32 = vld [vmem:[#allocation3 + $0x99] sm:$0xff]  ;;  %v10822_v22 = vld [vmem:[#allocation3 + $0x81] sm:$0xff] }
 0x6a5   : > { %14639 = vst [vmem:[#allocation43_spill] sm:$0xff] %v10834_v57  ;;  %v4706_v53 = vcombine.low %v10822_v22, %v10789_v30  ;;  %v4690_v5 = vcombine.low %v10856_v37, %v10820_v32  ;;  %v10890_v57 = vld [vmem:[#allocation3 + $0x32] sm:$0xff]  ;;  %14649 = vst [vmem:[#allocation22_spill] sm:$0xff] %v10900_v28  ;;  %v14650_v0 = vcombine.high %v10739_v63, %v10743_v2  ;;  %v10922_v63 = vld [vmem:[#allocation3 + $0x2] sm:$0xff] }
 0x6a6   : > { %v10765_v25 = vrot.slane %v4346_v40, %v9790_v51  ;;  %v10787_v17 = vrot.slane %v4347_v35, %v9790_v51  ;;  %v3434_v40 = vcombine.low %v10775_v55, %v10777_v13  ;;  %v10826_v35 = vld [vmem:[#allocation3 + $0x61] sm:$0xff]  ;;  %v10837_v36 = vrot.slane %v4362_v14, %v9790_v51 }
 0x6a7   : > { %14637 = vst [vmem:[#allocation40_spill] sm:$0xff] %v10826_v35  ;;  %v4658_v14 = vcombine.low %v10801_v19, %v10773_v16  ;;  %v3466_v23 = vcombine.low %v10826_v35, %v10793_v27  ;;  %v10894_v27 = vld [vmem:[#allocation3 + $0x62] sm:$0xff]  ;;  %v3858_v35 = vcombine.low %v10892_v52, %v10852_v46  ;;  %v10947_v8 = vrot.slane %v3450_v38, %v9595_v47 }
 0x6a8   : > { %2722 = vrot.lane.b32.xlu0 %v10643_v10, %s9242_s29  ;;  %14628 = vst [vmem:[#allocation18_spill] sm:$0xff] %v10765_v25  ;;  %2718 = vrot.lane.b32.xlu1 %v10757_v61, %s9242_s29  ;;  %14631 = vst [vmem:[#allocation42_spill] sm:$0xff] %v10787_v17  ;;  %v4674_v17 = vcombine.low %v10818_v49, %v10803_v41  ;;  %v3874_v44 = vcombine.low %v10894_v27, %v10860_v9  ;;  %v14690_v25 = vld [vmem:[#allocation49_spill] sm:$0xff] }
 0x6a9   : > { %14640 = vst [vmem:[#allocation41_spill] sm:$0xff] %v10837_v36  ;;  %v5098_v36 = vcombine.low %v10880_v33, %v10848_v34  ;;  %14647 = vst [vmem:[#allocation36_spill] sm:$0xff] %v10894_v27  ;;  %v10909_v34 = vrot.slane %v4706_v53, %v9595_v47  ;;  %v10912_v33 = vrot.slane %v3482_v1, %v9595_v47 }
 0x6aa   : > { %v10934_v1 = vrot.slane %v4674_v17, %v9595_v47  ;;  %v10937_v53 = vrot.slane %v4690_v5, %v9595_v47  ;;  %v3842_v9 = vcombine.low %v10922_v63, %v10890_v57  ;;  %v10959_v2 = vrot.slane %v4658_v14, %v9595_v47 }
 0x6ab   : > { %v10956_v5 = vrot.slane %v5098_v36, %v9595_v47  ;;  %v10967_v38 = vrot.slane %v3874_v44, %v9595_v47 }
 0x6ac   : > { %2730 = vrot.lane.b32.xlu0 %v10645_v62, %s9242_s29  ;;  %2726 = vrot.lane.b32.xlu1 %v10660_v50, %s9242_s29  ;;  %14653 = vst [vmem:[#allocation20_spill] sm:$0xff] %v10937_v53 }
 0x6ad   : > { %14656 = vst [vmem:[#allocation25_spill] sm:$0xff] %v10956_v5  ;;  %14658 = vst [vmem:[#allocation50_spill] sm:$0xff] %v10967_v38 }
 0x6b0   : > { %2756 = vrot.lane.b32.xlu0 %v10629_v12, %s9244_s7  ;;  %2734 = vrot.lane.b32.xlu1 %v10662_v7, %s9242_s29  ;;  %v5082_v12 = vcombine.low %v10878_v3, %v10805_v43  ;;  %v10906_v43 = vrot.slane %v14650_v0, %v9790_v51  ;;  %v10914_v3 = vld [vmem:[#allocation3 + $0xa] sm:$0xff]  ;;  %v10925_v0 = vrot.slane %v5114_v29, %v9595_v47 }
 0x6b1   : > { %v5066_v45 = vcombine.low %v10914_v3, %v10876_v21  ;;  %v10942_v29 = vrot.slane %v3890_v54, %v9595_v47  ;;  %v4754_v54 = vcombine.low %v10937_v53, %v10909_v34 }
 0x6b2   : > { %14651 = vst [vmem:[#allocation21_spill] sm:$0xff] %v10906_v43  ;;  %14652 = vst [vmem:[#allocation19_spill] sm:$0xff] %v10925_v0  ;;  %v10953_v17 = vrot.slane %v5082_v12, %v9595_v47  ;;  %v5162_v14 = vcombine.low %v10956_v5, %v10925_v0  ;;  %v3090_v43 = vcombine.low %v10814_v39, %v10840_v15 }
 0x6b3   : > { %14654 = vst [vmem:[#allocation31_spill] sm:$0xff] %v10942_v29  ;;  %v10975_v36 = vrot.slane %v5066_v45, %v9595_v47  ;;  %v3938_v44 = vcombine.low %v10967_v38, %v10942_v29  ;;  %v11005_v38 = vrot.slane %v4754_v54, %v9790_v51 }
 0x6b4   : > { %2764 = vrot.lane.b32.xlu0 %v10641_v26, %s9244_s7  ;;  %2760 = vrot.lane.b32.xlu1 %v10635_v4, %s9244_s7  ;;  %v10950_v26 = vrot.slane %v3466_v23, %v9595_v47  ;;  %14655 = vst [vmem:[#allocation29_spill] sm:$0xff] %v10953_v17  ;;  %v10964_v4 = vrot.slane %v3858_v35, %v9595_v47 }
 0x6b5   : > { %v10970_v23 = vrot.slane %v3434_v40, %v9595_v47  ;;  %14659 = vst [vmem:[#allocation51_spill] sm:$0xff] %v10975_v36  ;;  %v4722_v35 = vcombine.low %v10959_v2, %v10934_v1  ;;  %v10986_v40 = vrot.slane %v3842_v9, %v9595_v47  ;;  %v5130_v28 = vcombine.low %v10975_v36, %v10953_v17 }
 0x6b6   : > { %14657 = vst [vmem:[#allocation26_spill] sm:$0xff] %v10964_v4  ;;  %v3530_v12 = vcombine.low %v10950_v26, %v10912_v33  ;;  %v14661_v9 = vcombine.low %v10692_v60, %v10684_v56  ;;  %14663 = vst [vmem:[#allocation54_spill] sm:$0xff] %v11005_v38  ;;  %v11011_v29 = vrot.slane %v5162_v14, %v9790_v51 }
 0x6b7   : > { %14660 = vst [vmem:[#allocation52_spill] sm:$0xff] %v10986_v40  ;;  %v3498_v45 = vcombine.low %v10970_v23, %v10947_v8  ;;  %v11016_v0 = vrot.slane %v3090_v43, %v9790_v51  ;;  %v11019_v53 = vrot.slane %v4722_v35, %v9790_v51 }
 0x6b8   : > { %2772 = vrot.lane.b32.xlu0 %v10689_v24, %s9244_s7  ;;  %2768 = vrot.lane.b32.xlu1 %v10658_v18, %s9244_s7  ;;  %v3906_v24 = vcombine.low %v10986_v40, %v10964_v4  ;;  %v11002_v5 = vrot.slane %v14661_v9, %v9790_v51  ;;  %v11008_v18 = vrot.slane %v3530_v12, %v9790_v51 }
 0x6b9   : > { %14665 = vst [vmem:[#allocation56_spill] sm:$0xff] %v11011_v29  ;;  %14666 = vst [vmem:[#allocation57_spill] sm:$0xff] %v11016_v0  ;;  %v11022_v9 = vrot.slane %v3938_v44, %v9790_v51  ;;  %v11029_v12 = vrot.slane %v3498_v45, %v9790_v51 }
 0x6ba   : > { %14662 = vst [vmem:[#allocation53_spill] sm:$0xff] %v11002_v5  ;;  %14664 = vst [vmem:[#allocation55_spill] sm:$0xff] %v11008_v18  ;;  %v11035_v43 = vrot.slane %v3906_v24, %v9790_v51  ;;  %v14687_v5 = vld [vmem:[#allocation28_spill] sm:$0xff] }
 0x6bb   : > { %14667 = vst [vmem:[#allocation58_spill] sm:$0xff] %v11019_v53  ;;  %14668 = vst [vmem:[#allocation59_spill] sm:$0xff] %v11022_v9 }
 0x6bc   : > { %2780 = vrot.lane.b32.xlu0 %v10717_v31, %s9244_s7  ;;  %2776 = vrot.lane.b32.xlu1 %v10712_v48, %s9244_s7  ;;  %14669 = vst [vmem:[#allocation60_spill] sm:$0xff] %v11029_v12  ;;  %v11032_v31 = vrot.slane %v5130_v28, %v9790_v51  ;;  %14671 = vst [vmem:[#allocation62_spill] sm:$0xff] %v11035_v43 }
 0x6be   : > { %14670 = vst [vmem:[#allocation61_spill] sm:$0xff] %v11032_v31 }
 0x6c0   : > { %2754 = vrot.lane.b32.xlu0 %v10725_v11, %s9244_s7  ;;  %2784 = vrot.lane.b32.xlu1 %v10727_v59, %s9244_s7  ;;  %v14676_v59 = vld [vmem:[#allocation34_spill] sm:$0xff] }
 0x6c4   : > { %2762 = vrot.lane.b32.xlu0 %v10745_v58, %s9244_s7  ;;  %2758 = vrot.lane.b32.xlu1 %v10753_v20, %s9244_s7 }
 0x6c8   : > { %2770 = vrot.lane.b32.xlu0 %v10643_v10, %s9244_s7  ;;  %2766 = vrot.lane.b32.xlu1 %v10757_v61, %s9244_s7  ;;  %v14672_v10 = vld [vmem:[#allocation40_spill] sm:$0xff] }
 0x6cc   : > { %2778 = vrot.lane.b32.xlu0 %v10645_v62, %s9244_s7  ;;  %2774 = vrot.lane.b32.xlu1 %v10660_v50, %s9244_s7  ;;  %v14673_v62 = vld [vmem:[#allocation16_spill] sm:$0xff]  ;;  %v14674_v50 = vld [vmem:[#allocation47_spill] sm:$0xff] }
 0x6d0   : > { %2820 = vrot.lane.b32.xlu0 %v10801_v19, %s9242_s29  ;;  %2782 = vrot.lane.b32.xlu1 %v10662_v7, %s9244_s7  ;;  %v14675_v7 = vld [vmem:[#allocation45_spill] sm:$0xff] }
 0x6d4   : > { %2828 = vrot.lane.b32.xlu0 %v10773_v16, %s9242_s29  ;;  %2824 = vrot.lane.b32.xlu1 %v10818_v49, %s9242_s29 }
 0x6d8   : > { %2836 = vrot.lane.b32.xlu0 %v10856_v37, %s9242_s29  ;;  %2832 = vrot.lane.b32.xlu1 %v10803_v41, %s9242_s29 }
 0x6dc   : > { %2844 = vrot.lane.b32.xlu0 %v10820_v32, %s9242_s29  ;;  %2840 = vrot.lane.b32.xlu1 %v10822_v22, %s9242_s29 }
 0x6e0   : > { %2868 = vrot.lane.b32.xlu0 %v10801_v19, %s9244_s7  ;;  %2848 = vrot.lane.b32.xlu1 %v10789_v30, %s9242_s29 }
 0x6e4   : > { %2876 = vrot.lane.b32.xlu0 %v10773_v16, %s9244_s7  ;;  %2872 = vrot.lane.b32.xlu1 %v10818_v49, %s9244_s7 }
 0x6e8   : > { %2884 = vrot.lane.b32.xlu0 %v10856_v37, %s9244_s7  ;;  %2880 = vrot.lane.b32.xlu1 %v10803_v41, %s9244_s7 }
 0x6ec   : > { %2892 = vrot.lane.b32.xlu0 %v10820_v32, %s9244_s7  ;;  %2888 = vrot.lane.b32.xlu1 %v10822_v22, %s9244_s7 }
 0x6f0   : > { %2818 = vrot.lane.b32.xlu0 %v10775_v55, %s9242_s29  ;;  %2896 = vrot.lane.b32.xlu1 %v10789_v30, %s9244_s7 }
 0x6f4   : > { %2826 = vrot.lane.b32.xlu0 %v10777_v13, %s9242_s29  ;;  %2822 = vrot.lane.b32.xlu1 %v10791_v6, %s9242_s29 }
 0x6f6   : > { %v11115_v45 = vpop.permute.xlu0 %2708 }
 0x6f7   : > { %14677 = vst [vmem:[#allocation40_spill] sm:$0xff] %v11115_v45 }
 0x6f8   : > { %2834 = vrot.lane.b32.xlu0 %v14672_v10, %s9242_s29  ;;  %2830 = vrot.lane.b32.xlu1 %v14673_v62, %s9242_s29 }
 0x6fa   : > { %v11121_v24 = vpop.permute.xlu1 %2712 }
 0x6fc   : > { %2842 = vrot.lane.b32.xlu0 %v14674_v50, %s9242_s29  ;;  %2838 = vrot.lane.b32.xlu1 %v14675_v7, %s9242_s29 }
 0x6fe   : > { %v11123_v48 = vpop.permute.xlu0 %2716 }
 0x6ff   : > { %v4386_v43 = vcombine.low %v11115_v45, %v11123_v48  ;;  %v3027_v45 = vcombine.high %v10725_v11, %v10745_v58 }
 0x700   : > { %2866 = vrot.lane.b32.xlu0 %v10775_v55, %s9244_s7  ;;  %2846 = vrot.lane.b32.xlu1 %v14676_v59, %s9242_s29 }
 0x701   : > { %v11159_v18 = vrot.slane %v4386_v43, %v9595_v47 }
 0x702   : > { %v11129_v28 = vpop.permute.xlu1 %2720 }
 0x703   : > { %v4402_v35 = vcombine.low %v11121_v24, %v11129_v28  ;;  %14684 = vst [vmem:[#allocation65_spill] sm:$0xff] %v11159_v18 }
 0x704   : > { %2874 = vrot.lane.b32.xlu0 %v10777_v13, %s9244_s7  ;;  %2870 = vrot.lane.b32.xlu1 %v10791_v6, %s9244_s7 }
 0x705   : > { %v11148_v9 = vrot.slane %v4402_v35, %v9595_v47 }
 0x706   : > { %v11131_v44 = vpop.permute.xlu0 %2724 }
 0x707   : > { %14678 = vst [vmem:[#allocation16_spill] sm:$0xff] %v11131_v44  ;;  %14681 = vst [vmem:[#allocation34_spill] sm:$0xff] %v11148_v9  ;;  %v4450_v35 = vcombine.low %v11159_v18, %v11148_v9  ;;  %v14700_v9 = vld [vmem:[#allocation15_spill] sm:$0xff] }
 0x708   : > { %2882 = vrot.lane.b32.xlu0 %v14672_v10, %s9244_s7  ;;  %2878 = vrot.lane.b32.xlu1 %v14673_v62, %s9244_s7 }
 0x709   : > { %v11184_v42 = vrot.slane %v4450_v35, %v9790_v51 }
 0x70a   : > { %v11139_v14 = vpop.permute.xlu1 %2728 }
 0x70b   : > { %14679 = vst [vmem:[#allocation47_spill] sm:$0xff] %v11139_v14  ;;  %14691 = vst [vmem:[#allocation49_spill] sm:$0xff] %v11184_v42 }
 0x70c   : > { %2890 = vrot.lane.b32.xlu0 %v14674_v50, %s9244_s7  ;;  %2886 = vrot.lane.b32.xlu1 %v14675_v7, %s9244_s7 }
 0x70e   : > { %v11141_v54 = vpop.permute.xlu0 %2732 }
 0x70f   : > { %14680 = vst [vmem:[#allocation45_spill] sm:$0xff] %v11141_v54  ;;  %v4418_v31 = vcombine.low %v11131_v44, %v11141_v54  ;;  %v14696_v54 = vld [vmem:[#allocation39_spill] sm:$0xff] }
 0x710   : > { %2932 = vrot.lane.b32.xlu0 %v10914_v3, %s9242_s29  ;;  %2894 = vrot.lane.b32.xlu1 %v14676_v59, %s9244_s7 }
 0x711   : > { %v11168_v38 = vrot.slane %v4418_v31, %v9595_v47 }
 0x712   : > { %v11154_v29 = vpop.permute.xlu0 %2706  ;;  %v11156_v12 = vpop.permute.xlu1 %2736  ;;  %v14761_v17 = vld [vmem:[#allocation49_spill] sm:$0xff] }
 0x713   : > { %14682 = vst [vmem:[#allocation63_spill] sm:$0xff] %v11154_v29  ;;  %14683 = vst [vmem:[#allocation64_spill] sm:$0xff] %v11156_v12  ;;  %v4434_v53 = vcombine.low %v11139_v14, %v11156_v12 }
 0x714   : > { %2940 = vrot.lane.b32.xlu0 %v10876_v21, %s9242_s29  ;;  %14685 = vst [vmem:[#allocation66_spill] sm:$0xff] %v11168_v38  ;;  %2936 = vrot.lane.b32.xlu1 %v14687_v5, %s9242_s29 }
 0x715   : > { %v11171_v0 = vrot.slane %v4434_v53, %v9595_v47  ;;  %v14693_v53 = vld [vmem:[#allocation17_spill] sm:$0xff] }
 0x716   : > { %v11175_v43 = vpop.permute.xlu0 %2714  ;;  %v11179_v60 = vpop.permute.xlu1 %2710 }
 0x717   : > { %14686 = vst [vmem:[#allocation67_spill] sm:$0xff] %v11171_v0  ;;  %14688 = vst [vmem:[#allocation28_spill] sm:$0xff] %v11175_v43  ;;  %v4482_v56 = vcombine.low %v11168_v38, %v11171_v0  ;;  %v14697_v38 = vld [vmem:[#allocation37_spill] sm:$0xff]  ;;  %v3162_v14 = vcombine.low %v11154_v29, %v11175_v43 }
 0x718   : > { %14689 = vst [vmem:[#allocation68_spill] sm:$0xff] %v11179_v60  ;;  %2948 = vrot.lane.b32.xlu0 %v14690_v25, %s9242_s29  ;;  %2944 = vrot.lane.b32.xlu1 %v14693_v53, %s9242_s29 }
 0x719   : > { %v11187_v31 = vrot.slane %v4482_v56, %v9790_v51  ;;  %v11223_v12 = vrot.slane %v3162_v14, %v9595_v47 }
 0x71a   : > { %v11191_v18 = vpop.permute.xlu0 %2722  ;;  %v11195_v44 = vpop.permute.xlu1 %2718  ;;  %v14744_v4 = vld [vmem:[#allocation64_spill] sm:$0xff] }
 0x71b   : > { %14692 = vst [vmem:[#allocation69_spill] sm:$0xff] %v11187_v31  ;;  %14694 = vst [vmem:[#allocation17_spill] sm:$0xff] %v11191_v18  ;;  %v3178_v56 = vcombine.low %v11179_v60, %v11195_v44 }
 0x71c   : > { %14695 = vst [vmem:[#allocation70_spill] sm:$0xff] %v11195_v44  ;;  %2956 = vrot.lane.b32.xlu0 %v14696_v54, %s9242_s29  ;;  %2952 = vrot.lane.b32.xlu1 %v14697_v38, %s9242_s29  ;;  %14704 = vst [vmem:[#allocation73_spill] sm:$0xff] %v11223_v12 }
 0x71d   : > { %v11214_v42 = vrot.slane %v3178_v56, %v9595_v47 }
 0x71e   : > { %v11203_v35 = vpop.permute.xlu0 %2730  ;;  %v11205_v0 = vpop.permute.xlu1 %2726 }
 0x71f   : > { %14698 = vst [vmem:[#allocation39_spill] sm:$0xff] %v11203_v35  ;;  %14699 = vst [vmem:[#allocation37_spill] sm:$0xff] %v11205_v0  ;;  %v3194_v31 = vcombine.low %v11191_v18, %v11203_v35  ;;  %v3226_v56 = vcombine.low %v11223_v12, %v11214_v42 }
 0x720   : > { %2930 = vrot.lane.b32.xlu0 %v10922_v63, %s9242_s29  ;;  %2960 = vrot.lane.b32.xlu1 %v14700_v9, %s9242_s29  ;;  %14701 = vst [vmem:[#allocation15_spill] sm:$0xff] %v11214_v42 }
 0x721   : > { %v11234_v43 = vrot.slane %v3194_v31, %v9595_v47  ;;  %v11250_v12 = vrot.slane %v3226_v56, %v9790_v51 }
 0x722   : > { %v11218_v60 = vpop.permute.xlu0 %2756  ;;  %v11220_v44 = vpop.permute.xlu1 %2734 }
 0x723   : > { %14702 = vst [vmem:[#allocation71_spill] sm:$0xff] %v11218_v60  ;;  %14703 = vst [vmem:[#allocation72_spill] sm:$0xff] %v11220_v44  ;;  %v3210_v29 = vcombine.low %v11205_v0, %v11220_v44  ;;  %v3451_v44 = vcombine.high %v10791_v6, %v14673_v62  ;;  %v3041_v62 = vrot.slane %v3027_v45, %v9595_v47 }
 0x724   : > { %2938 = vrot.lane.b32.xlu0 %v10890_v57, %s9242_s29  ;;  %2934 = vrot.lane.b32.xlu1 %v10892_v52, %s9242_s29  ;;  %14705 = vst [vmem:[#allocation74_spill] sm:$0xff] %v11234_v43  ;;  %14709 = vst [vmem:[#allocation78_spill] sm:$0xff] %v11250_v12 }
 0x725   : > { %v11237_v18 = vrot.slane %v3210_v29, %v9595_v47 }
 0x726   : > { %v11239_v14 = vpop.permute.xlu0 %2764  ;;  %v11241_v35 = vpop.permute.xlu1 %2760 }
 0x727   : > { %14706 = vst [vmem:[#allocation75_spill] sm:$0xff] %v11237_v18  ;;  %14707 = vst [vmem:[#allocation76_spill] sm:$0xff] %v11239_v14  ;;  %v3258_v0 = vcombine.low %v11234_v43, %v11237_v18  ;;  %v14713_v43 = vld [vmem:[#allocation24_spill] sm:$0xff]  ;;  %v3043_v18 = vcombine.high %v10753_v20, %v10757_v61  ;;  %v3435_v61 = vcombine.high %v10775_v55, %v10777_v13 }
 0x728   : > { %14708 = vst [vmem:[#allocation77_spill] sm:$0xff] %v11241_v35  ;;  %2946 = vrot.lane.b32.xlu0 %v10894_v27, %s9242_s29  ;;  %2942 = vrot.lane.b32.xlu1 %v10852_v46, %s9242_s29  ;;  %v14714_v27 = vld [vmem:[#allocation35_spill] sm:$0xff]  ;;  %v3091_v13 = vcombine.high %v10814_v39, %v10840_v15  ;;  %v3499_v39 = vcombine.high %v10970_v23, %v10947_v8 }
 0x729   : > { %v11253_v31 = vrot.slane %v3258_v0, %v9790_v51  ;;  %v3057_v20 = vrot.slane %v3043_v18, %v9595_v47  ;;  %v3449_v45 = vrot.slane %v3435_v61, %v9595_v47  ;;  %v5083_v23 = vcombine.high %v14687_v5, %v14693_v53 }
 0x72a   : > { %v11255_v29 = vpop.permute.xlu0 %2772  ;;  %v11257_v42 = vpop.permute.xlu1 %2768 }
 0x72b   : > { %14710 = vst [vmem:[#allocation79_spill] sm:$0xff] %v11253_v31  ;;  %14711 = vst [vmem:[#allocation80_spill] sm:$0xff] %v11255_v29  ;;  %v4538_v0 = vcombine.low %v11241_v35, %v11257_v42  ;;  %v4522_v31 = vcombine.low %v11218_v60, %v11239_v14  ;;  %v14717_v35 = vld [vmem:[#allocation38_spill] sm:$0xff]  ;;  %v3465_v60 = vrot.slane %v3451_v44, %v9595_v47 }
 0x72c   : > { %14712 = vst [vmem:[#allocation81_spill] sm:$0xff] %v11257_v42  ;;  %2954 = vrot.lane.b32.xlu0 %v14713_v43, %s9242_s29  ;;  %2950 = vrot.lane.b32.xlu1 %v14714_v27, %s9242_s29  ;;  %v4675_v44 = vcombine.high %v10818_v49, %v10803_v41  ;;  %v4659_v41 = vcombine.high %v10801_v19, %v10773_v16 }
 0x72d   : > { %v11287_v11 = vrot.slane %v4538_v0, %v9595_v47  ;;  %v11298_v18 = vrot.slane %v4522_v31, %v9595_v47  ;;  %v3106_v0 = vcombine.low %v3041_v62, %v3057_v20  ;;  %v3515_v61 = vcombine.high %v3449_v45, %v3465_v60 }
 0x72e   : > { %v11269_v56 = vpop.permute.xlu0 %2780  ;;  %v11275_v12 = vpop.permute.xlu1 %2776  ;;  %v3483_v49 = vcombine.high %v14675_v7, %v14676_v59  ;;  %v11347_v8 = vrot.slane %v4675_v44, %v9595_v47  ;;  %v3859_v59 = vcombine.high %v10892_v52, %v10852_v46  ;;  %v5067_v44 = vcombine.high %v10914_v3, %v10876_v21 }
 0x72f   : > { %14715 = vst [vmem:[#allocation24_spill] sm:$0xff] %v11269_v56  ;;  %14716 = vst [vmem:[#allocation35_spill] sm:$0xff] %v11275_v12  ;;  %v4554_v58 = vcombine.low %v11255_v29, %v11269_v56  ;;  %v3107_v29 = vcombine.high %v3041_v62, %v3057_v20  ;;  %v4586_v31 = vcombine.low %v11298_v18, %v11287_v11 }
 0x730   : > { %2980 = vrot.lane.b32.xlu0 %v10914_v3, %s9244_s7  ;;  %2958 = vrot.lane.b32.xlu1 %v14717_v35, %s9242_s29  ;;  %v3514_v20 = vcombine.low %v3449_v45, %v3465_v60  ;;  %v11338_v60 = vrot.slane %v3091_v13, %v9790_v51  ;;  %v11341_v16 = vrot.slane %v3106_v0, %v9790_v51  ;;  %s8331_s29 = sshll.u32 %s240_s26, 4  ;;  %s14239_s29 = int_to_ptr.vmem [resolvable:$true] %s8331_s29 }
 0x731   : > { %v11314_v56 = vrot.slane %v4554_v58, %v9595_v47  ;;  %v11344_v19 = vrot.slane %v3107_v29, %v9790_v51  ;;  %v11364_v29 = vrot.slane %v3499_v39, %v9790_v51  ;;  %v11376_v45 = vrot.slane %v3483_v49, %v9595_v47 }
 0x732   : > { %v11291_v6 = vpop.permute.xlu0 %2754  ;;  %v11295_v14 = vpop.permute.xlu1 %2784  ;;  %v11367_v0 = vrot.slane %v3514_v20, %v9790_v51  ;;  %v4707_v20 = vcombine.high %v10822_v22, %v10789_v30  ;;  %v4691_v3 = vcombine.high %v10856_v37, %v10820_v32  ;;  %v11400_v49 = vrot.slane %v5083_v23, %v9595_v47 }
 0x733   : > { %14718 = vst [vmem:[#allocation38_spill] sm:$0xff] %v11291_v6  ;;  %v4570_v55 = vcombine.low %v11275_v12, %v11295_v14  ;;  %14721 = vst [vmem:[#allocation84_spill] sm:$0xff] %v11344_v19  ;;  %v11422_v39 = vrot.slane %v5067_v44, %v9595_v47 }
 0x734   : > { %2988 = vrot.lane.b32.xlu0 %v10876_v21, %s9244_s7  ;;  %2984 = vrot.lane.b32.xlu1 %v14687_v5, %s9244_s7  ;;  %14726 = vst [vmem:[#allocation89_spill] sm:$0xff] %v11364_v29  ;;  %14727 = vst [vmem:[#allocation90_spill] sm:$0xff] %v11367_v0  ;;  %v11370_v5 = vrot.slane %v3515_v61, %v9790_v51  ;;  %v11413_v21 = vrot.slane %v3859_v59, %v9595_v47  ;;  %v14756_v0 = vld [vmem:[#allocation65_spill] sm:$0xff] }
 0x735   : > { %v11317_v42 = vrot.slane %v4570_v55, %v9595_v47  ;;  %v3467_v55 = vcombine.high %v14672_v10, %v14674_v50  ;;  %v11352_v10 = vrot.slane %v4586_v31, %v9790_v51  ;;  %14729 = vst [vmem:[#allocation92_spill] sm:$0xff] %v11376_v45  ;;  %14731 = vst [vmem:[#allocation94_spill] sm:$0xff] %v11400_v49 }
 0x736   : > { %v11319_v15 = vpop.permute.xlu0 %2762  ;;  %v11323_v62 = vpop.permute.xlu1 %2758  ;;  %14728 = vst [vmem:[#allocation91_spill] sm:$0xff] %v11370_v5  ;;  %v5099_v31 = vcombine.high %v14690_v25, %v14696_v54  ;;  %14733 = vst [vmem:[#allocation96_spill] sm:$0xff] %v11413_v21  ;;  %v5115_v59 = vcombine.high %v14697_v38, %v14700_v9  ;;  %v11441_v44 = vrot.slane %v4691_v3, %v9595_v47 }
 0x737   : > { %14719 = vst [vmem:[#allocation82_spill] sm:$0xff] %v11319_v15  ;;  %14720 = vst [vmem:[#allocation83_spill] sm:$0xff] %v11323_v62  ;;  %v4618_v58 = vcombine.low %v11314_v56, %v11317_v42  ;;  %v11389_v61 = vrot.slane %v3467_v55, %v9595_v47  ;;  %v14745_v55 = vld [vmem:[#allocation47_spill] sm:$0xff] }
 0x738   : > { %2996 = vrot.lane.b32.xlu0 %v14690_v25, %s9244_s7  ;;  %2992 = vrot.lane.b32.xlu1 %v14693_v53, %s9244_s7  ;;  %14722 = vst [vmem:[#allocation85_spill] sm:$0xff] %v11352_v10  ;;  %v11373_v53 = vrot.slane %v4659_v41, %v9595_v47  ;;  %v3843_v41 = vcombine.high %v10922_v63, %v10890_v57  ;;  %14735 = vst [vmem:[#allocation98_spill] sm:$0xff] %v11422_v39 }
 0x739   : > { %v11355_v50 = vrot.slane %v4618_v58, %v9790_v51  ;;  %14730 = vst [vmem:[#allocation93_spill] sm:$0xff] %v11389_v61  ;;  %v3298_v58 = vcombine.low %v11291_v6, %v11319_v15  ;;  %v11429_v25 = vrot.slane %v4707_v20, %v9595_v47  ;;  %14738 = vst [vmem:[#allocation101_spill] sm:$0xff] %v11441_v44  ;;  %v14773_v6 = vld [vmem:[#allocation39_spill] sm:$0xff]  ;;  %v14774_v15 = vld [vmem:[#allocation17_spill] sm:$0xff] }
 0x73a   : > { %v11357_v7 = vpop.permute.xlu0 %2770  ;;  %v11361_v13 = vpop.permute.xlu1 %2766  ;;  %v11436_v23 = vrot.slane %v3843_v41, %v9595_v47  ;;  %v4403_v39 = vcombine.high %v11121_v24, %v11129_v28  ;;  %v14743_v41 = vld [vmem:[#allocation40_spill] sm:$0xff]  ;;  %v4435_v40 = vcombine.high %v14745_v55, %v14744_v4  ;;  %v11481_v28 = vrot.slane %v5115_v59, %v9595_v47  ;;  %v14747_v24 = vld [vmem:[#allocation67_spill] sm:$0xff]  ;;  %v14749_v55 = vld [vmem:[#allocation45_spill] sm:$0xff] }
 0x73b   : > { %14723 = vst [vmem:[#allocation86_spill] sm:$0xff] %v11355_v50  ;;  %14724 = vst [vmem:[#allocation87_spill] sm:$0xff] %v11357_v7  ;;  %v3314_v30 = vcombine.low %v11323_v62, %v11361_v13  ;;  %v4387_v49 = vcombine.high %v14743_v41, %v11123_v48  ;;  %v14750_v59 = vld [vmem:[#allocation16_spill] sm:$0xff]  ;;  %v3891_v4 = vcombine.high %v14714_v27, %v14717_v35 }
 0x73c   : > { %14725 = vst [vmem:[#allocation88_spill] sm:$0xff] %v11361_v13  ;;  %3004 = vrot.lane.b32.xlu0 %v14696_v54, %s9244_s7  ;;  %3000 = vrot.lane.b32.xlu1 %v14697_v38, %s9244_s7  ;;  %14736 = vst [vmem:[#allocation99_spill] sm:$0xff] %v11429_v25  ;;  %v11453_v38 = vrot.slane %v5099_v31, %v9595_v47  ;;  %v11468_v31 = vrot.slane %v3298_v58, %v9595_v47  ;;  %v14748_v58 = vld [vmem:[#allocation66_spill] sm:$0xff] }
 0x73d   : > { %14737 = vst [vmem:[#allocation100_spill] sm:$0xff] %v11436_v23  ;;  %v11446_v20 = vrot.slane %v3314_v30, %v9595_v47  ;;  %v14742_v30 = vld [vmem:[#allocation20_spill] sm:$0xff]  ;;  %v4483_v21 = vcombine.high %v14748_v58, %v14747_v24  ;;  %v11522_v24 = vrot.slane %v4435_v40, %v9595_v47  ;;  %v14760_v23 = vld [vmem:[#allocation69_spill] sm:$0xff] }
 0x73e   : > { %v11404_v22 = vpop.permute.xlu0 %2778  ;;  %v11415_v32 = vpop.permute.xlu1 %2774  ;;  %14740 = vst [vmem:[#allocation103_spill] sm:$0xff] %v11453_v38  ;;  %14746 = vst [vmem:[#allocation20_spill] sm:$0xff] %v11481_v28  ;;  %v14753_v58 = vld [vmem:[#allocation36_spill] sm:$0xff]  ;;  %v14763_v28 = vld [vmem:[#allocation37_spill] sm:$0xff] }
 0x73f   : > { %14732 = vst [vmem:[#allocation95_spill] sm:$0xff] %v11404_v22  ;;  %14734 = vst [vmem:[#allocation97_spill] sm:$0xff] %v11415_v32  ;;  %v3330_v54 = vcombine.low %v11357_v7, %v11404_v22  ;;  %v3875_v36 = vcombine.high %v14753_v58, %v14713_v43  ;;  %v14764_v38 = vld [vmem:[#allocation75_spill] sm:$0xff]  ;;  %v3195_v7 = vcombine.high %v14774_v15, %v14773_v6  ;;  %v14777_v22 = vld [vmem:[#allocation18_spill] sm:$0xff] }
 0x740   : > { %2978 = vrot.lane.b32.xlu0 %v10922_v63, %s9244_s7  ;;  %3008 = vrot.lane.b32.xlu1 %v14700_v9, %s9244_s7  ;;  %v14782_v6 = vld [vmem:[#allocation28_spill] sm:$0xff]  ;;  %v14783_v15 = vld [vmem:[#allocation63_spill] sm:$0xff] }
 0x741   : > { %v11490_v3 = vrot.slane %v3330_v54, %v9595_v47  ;;  %v11508_v54 = vrot.slane %v4403_v39, %v9595_v47  ;;  %v4515_v39 = vcombine.high %v14761_v17, %v14760_v23  ;;  %v11559_v23 = vrot.slane %v3891_v4, %v9595_v47 }
 0x742   : > { %v11450_v37 = vpop.permute.xlu0 %2820  ;;  %v11461_v63 = vpop.permute.xlu1 %2782 }
 0x743   : > { %14739 = vst [vmem:[#allocation102_spill] sm:$0xff] %v11450_v37  ;;  %14741 = vst [vmem:[#allocation104_spill] sm:$0xff] %v11461_v63  ;;  %v3346_v9 = vcombine.low %v11415_v32, %v11461_v63 }
 0x744   : > { %2986 = vrot.lane.b32.xlu0 %v10890_v57, %s9244_s7  ;;  %2982 = vrot.lane.b32.xlu1 %v10892_v52, %s9244_s7  ;;  %v3362_v57 = vcombine.low %v11468_v31, %v11446_v20  ;;  %v4419_v52 = vcombine.high %v14750_v59, %v14749_v55  ;;  %v11519_v59 = vrot.slane %v4387_v49, %v9595_v47 }
 0x745   : > { %v11493_v48 = vrot.slane %v3346_v9, %v9595_v47  ;;  %v14755_v9 = vld [vmem:[#allocation34_spill] sm:$0xff]  ;;  %14768 = vst [vmem:[#allocation16_spill] sm:$0xff] %v11559_v23 }
 0x746   : > { %v11495_v41 = vpop.permute.xlu0 %2828  ;;  %v11505_v5 = vpop.permute.xlu1 %2824  ;;  %v4451_v45 = vcombine.high %v14756_v0, %v14755_v9  ;;  %v11531_v9 = vrot.slane %v4483_v21, %v9790_v51  ;;  %v11544_v61 = vrot.slane %v4419_v52, %v9595_v47  ;;  %v14762_v0 = vld [vmem:[#allocation72_spill] sm:$0xff]  ;;  %v14765_v21 = vld [vmem:[#allocation74_spill] sm:$0xff]  ;;  %v4466_v19 = vcombine.low %v11519_v59, %v11508_v54 }
 0x747   : > { %14754 = vst [vmem:[#allocation40_spill] sm:$0xff] %v11505_v5  ;;  %v3394_v55 = vcombine.low %v11490_v3, %v11493_v48  ;;  %v3259_v25 = vcombine.high %v14765_v21, %v14764_v38  ;;  %v14769_v38 = vld [vmem:[#allocation70_spill] sm:$0xff]  ;;  %v14771_v21 = vld [vmem:[#allocation15_spill] sm:$0xff] }
 0x748   : > { %2994 = vrot.lane.b32.xlu0 %v14753_v58, %s9244_s7  ;;  %2990 = vrot.lane.b32.xlu1 %v10852_v46, %s9244_s7  ;;  %v11534_v58 = vrot.slane %v3362_v57, %v9790_v51  ;;  %v3211_v46 = vcombine.high %v14763_v28, %v14762_v0  ;;  %v11551_v57 = vrot.slane %v3875_v36, %v9595_v47  ;;  %v14770_v28 = vld [vmem:[#allocation68_spill] sm:$0xff] }
 0x749   : > { %v11537_v49 = vrot.slane %v3394_v55, %v9790_v51  ;;  %v4465_v55 = vrot.slane %v4451_v45, %v9790_v51  ;;  %v4498_v36 = vcombine.low %v11544_v61, %v11522_v24  ;;  %v3179_v0 = vcombine.high %v14770_v28, %v14769_v38  ;;  %v14772_v45 = vld [vmem:[#allocation73_spill] sm:$0xff]  ;;  %v14779_v28 = vld [vmem:[#allocation23_spill] sm:$0xff] }
 0x74a   : > { %14757 = vst [vmem:[#allocation64_spill] sm:$0xff] %v11534_v58  ;;  %v11539_v40 = vpop.permute.xlu0 %2836  ;;  %14766 = vst [vmem:[#allocation66_spill] sm:$0xff] %v11551_v57  ;;  %v11553_v44 = vpop.permute.xlu1 %2832  ;;  %v3227_v17 = vcombine.high %v14772_v45, %v14771_v21  ;;  %v14780_v21 = vld [vmem:[#allocation30_spill] sm:$0xff]  ;;  %v11592_v32 = vrot.slane %v3211_v46, %v9595_v47  ;;  %v14789_v46 = vld [vmem:[#allocation53_spill] sm:$0xff] }
 0x74b   : > { %14758 = vst [vmem:[#allocation47_spill] sm:$0xff] %v11537_v49  ;;  %14759 = vst [vmem:[#allocation67_spill] sm:$0xff] %v11539_v40  ;;  %v4810_v4 = vcombine.low %v11505_v5, %v11553_v44  ;;  %v4516_v38 = vcombine.low %v4465_v55, %v11531_v9  ;;  %v14781_v45 = vcombine.high %v14779_v28, %v14780_v21 }
 0x74c   : > { %14767 = vst [vmem:[#allocation45_spill] sm:$0xff] %v11553_v44  ;;  %3002 = vrot.lane.b32.xlu0 %v14713_v43, %s9244_s7  ;;  %2998 = vrot.lane.b32.xlu1 %v14714_v27, %s9244_s7  ;;  %v14776_v43 = vld [vmem:[#allocation46_spill] sm:$0xff]  ;;  %v3163_v27 = vcombine.high %v14783_v15, %v14782_v6  ;;  %v3273_v5 = vrot.slane %v3259_v25, %v9790_v51  ;;  %v14790_v6 = vld [vmem:[#allocation57_spill] sm:$0xff] }
 0x74d   : > { %v14778_v62 = vcombine.high %v14776_v43, %v14777_v22  ;;  %v11587_v29 = vrot.slane %v14781_v45, %v9790_v51  ;;  %v14785_v22 = vld [vmem:[#allocation79_spill] sm:$0xff]  ;;  %v11600_v43 = vrot.slane %v4466_v19, %v9790_v51  ;;  %v4794_v45 = vcombine.low %v11450_v37, %v11495_v41 }
 0x74e   : > { %v11577_v52 = vpop.permute.xlu0 %2844  ;;  %v11595_v44 = vpop.permute.xlu1 %2840  ;;  %v3155_v15 = vcombine.high %v14790_v6, %v14789_v46  ;;  %v11610_v25 = vrot.slane %v4498_v36, %v9790_v51  ;;  %v11613_v12 = vrot.slane %v3179_v0, %v9595_v47  ;;  %v3241_v19 = vrot.slane %v3227_v17, %v9790_v51  ;;  %v14792_v36 = vld [vmem:[#allocation44_spill] sm:$0xff]  ;;  %v14793_v6 = vld [vmem:[#allocation42_spill] sm:$0xff] }
 0x74f   : > { %14775 = vst [vmem:[#allocation36_spill] sm:$0xff] %v11577_v52  ;;  %v8715_v13 = vpack.i.bf16 %v4515_v39, %v14778_v62  ;;  %14784 = vst [vmem:[#allocation34_spill] sm:$0xff] %v11595_v44  ;;  %v14786_v62 = vld [vmem:[#allocation78_spill] sm:$0xff]  ;;  %v11622_v21 = vrot.slane %v4810_v4, %v9595_v47  ;;  %v14794_v0 = vcombine.low %v14792_v36, %v14793_v6 }
 0x750   : > { %v3291_v39 = vcombine.high %v14786_v62, %v14785_v22  ;;  %v11617_v22 = vrot.slane %v3195_v7, %v9595_v47  ;;  %3006 = vrot.lane.b32.xlu1 %v14717_v35, %s9244_s7  ;;  %v4517_v17 = vcombine.high %v4465_v55, %v11531_v9  ;;  %v11633_v7 = vrot.slane %v3163_v27, %v9595_v47  ;;  %v14797_v9 = vld [vmem:[#allocation48_spill] sm:$0xff]  ;;  %v14798_v55 = vld [vmem:[#allocation27_spill] sm:$0xff] }
 0x751   : > { %8716 = vrot.lane.b32.xlu0 %v8715_v13, %s9249_s10  ;;  %14791 = vst [vmem:[#allocation65_spill] sm:$0xff] %v11622_v21  ;;  %v4826_v13 = vcombine.low %v11539_v40, %v11577_v52  ;;  %v8725_v62 = vpack.i.bf16 %v4516_v38, %v14794_v0  ;;  %v3292_v28 = vcombine.low %v3241_v19, %v3273_v5 }
 0x752   : > { %v11626_v46 = vpop.permute.xlu0 %2868  ;;  %v3274_v35 = vcombine.low %v11617_v22, %v11592_v32  ;;  %v11637_v63 = vpop.permute.xlu1 %2848  ;;  %v8720_v4 = vpack.i.bf16 %v3291_v39, %v3155_v15  ;;  %v11642_v52 = vrot.slane %v4794_v45, %v9595_v47  ;;  %v14799_v27 = vcombine.low %v14797_v9, %v14798_v55 }
 0x753   : > { %14795 = vst [vmem:[#allocation72_spill] sm:$0xff] %v11637_v63  ;;  %v4842_v38 = vcombine.low %v11595_v44, %v11637_v63  ;;  %v3242_v39 = vcombine.low %v11633_v7, %v11613_v12  ;;  %v3156_v45 = vcombine.low %v11338_v60, %v11587_v29 }
 0x754   : > { %14796 = vst [vmem:[#allocation37_spill] sm:$0xff] %v11642_v52  ;;  %v11651_v0 = vrot.slane %v14799_v27, %v9790_v51  ;;  %8721 = vrot.lane.b32.xlu1 %v8720_v4, %s9249_s10  ;;  %v4858_v40 = vcombine.low %v11642_v52, %v11622_v21  ;;  %v11665_v27 = vrot.slane %v4826_v13, %v9595_v47 }
 0x755   : > { %8726 = vrot.lane.b32.xlu0 %v8725_v62, %s9246_s13  ;;  %v4518_v62 = vcombine.low %v11600_v43, %v11610_v25  ;;  %v11668_v44 = vrot.slane %v4842_v38, %v9595_v47  ;;  %v14800_v4 = vcombine.high %v14792_v36, %v14793_v6  ;;  %v11676_v23 = vrot.slane %v3274_v35, %v9790_v51 }
 0x756   : > { %v11670_v63 = vpop.permute.xlu0 %2876  ;;  %v11678_v57 = vpop.permute.xlu1 %2872  ;;  %v8730_v37 = vpack.i.bf16 %v3292_v28, %v3156_v45  ;;  %v3157_v52 = vcombine.high %v11338_v60, %v11587_v29  ;;  %v3293_v13 = vcombine.high %v3241_v19, %v3273_v5  ;;  %v3158_v21 = vcombine.low %v11341_v16, %v11651_v0  ;;  %v14802_v19 = vld [vmem:[#allocation54_spill] sm:$0xff] }
 0x757   : > { %v8735_v15 = vpack.i.bf16 %v4517_v17, %v14800_v4  ;;  %v4890_v38 = vcombine.low %v11665_v27, %v11668_v44  ;;  %v14801_v36 = vcombine.high %v10959_v2, %v10934_v1  ;;  %v4499_v60 = vcombine.high %v11544_v61, %v11522_v24  ;;  %v14803_v17 = vld [vmem:[#allocation58_spill] sm:$0xff]  ;;  %v14805_v61 = vld [vmem:[#allocation43_spill] sm:$0xff]  ;;  %v14806_v24 = vld [vmem:[#allocation41_spill] sm:$0xff] }
 0x758   : > { %v11698_v29 = vrot.slane %v3242_v39, %v9790_v51  ;;  %v4619_v5 = vcombine.high %v11314_v56, %v11317_v42  ;;  %8731 = vrot.lane.b32.xlu1 %v8730_v37, %s9246_s13  ;;  %v4787_v35 = vcombine.high %v14803_v17, %v14802_v19  ;;  %v14807_v39 = vcombine.low %v14805_v61, %v14806_v24  ;;  %v14843_v17 = vld [vmem:[#allocation38_spill] sm:$0xff] }
 0x759   : > { %8736 = vrot.lane.b32.xlu0 %v8735_v15, %s9250_s8  ;;  %v11693_v28 = vrot.slane %v14801_v36, %v9790_v51  ;;  %v11706_v15 = vrot.slane %v4858_v40, %v9790_v51  ;;  %v11709_v2 = vrot.slane %v4890_v38, %v9790_v51  ;;  %v4651_v42 = vcombine.high %v11352_v10, %v11355_v50  ;;  %v14821_v36 = vld [vmem:[#allocation80_spill] sm:$0xff]  ;;  %v14839_v50 = vld [vmem:[#allocation87_spill] sm:$0xff] }
 0x75a   : > { %v11711_v1 = vpop.permute.xlu0 %2884  ;;  %v8745_v45 = vpack.i.bf16 %v4518_v62, %v14807_v39  ;;  %v4467_v56 = vcombine.high %v11519_v59, %v11508_v54  ;;  %v4587_v37 = vcombine.high %v11298_v18, %v11287_v11  ;;  %v11722_v40 = vpop.permute.xlu1 %2880  ;;  %v8740_v4 = vpack.i.bf16 %v3293_v13, %v3157_v52  ;;  %v14808_v62 = vld [vmem:[#allocation55_spill] sm:$0xff]  ;;  %v14809_v39 = vld [vmem:[#allocation60_spill] sm:$0xff] }
 0x75b   : > { %14804 = vst [vmem:[#allocation75_spill] sm:$0xff] %v11711_v1  ;;  %v3294_v38 = vcombine.low %v11698_v29, %v11676_v23  ;;  %v3563_v6 = vcombine.high %v14809_v39, %v14808_v62  ;;  %v14810_v54 = vcombine.high %v14742_v30, %v10909_v34  ;;  %v14811_v11 = vcombine.high %v10950_v26, %v10912_v33 }
 0x75c   : > { %v11744_v52 = vrot.slane %v4499_v60, %v9790_v51  ;;  %v11747_v13 = vrot.slane %v4619_v5, %v9790_v51  ;;  %8741 = vrot.lane.b32.xlu1 %v8740_v4, %s9250_s8  ;;  %v14812_v34 = vcombine.high %v14797_v9, %v14798_v55  ;;  %v14813_v33 = vcombine.low %v11373_v53, %v11347_v8 }
 0x75d   : > { %8746 = vrot.lane.b32.xlu0 %v8745_v45, %s9247_s14  ;;  %v11735_v59 = vrot.slane %v14810_v54, %v9790_v51  ;;  %v11741_v18 = vrot.slane %v14811_v11, %v9790_v51  ;;  %v3395_v60 = vcombine.high %v11490_v3, %v11493_v48  ;;  %v4946_v5 = vcombine.low %v11678_v57, %v11722_v40 }
 0x75e   : > { %v11754_v30 = vrot.slane %v14812_v34, %v9790_v51  ;;  %v11760_v26 = vrot.slane %v14813_v33, %v9790_v51  ;;  %v11766_v45 = vpop.permute.xlu0 %2892  ;;  %v8755_v4 = vpack.i.bf16 %v4787_v35, %v4651_v42  ;;  %v3427_v9 = vcombine.high %v11534_v58, %v11537_v49  ;;  %v11776_v11 = vpop.permute.xlu1 %2888  ;;  %v14818_v33 = vld [vmem:[#allocation81_spill] sm:$0xff] }
 0x75f   : > { %14814 = vst [vmem:[#allocation74_spill] sm:$0xff] %v11766_v45  ;;  %v11771_v55 = vrot.slane %v4467_v56, %v9790_v51  ;;  %v11774_v54 = vrot.slane %v4587_v37, %v9790_v51  ;;  %14815 = vst [vmem:[#allocation70_spill] sm:$0xff] %v11776_v11  ;;  %v8750_v34 = vpack.i.bf16 %v3294_v38, %v3158_v21  ;;  %v14816_v37 = vld [vmem:[#allocation35_spill] sm:$0xff] }
 0x760   : > { %v4519_v3 = vcombine.high %v11600_v43, %v11610_v25  ;;  %v3363_v48 = vcombine.high %v11468_v31, %v11446_v20  ;;  %v4930_v35 = vcombine.low %v11626_v46, %v11670_v63  ;;  %v4788_v42 = vcombine.low %v11693_v28, %v11735_v59 }
 0x761   : > { %8756 = vrot.lane.b32.xlu0 %v8755_v4, %s9249_s10  ;;  %v3275_v21 = vcombine.high %v11617_v22, %v11592_v32  ;;  %v4571_v43 = vcombine.high %v14816_v37, %v11295_v14  ;;  %8751 = vrot.lane.b32.xlu1 %v8750_v34, %s9247_s14  ;;  %v4652_v20 = vcombine.low %v11774_v54, %v11747_v13  ;;  %v14819_v4 = vld [vmem:[#allocation77_spill] sm:$0xff]  ;;  %v14820_v37 = vld [vmem:[#allocation24_spill] sm:$0xff] }
 0x762   : > { %v4520_v31 = vcombine.low %v11771_v55, %v11744_v52  ;;  %v11799_v25 = vrot.slane %v3395_v60, %v9790_v51  ;;  %v11802_v38 = vrot.slane %v4946_v5, %v9595_v47  ;;  %v4962_v22 = vcombine.low %v11711_v1, %v11766_v45  ;;  %v11806_v32 = vpop.permute.xlu0 %2818  ;;  %v11812_v49 = vpop.permute.xlu1 %2896 }
 0x763   : > { %14817 = vst [vmem:[#allocation68_spill] sm:$0xff] %v11806_v32  ;;  %v8765_v14 = vpack.i.bf16 %v3563_v6, %v3427_v9  ;;  %v4539_v34 = vcombine.high %v14819_v4, %v14818_v33  ;;  %v4555_v56 = vcombine.high %v14821_v36, %v14820_v37  ;;  %14822 = vst [vmem:[#allocation15_spill] sm:$0xff] %v11812_v49 }
 0x764   : > { %v14823_v60 = vcombine.high %v14805_v61, %v14806_v24  ;;  %v3295_v5 = vcombine.high %v11698_v29, %v11676_v23  ;;  %v3243_v62 = vcombine.high %v11633_v7, %v11613_v12  ;;  %v11822_v6 = vrot.slane %v3363_v48, %v9790_v51  ;;  %v14824_v24 = vld [vmem:[#allocation76_spill] sm:$0xff] }
 0x765   : > { %v11825_v9 = vrot.slane %v4930_v35, %v9595_v47  ;;  %v4978_v36 = vcombine.low %v11776_v11, %v11812_v49  ;;  %8766 = vrot.lane.b32.xlu0 %v8765_v14, %s9249_s10  ;;  %v11831_v61 = vrot.slane %v3275_v21, %v9790_v51  ;;  %v11836_v29 = vrot.slane %v4571_v43, %v9595_v47 }
 0x766   : > { %v8760_v58 = vpack.i.bf16 %v4519_v3, %v14823_v60  ;;  %v14825_v3 = vld [vmem:[#allocation71_spill] sm:$0xff]  ;;  %v8775_v12 = vpack.i.bf16 %v4788_v42, %v4652_v20  ;;  %v11842_v48 = vrot.slane %v4962_v22, %v9595_v47  ;;  %v11847_v21 = vpop.permute.xlu0 %2826  ;;  %v3428_v14 = vcombine.low %v11822_v6, %v11799_v25  ;;  %v14828_v42 = vld [vmem:[#allocation104_spill] sm:$0xff]  ;;  %v14829_v20 = vld [vmem:[#allocation97_spill] sm:$0xff]  ;;  %v11859_v4 = vpop.permute.xlu1 %2822 }
 0x767   : > { %v4523_v23 = vcombine.high %v14825_v3, %v14824_v24  ;;  %v4994_v7 = vcombine.low %v11825_v9, %v11802_v38  ;;  %v11845_v35 = vrot.slane %v4978_v36, %v9595_v47  ;;  %v11852_v43 = vrot.slane %v4539_v34, %v9595_v47  ;;  %14830 = vst [vmem:[#allocation17_spill] sm:$0xff] %v11859_v4  ;;  %v14832_v34 = vld [vmem:[#allocation22_spill] sm:$0xff] }
 0x768   : > { %8761 = vrot.lane.b32.xlu1 %v8760_v58, %s9251_s30  ;;  %14826 = vst [vmem:[#allocation73_spill] sm:$0xff] %v11842_v48  ;;  %v11855_v58 = vrot.slane %v4555_v56, %v9595_v47  ;;  %v3347_v33 = vcombine.high %v14829_v20, %v14828_v42  ;;  %v14831_v22 = vcombine.high %v11341_v16, %v11651_v0  ;;  %v14833_v56 = vld [vmem:[#allocation21_spill] sm:$0xff]  ;;  %v14836_v0 = vld [vmem:[#allocation88_spill] sm:$0xff] }
 0x769   : > { %14827 = vst [vmem:[#allocation39_spill] sm:$0xff] %v11845_v35  ;;  %v11865_v60 = vrot.slane %v3243_v62, %v9790_v51  ;;  %v5026_v36 = vcombine.low %v11842_v48, %v11845_v35  ;;  %8776 = vrot.lane.b32.xlu0 %v8775_v12, %s9246_s13  ;;  %v14834_v24 = vcombine.low %v14832_v34, %v14833_v56  ;;  %v14835_v42 = vld [vmem:[#allocation89_spill] sm:$0xff]  ;;  %v14837_v62 = vld [vmem:[#allocation83_spill] sm:$0xff]  ;;  %v14850_v48 = vld [vmem:[#allocation92_spill] sm:$0xff] }
 0x76a   : > { %v8770_v37 = vpack.i.bf16 %v3295_v5, %v14831_v22  ;;  %v3564_v20 = vcombine.low %v14835_v42, %v11741_v18  ;;  %v11876_v39 = vrot.slane %v4523_v23, %v9595_v47  ;;  %v4634_v16 = vcombine.low %v11855_v58, %v11836_v29  ;;  %v14838_v22 = vld [vmem:[#allocation95_spill] sm:$0xff] }
 0x76b   : > { %v8780_v3 = vpack.i.bf16 %v4520_v31, %v14834_v24  ;;  %v3315_v5 = vcombine.high %v14837_v62, %v14836_v0  ;;  %v3331_v10 = vcombine.high %v14839_v50, %v14838_v22  ;;  %v11886_v12 = vrot.slane %v4994_v7, %v9790_v51  ;;  %v11891_v24 = vpop.permute.xlu0 %2834  ;;  %v14842_v62 = vld [vmem:[#allocation82_spill] sm:$0xff]  ;;  %v11902_v7 = vpop.permute.xlu1 %2830  ;;  %v14847_v22 = vld [vmem:[#allocation99_spill] sm:$0xff] }
 0x76c   : > { %8771 = vrot.lane.b32.xlu1 %v8770_v37, %s9251_s30  ;;  %v11889_v31 = vrot.slane %v5026_v36, %v9790_v51  ;;  %v8785_v23 = vpack.i.bf16 %v3564_v20, %v3428_v14  ;;  %v4653_v19 = vcombine.high %v11774_v54, %v11747_v13  ;;  %v4602_v0 = vcombine.low %v11876_v39, %v11852_v43  ;;  %v14845_v13 = vld [vmem:[#allocation84_spill] sm:$0xff]  ;;  %v14846_v20 = vld [vmem:[#allocation101_spill] sm:$0xff] }
 0x76d   : > { %14840 = vst [vmem:[#allocation23_spill] sm:$0xff] %v11886_v12  ;;  %v3299_v50 = vcombine.high %v14843_v17, %v14842_v62  ;;  %v11900_v37 = vrot.slane %v3347_v33, %v9595_v47  ;;  %14844 = vst [vmem:[#allocation28_spill] sm:$0xff] %v11902_v7  ;;  %v3296_v36 = vcombine.low %v11865_v60, %v11831_v61  ;;  %v14849_v33 = vld [vmem:[#allocation93_spill] sm:$0xff] }
 0x76e   : > { %14841 = vst [vmem:[#allocation30_spill] sm:$0xff] %v11889_v31  ;;  %8786 = vrot.lane.b32.xlu0 %v8785_v23, %s9246_s13  ;;  %v3160_v54 = vcombine.low %v14845_v13, %v11754_v30  ;;  %v14848_v17 = vcombine.low %v14846_v20, %v14847_v22  ;;  %v14851_v35 = vcombine.low %v14849_v33, %v14850_v48 }
 0x76f   : > { %v11924_v49 = vrot.slane %v4634_v16, %v9790_v51  ;;  %v11927_v23 = vrot.slane %v3315_v5, %v9595_v47  ;;  %v3345_v14 = vrot.slane %v3331_v10, %v9595_v47  ;;  %v3586_v1 = vcombine.low %v11859_v4, %v11902_v7  ;;  %v11935_v45 = vpop.permute.xlu0 %2842  ;;  %v11949_v4 = vpop.permute.xlu1 %2838 }
 0x770   : > { %v11915_v62 = vrot.slane %v14848_v17, %v9790_v51  ;;  %v11921_v11 = vrot.slane %v14851_v35, %v9790_v51  ;;  %8781 = vrot.lane.b32.xlu1 %v8780_v3, %s9248_s20  ;;  %v3565_v17 = vcombine.high %v14835_v42, %v11741_v18  ;;  %v14852_v35 = vcombine.high %v11693_v28, %v11735_v59 }
 0x771   : > { %v4521_v5 = vcombine.high %v11771_v55, %v11744_v52  ;;  %v3429_v10 = vcombine.high %v11822_v6, %v11799_v25  ;;  %v11945_v3 = vrot.slane %v4602_v0, %v9790_v51  ;;  %v3313_v18 = vrot.slane %v3299_v50, %v9595_v47  ;;  %v14853_v52 = vld [vmem:[#allocation90_spill] sm:$0xff] }
 0x772   : > { %v8795_v16 = vpack.i.bf16 %v14852_v35, %v4653_v19  ;;  %v3410_v42 = vcombine.low %v3345_v14, %v11900_v37  ;;  %v8790_v7 = vpack.i.bf16 %v3296_v36, %v3160_v54  ;;  %v3570_v28 = vcombine.low %v11806_v32, %v11847_v21 }
 0x773   : > { %v3161_v19 = vcombine.high %v14845_v13, %v11754_v30  ;;  %v4790_v59 = vcombine.low %v11760_v26, %v11915_v62  ;;  %v3566_v55 = vcombine.low %v14853_v52, %v11921_v11  ;;  %v3378_v25 = vcombine.low %v3313_v18, %v11927_v23  ;;  %v11973_v13 = vpop.permute.xlu0 %2866 }
 0x774   : > { %8796 = vrot.lane.b32.xlu0 %v8795_v16, %s9250_s8  ;;  %8791 = vrot.lane.b32.xlu1 %v8790_v7, %s9248_s20  ;;  %v4654_v6 = vcombine.low %v11945_v3, %v11924_v49  ;;  %v11969_v30 = vrot.slane %v3586_v1, %v9595_v47  ;;  %v3602_v36 = vcombine.low %v11891_v24, %v11935_v45  ;;  %v11986_v1 = vpop.permute.xlu1 %2846 }
 0x775   : > { %v8805_v54 = vpack.i.bf16 %v3565_v17, %v3429_v10  ;;  %v14854_v7 = vcombine.high %v11373_v53, %v11347_v8  ;;  %v4635_v16 = vcombine.high %v11855_v58, %v11836_v29  ;;  %v11984_v50 = vrot.slane %v3410_v42, %v9790_v51 }
 0x776   : > { %v14855_v0 = vcombine.high %v14832_v34, %v14833_v56  ;;  %v3297_v17 = vcombine.high %v11865_v60, %v11831_v61  ;;  %v11994_v10 = vrot.slane %v3570_v28, %v9595_v47  ;;  %v3618_v8 = vcombine.low %v11949_v4, %v11986_v1  ;;  %v14858_v28 = vld [vmem:[#allocation45_spill] sm:$0xff] }
 0x777   : > { %v11979_v35 = vrot.slane %v14854_v7, %v9790_v51  ;;  %v14856_v53 = vcombine.high %v14846_v20, %v14847_v22  ;;  %v14857_v58 = vcombine.high %v14849_v33, %v14850_v48  ;;  %v4603_v61 = vcombine.high %v11876_v39, %v11852_v43  ;;  %v12022_v33 = vpop.permute.xlu0 %2874 }
 0x778   : > { %v8800_v32 = vpack.i.bf16 %v4521_v5, %v14855_v0  ;;  %8806 = vrot.lane.b32.xlu0 %v8805_v54, %s9250_s8  ;;  %v3386_v60 = vrot.slane %v3378_v25, %v9790_v51  ;;  %v3411_v56 = vcombine.high %v3345_v14, %v11900_v37  ;;  %v8815_v5 = vpack.i.bf16 %v4790_v59, %v4654_v6  ;;  %v14859_v59 = vld [vmem:[#allocation40_spill] sm:$0xff] }
 0x779   : > { %v4785_v29 = vrot.slane %v14856_v53, %v9790_v51  ;;  %v12007_v34 = vrot.slane %v14857_v58, %v9790_v51  ;;  %v3634_v20 = vcombine.low %v11994_v10, %v11969_v30  ;;  %v12017_v22 = vrot.slane %v3602_v36, %v9595_v47 }
 0x77a   : > { %8801 = vrot.lane.b32.xlu1 %v8800_v32, %s9252_s11  ;;  %v12020_v48 = vrot.slane %v3618_v8, %v9595_v47  ;;  %v5059_v39 = vcombine.high %v11886_v12, %v11889_v31  ;;  %v4649_v43 = vrot.slane %v4635_v16, %v9790_v51  ;;  %v3379_v37 = vcombine.high %v3313_v18, %v11927_v23  ;;  %v12028_v32 = vpop.permute.xlu1 %2870  ;;  %v14861_v16 = vld [vmem:[#allocation102_spill] sm:$0xff]  ;;  %v14890_v31 = vld [vmem:[#allocation61_spill] sm:$0xff] }
 0x77b   : > { %v8810_v14 = vpack.i.bf16 %v3297_v17, %v3161_v19  ;;  %v3430_v42 = vcombine.low %v3386_v60, %v11984_v50  ;;  %v4811_v25 = vcombine.high %v14859_v59, %v14858_v28  ;;  %v4923_v0 = vcombine.high %v11706_v15, %v11709_v2  ;;  %v14860_v19 = vld [vmem:[#allocation91_spill] sm:$0xff]  ;;  %v12055_v58 = vpop.permute.xlu0 %2882 }
 0x77c   : > { %v3666_v6 = vcombine.low %v12017_v22, %v12020_v48  ;;  %8816 = vrot.lane.b32.xlu0 %v8815_v5, %s9247_s14  ;;  %v4792_v36 = vcombine.low %v11979_v35, %v4785_v29  ;;  %v4617_v23 = vrot.slane %v4603_v61, %v9790_v51  ;;  %v12041_v18 = vrot.slane %v3411_v56, %v9790_v51  ;;  %v14865_v28 = vld [vmem:[#allocation67_spill] sm:$0xff] }
 0x77d   : > { %v3568_v54 = vcombine.low %v14860_v19, %v12007_v34  ;;  %v4793_v7 = vcombine.high %v11979_v35, %v4785_v29  ;;  %v4795_v17 = vcombine.high %v14861_v16, %v11495_v41  ;;  %v12050_v8 = vrot.slane %v3634_v20, %v9790_v51  ;;  %v14864_v20 = vld [vmem:[#allocation36_spill] sm:$0xff] }
 0x77e   : > { %8811 = vrot.lane.b32.xlu1 %v8810_v14, %s9252_s11  ;;  %v12053_v53 = vrot.slane %v3666_v6, %v9790_v51  ;;  %v8825_v61 = vpack.i.bf16 %v5059_v39, %v4923_v0  ;;  %v12058_v56 = vrot.slane %v3379_v37, %v9790_v51  ;;  %v12060_v5 = vpop.permute.xlu1 %2878  ;;  %v8820_v14 = vpack.i.bf16 %v3566_v55, %v3430_v42  ;;  %v14866_v37 = vld [vmem:[#allocation65_spill] sm:$0xff] }
 0x77f   : > { %14862 = vst [vmem:[#allocation63_spill] sm:$0xff] %v12050_v8  ;;  %v4655_v35 = vcombine.high %v11945_v3, %v11924_v49  ;;  %v4656_v29 = vcombine.low %v4617_v23, %v4649_v43  ;;  %v12065_v41 = vrot.slane %v4811_v25, %v9595_v47  ;;  %v4827_v59 = vcombine.high %v14865_v28, %v14864_v20  ;;  %v14867_v0 = vld [vmem:[#allocation37_spill] sm:$0xff]  ;;  %v14868_v25 = vld [vmem:[#allocation72_spill] sm:$0xff]  ;;  %v14869_v20 = vld [vmem:[#allocation34_spill] sm:$0xff] }
 0x780   : > { %14863 = vst [vmem:[#allocation44_spill] sm:$0xff] %v12053_v53  ;;  %8826 = vrot.lane.b32.xlu0 %v8825_v61, %s9249_s10  ;;  %v4657_v39 = vcombine.high %v4617_v23, %v4649_v43  ;;  %v4859_v16 = vcombine.high %v14867_v0, %v14866_v37  ;;  %v3431_v49 = vcombine.high %v3386_v60, %v11984_v50 }
 0x781   : > { %v3432_v3 = vcombine.low %v12058_v56, %v12041_v18  ;;  %v12081_v42 = vrot.slane %v4795_v17, %v9595_v47  ;;  %v4843_v61 = vcombine.high %v14869_v20, %v14868_v25  ;;  %v4931_v43 = vcombine.high %v11626_v46, %v11670_v63 }
 0x782   : > { %8821 = vrot.lane.b32.xlu1 %v8820_v14, %s9247_s14  ;;  %v3722_v23 = vcombine.low %v12028_v32, %v12060_v5  ;;  %v2891_v14 = vpop.permute.xlu0 %2890  ;;  %v4891_v50 = vcombine.high %v11665_v27, %v11668_v44  ;;  %v4947_v60 = vcombine.high %v11678_v57, %v11722_v40  ;;  %v2887_v28 = vpop.permute.xlu1 %2886  ;;  %v14870_v17 = vcombine.high %v11760_v26, %v11915_v62 }
 0x783   : > { %v8850_v0 = vpack.i.bf16 %v4792_v36, %v4656_v29  ;;  %v12099_v63 = vrot.slane %v4827_v59, %v9595_v47  ;;  %v3706_v46 = vcombine.low %v11973_v13, %v12022_v33  ;;  %v12103_v20 = vpack.i.bf16 %v4793_v7, %v4657_v39  ;;  %v14872_v59 = vld [vmem:[#allocation74_spill] sm:$0xff]  ;;  %v14873_v39 = vld [vmem:[#allocation75_spill] sm:$0xff] }
 0x784   : > { %v8830_v37 = vpack.i.bf16 %v14870_v17, %v4655_v35  ;;  %v12106_v44 = vrot.slane %v4859_v16, %v9790_v51  ;;  %v14871_v57 = vcombine.high %v14853_v52, %v11921_v11  ;;  %v8860_v40 = vpack.i.bf16 %v3568_v54, %v3432_v3  ;;  %v14874_v3 = vld [vmem:[#allocation15_spill] sm:$0xff] }
 0x785   : > { %v12115_v62 = vrot.slane %v4843_v61, %v9595_v47  ;;  %v12118_v36 = vrot.slane %v4931_v43, %v9595_v47  ;;  %v12121_v7 = vrot.slane %v3722_v23, %v9595_v47  ;;  %v3738_v35 = vcombine.low %v12055_v58, %v2891_v14  ;;  %v14875_v61 = vld [vmem:[#allocation70_spill] sm:$0xff] }
 0x786   : > { %8831 = vrot.lane.b32.xlu1 %v8830_v37, %s9251_s30  ;;  %v8840_v27 = vpack.i.bf16 %v14871_v57, %v3431_v49  ;;  %v12124_v29 = vpop.permute.xlu0 %2932  ;;  %v12127_v11 = vrot.slane %v4891_v50, %v9790_v51  ;;  %v12130_v52 = vrot.slane %v4947_v60, %v9595_v47  ;;  %v4995_v54 = vcombine.high %v11825_v9, %v11802_v38  ;;  %v2895_v49 = vpop.permute.xlu1 %2894  ;;  %v14876_v57 = vld [vmem:[#allocation39_spill] sm:$0xff]  ;;  %v14877_v50 = vld [vmem:[#allocation73_spill] sm:$0xff] }
 0x787   : > { %v4963_v16 = vcombine.high %v14873_v39, %v14872_v59  ;;  %v4979_v43 = vcombine.high %v14875_v61, %v14874_v3  ;;  %v3714_v23 = vrot.slane %v3706_v46, %v9595_v47  ;;  %v3754_v17 = vcombine.low %v2887_v28, %v2895_v49  ;;  %v14878_v59 = vld [vmem:[#allocation28_spill] sm:$0xff]  ;;  %v14879_v39 = vld [vmem:[#allocation17_spill] sm:$0xff] }
 0x788   : > { %v3755_v37 = vcombine.high %v2887_v28, %v2895_v49  ;;  %v5027_v6 = vcombine.high %v14877_v50, %v14876_v57  ;;  %v3619_v60 = vcombine.high %v11949_v4, %v11986_v1  ;;  %v3723_v38 = vcombine.high %v12028_v32, %v12060_v5 }
 0x789   : > { %v3739_v9 = vcombine.high %v12055_v58, %v2891_v14  ;;  %v3587_v3 = vcombine.high %v14879_v39, %v14878_v59  ;;  %v3770_v46 = vcombine.low %v3714_v23, %v12121_v7  ;;  %v3746_v28 = vrot.slane %v3738_v35, %v9595_v47  ;;  %v14880_v35 = vld [vmem:[#allocation68_spill] sm:$0xff] }
 0x78a   : > { %8841 = vrot.lane.b32.xlu1 %v8840_v27, %s9251_s30  ;;  %v3762_v49 = vrot.slane %v3754_v17, %v9595_v47  ;;  %v12152_v61 = vpop.permute.xlu0 %2940  ;;  %v12155_v4 = vrot.slane %v4963_v16, %v9595_v47  ;;  %v3603_v1 = vcombine.high %v11891_v24, %v11935_v45  ;;  %v3707_v32 = vcombine.high %v11973_v13, %v12022_v33  ;;  %v12164_v5 = vpop.permute.xlu1 %2936 }
 0x78b   : > { %v12162_v58 = vrot.slane %v3755_v37, %v9595_v47  ;;  %v12167_v14 = vrot.slane %v4995_v54, %v9790_v51  ;;  %v12170_v27 = vrot.slane %v4979_v43, %v9595_v47  ;;  %v3571_v16 = vcombine.high %v14880_v35, %v11847_v21 }
 0x78c   : > { %v3802_v17 = vcombine.low %v3746_v28, %v3762_v49  ;;  %v12175_v45 = vrot.slane %v5027_v6, %v9790_v51  ;;  %v12178_v24 = vrot.slane %v3619_v60, %v9595_v47  ;;  %v12181_v13 = vrot.slane %v3723_v38, %v9595_v47 }
 0x78d   : > { %v12184_v33 = vrot.slane %v3739_v9, %v9595_v47  ;;  %v12188_v54 = vrot.slane %v3587_v3, %v9595_v47  ;;  %v12191_v21 = vrot.slane %v3770_v46, %v9790_v51  ;;  %v3803_v43 = vcombine.high %v3746_v28, %v3762_v49 }
 0x78e   : > { %8851 = vrot.lane.b32.xlu1 %v8850_v0, %s9248_s20  ;;  %v12194_v6 = vrot.slane %v3802_v17, %v9790_v51  ;;  %v12196_v37 = vpop.permute.xlu0 %2948  ;;  %v12199_v57 = vrot.slane %v3603_v1, %v9595_v47  ;;  %v3667_v50 = vcombine.high %v12017_v22, %v12020_v48  ;;  %v12204_v0 = vrot.slane %v3707_v32, %v9595_v47  ;;  %v12208_v38 = vpop.permute.xlu1 %2944 }
 0x78f   : > { %14881 = vst [vmem:[#allocation42_spill] sm:$0xff] %v12191_v21  ;;  %v3818_v60 = vcombine.low %v12184_v33, %v12162_v58  ;;  %v3771_v9 = vcombine.high %v3714_v23, %v12121_v7  ;;  %v3699_v39 = vcombine.high %v12050_v8, %v12053_v53  ;;  %v12218_v22 = vrot.slane %v3571_v16, %v9595_v47 }
 0x790   : > { %14882 = vst [vmem:[#allocation48_spill] sm:$0xff] %v12194_v6  ;;  %v3835_v3 = vcombine.high %v12191_v21, %v12194_v6  ;;  %v3682_v48 = vcombine.low %v12199_v57, %v12178_v24  ;;  %v3786_v46 = vcombine.low %v12204_v0, %v12181_v13  ;;  %v5060_v7 = vcombine.low %v12167_v14, %v12175_v45 }
 0x791   : > { %v3635_v23 = vcombine.high %v11994_v10, %v11969_v30  ;;  %v12230_v28 = vrot.slane %v3803_v43, %v9790_v51  ;;  %v5218_v49 = vcombine.low %v12164_v5, %v12208_v38  ;;  %v5042_v35 = vcombine.low %v12155_v4, %v12170_v27 }
 0x792   : > { %8861 = vrot.lane.b32.xlu1 %v8860_v40, %s9248_s20  ;;  %v12234_v1 = vpop.permute.xlu0 %2956  ;;  %v8835_v32 = vpack.i.bf16 %v3835_v3, %v3699_v39  ;;  %v3650_v40 = vcombine.low %v12218_v22, %v12188_v54  ;;  %v12241_v16 = vrot.slane %v3818_v60, %v9790_v51  ;;  %v12243_v17 = vpop.permute.xlu1 %2952  ;;  %v4924_v30 = vcombine.low %v12106_v44, %v12127_v11 }
 0x793   : > { %v4906_v10 = vcombine.low %v12099_v63, %v12115_v62  ;;  %v12250_v43 = vrot.slane %v3667_v50, %v9790_v51  ;;  %v12253_v39 = vrot.slane %v3771_v9, %v9790_v51  ;;  %v5202_v3 = vcombine.low %v12124_v29, %v12152_v61 }
 0x794   : > { %8836 = vrot.lane.b32.xlu0 %v8835_v32, %s9249_s10  ;;  %v5010_v60 = vcombine.low %v12118_v36, %v12130_v52  ;;  %v12261_v59 = vrot.slane %v3682_v48, %v9790_v51  ;;  %v12264_v25 = vrot.slane %v3786_v46, %v9790_v51  ;;  %v8845_v50 = vpack.i.bf16 %v5060_v7, %v4924_v30 }
 0x795   : > { %v12269_v9 = vrot.slane %v3635_v23, %v9790_v51  ;;  %v12272_v55 = vrot.slane %v5218_v49, %v9595_v47  ;;  %v5234_v32 = vcombine.low %v12196_v37, %v12234_v1  ;;  %v3836_v48 = vcombine.low %v12253_v39, %v12230_v28 }
 0x796   : > { %8871 = vrot.lane.b32.xlu1 %v12103_v20, %s9252_s11  ;;  %v12276_v26 = vpop.permute.xlu0 %2930  ;;  %v12281_v46 = vrot.slane %v5042_v35, %v9790_v51  ;;  %v12284_v20 = vrot.slane %v3650_v40, %v9790_v51  ;;  %v12286_v7 = vpop.permute.xlu1 %2960  ;;  %v14883_v23 = vcombine.high %v12058_v56, %v12041_v18  ;;  %v14884_v49 = vcombine.high %v14860_v19, %v12007_v34  ;;  %v14885_v18 = vld [vmem:[#allocation51_spill] sm:$0xff]  ;;  %v14886_v56 = vld [vmem:[#allocation29_spill] sm:$0xff] }
 0x797   : > { %v3838_v6 = vcombine.low %v12264_v25, %v12241_v16  ;;  %v12297_v21 = vrot.slane %v5202_v3, %v9595_v47  ;;  %v5250_v35 = vcombine.low %v12243_v17, %v12286_v7  ;;  %v3700_v40 = vcombine.low %v12269_v9, %v12250_v43 }
 0x798   : > { %v8880_v30 = vpack.i.bf16 %v14884_v49, %v14883_v23  ;;  %8846 = vrot.lane.b32.xlu0 %v8845_v50, %s9246_s13  ;;  %v14887_v53 = vcombine.high %v14885_v18, %v14886_v56  ;;  %v12311_v19 = vrot.slane %v4906_v10, %v9790_v51  ;;  %v12314_v3 = vrot.slane %v5010_v60, %v9790_v51 }
 0x799   : > { %v3702_v50 = vcombine.low %v12284_v20, %v12261_v59  ;;  %v5061_v23 = vcombine.high %v12167_v14, %v12175_v45  ;;  %v5266_v49 = vcombine.low %v12297_v21, %v12272_v55  ;;  %v12327_v10 = vrot.slane %v5250_v35, %v9595_v47 }
 0x79a   : > { %v12308_v34 = vrot.slane %v14887_v53, %v9790_v51  ;;  %8881 = vrot.lane.b32.xlu1 %v8880_v30, %s9252_s11  ;;  %v12324_v53 = vrot.slane %v5234_v32, %v9595_v47  ;;  %v12329_v18 = vpop.permute.xlu0 %2938  ;;  %v8855_v60 = vpack.i.bf16 %v3836_v48, %v3700_v40  ;;  %v14888_v30 = vcombine.low %v12081_v42, %v12065_v41  ;;  %v12337_v45 = vpop.permute.xlu1 %2934 }
 0x79b   : > { %v5043_v14 = vcombine.high %v12155_v4, %v12170_v27  ;;  %v8890_v8 = vpack.i.bf16 %v3838_v6, %v3702_v50  ;;  %v5063_v32 = vcombine.high %v12314_v3, %v12281_v46  ;;  %v4907_v35 = vcombine.high %v12099_v63, %v12115_v62  ;;  %v14891_v62 = vld [vmem:[#allocation25_spill] sm:$0xff]  ;;  %v14892_v50 = vld [vmem:[#allocation19_spill] sm:$0xff] }
 0x79c   : > { %v4882_v56 = vrot.slane %v14888_v30, %v9790_v51  ;;  %v5298_v48 = vcombine.low %v12324_v53, %v12327_v10  ;;  %8856 = vrot.lane.b32.xlu0 %v8855_v60, %s9246_s13  ;;  %v4925_v40 = vcombine.high %v12106_v44, %v12127_v11  ;;  %v14889_v30 = vld [vmem:[#allocation56_spill] sm:$0xff]  ;;  %v4875_v27 = vcombine.high %v12081_v42, %v12065_v41 }
 0x79d   : > { %v5195_v4 = vcombine.high %v14890_v31, %v14889_v30  ;;  %v5011_v6 = vcombine.high %v12118_v36, %v12130_v52  ;;  %v14893_v60 = vcombine.high %v14891_v62, %v14892_v50  ;;  %v12363_v44 = vrot.slane %v5266_v49, %v9790_v51 }
 0x79e   : > { %8891 = vrot.lane.b32.xlu1 %v8890_v8, %s9247_s14  ;;  %v4927_v63 = vcombine.high %v4882_v56, %v12311_v19  ;;  %v12366_v11 = vrot.slane %v5298_v48, %v9790_v51  ;;  %v2947_v41 = vpop.permute.xlu0 %2946  ;;  %v8865_v42 = vpack.i.bf16 %v5061_v23, %v4925_v40  ;;  %v3837_v36 = vcombine.high %v12253_v39, %v12230_v28  ;;  %v2943_v62 = vpop.permute.xlu1 %2942 }
 0x79f   : > { %v12360_v12 = vrot.slane %v14893_v60, %v9790_v51  ;;  %v12371_v8 = vrot.slane %v5043_v14, %v9790_v51  ;;  %v3819_v52 = vcombine.high %v12184_v33, %v12162_v58  ;;  %v3839_v49 = vcombine.high %v12264_v25, %v12241_v16 }
 0x7a0   : > { %v8900_v50 = vpack.i.bf16 %v5063_v32, %v4927_v63  ;;  %v12378_v60 = vrot.slane %v4907_v35, %v9790_v51  ;;  %v3683_v23 = vcombine.high %v12199_v57, %v12178_v24  ;;  %v5330_v28 = vcombine.low %v12363_v44, %v12366_v11  ;;  %8866 = vrot.lane.b32.xlu0 %v8865_v42, %s9250_s8 }
 0x7a1   : > { %v3701_v39 = vcombine.high %v12269_v9, %v12250_v43  ;;  %v12388_v58 = vrot.slane %v5011_v6, %v9790_v51  ;;  %v3787_v25 = vcombine.high %v12204_v0, %v12181_v13  ;;  %v3994_v33 = vcombine.low %v12337_v45, %v2943_v62 }
 0x7a2   : > { %8901 = vrot.lane.b32.xlu1 %v8900_v50, %s9251_s30  ;;  %v3703_v24 = vcombine.high %v12284_v20, %v12261_v59  ;;  %v4889_v57 = vrot.slane %v4875_v27, %v9790_v51  ;;  %v3651_v16 = vcombine.high %v12218_v22, %v12188_v54  ;;  %v2955_v14 = vpop.permute.xlu0 %2954  ;;  %v5062_v9 = vcombine.low %v12314_v3, %v12281_v46  ;;  %v2951_v0 = vpop.permute.xlu1 %2950  ;;  %v14894_v46 = vld [vmem:[#allocation59_spill] sm:$0xff]  ;;  %v14895_v3 = vld [vmem:[#allocation62_spill] sm:$0xff] }
 0x7a3   : > { %v8875_v43 = vpack.i.bf16 %v3837_v36, %v3701_v39  ;;  %v12402_v32 = vrot.slane %v3819_v52, %v9790_v51  ;;  %v3978_v13 = vcombine.low %v12276_v26, %v12329_v18  ;;  %v5064_v59 = vcombine.low %v12388_v58, %v12371_v8 }
 0x7a4   : > { %v8910_v35 = vpack.i.bf16 %v3839_v49, %v3703_v24  ;;  %v12409_v20 = vrot.slane %v3683_v23, %v9790_v51  ;;  %v4926_v54 = vcombine.low %v4882_v56, %v12311_v19  ;;  %v4928_v22 = vcombine.low %v4889_v57, %v12378_v60 }
 0x7a5   : > { %8876 = vrot.lane.b32.xlu0 %v8875_v43, %s9250_s8  ;;  %v3971_v48 = vcombine.high %v14895_v3, %v14894_v46  ;;  %v12417_v40 = vrot.slane %v3787_v25, %v9790_v51  ;;  %v3995_v27 = vcombine.high %v12337_v45, %v2943_v62  ;;  %v12421_v6 = vrot.slane %v3994_v33, %v9595_v47 }
 0x7a6   : > { %8911 = vrot.lane.b32.xlu1 %v8910_v35, %s9251_s30  ;;  %v5331_v63 = vcombine.high %v12363_v44, %v12366_v11  ;;  %v12427_v19 = vrot.slane %v3651_v16, %v9790_v51  ;;  %v4010_v56 = vcombine.low %v2947_v41, %v2955_v14  ;;  %v4011_v42 = vcombine.high %v2947_v41, %v2955_v14  ;;  %v12429_v36 = vpop.permute.xlu0 %2980  ;;  %v2959_v62 = vpop.permute.xlu1 %2958  ;;  %v14897_v35 = vld [vmem:[#allocation96_spill] sm:$0xff] }
 0x7a7   : > { %v8885_v52 = vpack.i.bf16 %v5062_v9, %v4926_v54  ;;  %v3979_v50 = vcombine.high %v12276_v26, %v12329_v18  ;;  %v12434_v45 = vrot.slane %v3978_v13, %v9595_v47  ;;  %v8920_v49 = vpack.i.bf16 %v5064_v59, %v4928_v22 }
 0x7a8   : > { %v3840_v23 = vcombine.low %v12417_v40, %v12402_v32  ;;  %v4026_v39 = vcombine.low %v2951_v0, %v2959_v62  ;;  %v4027_v25 = vcombine.high %v2951_v0, %v2959_v62  ;;  %v3704_v41 = vcombine.low %v12427_v19, %v12409_v20  ;;  %v14896_v0 = vld [vmem:[#allocation100_spill] sm:$0xff]  ;;  %v14903_v62 = vld [vmem:[#allocation26_spill] sm:$0xff] }
 0x7a9   : > { %8886 = vrot.lane.b32.xlu0 %v8885_v52, %s9247_s14  ;;  %v5065_v33 = vcombine.high %v12388_v58, %v12371_v8  ;;  %v5299_v26 = vcombine.high %v12324_v53, %v12327_v10  ;;  %v12446_v18 = vrot.slane %v3995_v27, %v9595_v47  ;;  %v4042_v24 = vcombine.low %v12434_v45, %v12421_v6 }
 0x7aa   : > { %8921 = vrot.lane.b32.xlu1 %v8920_v49, %s9248_s20  ;;  %v8895_v16 = vpack.i.bf16 %v5331_v63, %v5195_v4  ;;  %v4018_v14 = vrot.slane %v4010_v56, %v9595_v47  ;;  %v12456_v43 = vrot.slane %v4011_v42, %v9595_v47  ;;  %v4034_v8 = vrot.slane %v4026_v39, %v9595_v47  ;;  %v12462_v10 = vpop.permute.xlu0 %2988  ;;  %v12467_v9 = vpop.permute.xlu1 %2984  ;;  %v14899_v56 = vld [vmem:[#allocation66_spill] sm:$0xff]  ;;  %v14900_v42 = vld [vmem:[#allocation16_spill] sm:$0xff] }
 0x7ab   : > { %v12460_v53 = vrot.slane %v4027_v25, %v9595_v47  ;;  %v12465_v58 = vrot.slane %v3979_v50, %v9595_v47  ;;  %v8930_v13 = vpack.i.bf16 %v3840_v23, %v3704_v41  ;;  %v4929_v4 = vcombine.high %v4889_v57, %v12378_v60 }
 0x7ac   : > { %v14898_v59 = vcombine.low %v14896_v0, %v14897_v35  ;;  %v5267_v22 = vcombine.high %v12297_v21, %v12272_v55  ;;  %v4074_v27 = vcombine.low %v4018_v14, %v4034_v8  ;;  %v14901_v52 = vcombine.low %v14899_v56, %v14900_v42  ;;  %v14902_v21 = vld [vmem:[#allocation52_spill] sm:$0xff] }
 0x7ad   : > { %v4090_v63 = vcombine.low %v12456_v43, %v12460_v53  ;;  %8896 = vrot.lane.b32.xlu0 %v8895_v16, %s9249_s10  ;;  %v4058_v57 = vcombine.low %v12465_v58, %v12446_v18  ;;  %v8940_v50 = vpack.i.bf16 %v5065_v33, %v4929_v4  ;;  %v5196_v55 = vcombine.low %v12308_v34, %v12360_v12 }
 0x7ae   : > { %v12474_v54 = vrot.slane %v14898_v59, %v9790_v51  ;;  %v12485_v60 = vrot.slane %v14901_v52, %v9790_v51  ;;  %8931 = vrot.lane.b32.xlu1 %v8930_v13, %s9248_s20  ;;  %v14904_v49 = vcombine.high %v14902_v21, %v14903_v62  ;;  %v12499_v39 = vrot.slane %v5299_v26, %v9790_v51  ;;  %v12507_v33 = vpop.permute.xlu0 %2996  ;;  %v12512_v59 = vpop.permute.xlu1 %2992 }
 0x7af   : > { %v12502_v25 = vrot.slane %v4042_v24, %v9790_v51  ;;  %v4075_v41 = vcombine.high %v4018_v14, %v4034_v8  ;;  %v12505_v16 = vrot.slane %v4074_v27, %v9790_v51  ;;  %v5251_v13 = vcombine.high %v12243_v17, %v12286_v7 }
 0x7b0   : > { %v12496_v23 = vrot.slane %v14904_v49, %v9790_v51  ;;  %v4098_v4 = vrot.slane %v4090_v63, %v9790_v51  ;;  %v3705_v26 = vcombine.high %v12427_v19, %v12409_v20  ;;  %v3841_v24 = vcombine.high %v12417_v40, %v12402_v32 }
 0x7b1   : > { %v12519_v14 = vrot.slane %v5267_v22, %v9790_v51  ;;  %v4043_v8 = vcombine.high %v12434_v45, %v12421_v6  ;;  %v4106_v27 = vcombine.low %v12502_v25, %v12505_v16  ;;  %v4107_v17 = vcombine.high %v12502_v25, %v12505_v16 }
 0x7b2   : > { %v5203_v7 = vcombine.high %v12124_v29, %v12152_v61  ;;  %v5219_v20 = vcombine.high %v12164_v5, %v12208_v38  ;;  %v5235_v32 = vcombine.high %v12196_v37, %v12234_v1  ;;  %v4066_v40 = vrot.slane %v4058_v57, %v9790_v51  ;;  %8941 = vrot.lane.b32.xlu1 %v8940_v50, %s9252_s11  ;;  %v12538_v19 = vpop.permute.xlu0 %3004  ;;  %v14905_v61 = vld [vmem:[#allocation50_spill] sm:$0xff]  ;;  %v14906_v5 = vld [vmem:[#allocation31_spill] sm:$0xff]  ;;  %v12554_v63 = vpop.permute.xlu1 %3000 }
 0x7b3   : > { %v12536_v6 = vrot.slane %v4075_v41, %v9790_v51  ;;  %v8905_v45 = vpack.i.bf16 %v4107_v17, %v3971_v48  ;;  %v5332_v29 = vcombine.low %v12519_v14, %v12499_v39  ;;  %v14907_v37 = vcombine.high %v14905_v61, %v14906_v5 }
 0x7b4   : > { %v5265_v1 = vrot.slane %v5251_v13, %v9595_v47  ;;  %v4091_v22 = vcombine.high %v12456_v43, %v12460_v53  ;;  %v8950_v52 = vpack.i.bf16 %v3841_v24, %v3705_v26  ;;  %v4110_v57 = vcombine.low %v4066_v40, %v4098_v4 }
 0x7b5   : > { %v12549_v38 = vrot.slane %v14907_v37, %v9790_v51  ;;  %v12557_v48 = vrot.slane %v4043_v8, %v9790_v51  ;;  %v5354_v50 = vcombine.low %v12467_v9, %v12512_v59  ;;  %8906 = vrot.lane.b32.xlu0 %v8905_v45, %s9249_s10  ;;  %v3974_v21 = vcombine.low %v12474_v54, %v12485_v60 }
 0x7b6   : > { %v3975_v62 = vcombine.high %v12474_v54, %v12485_v60  ;;  %v5217_v43 = vrot.slane %v5203_v7, %v9595_v47  ;;  %v5233_v53 = vrot.slane %v5219_v20, %v9595_v47  ;;  %v5249_v49 = vrot.slane %v5235_v32, %v9595_v47  ;;  %8951 = vrot.lane.b32.xlu1 %v8950_v52, %s9252_s11  ;;  %v12576_v24 = vpop.permute.xlu0 %2978  ;;  %v12583_v7 = vpop.permute.xlu1 %3008 }
 0x7b7   : > { %v4059_v41 = vcombine.high %v12465_v58, %v12446_v18  ;;  %v5338_v13 = vcombine.low %v12429_v36, %v12462_v10  ;;  %v5370_v26 = vcombine.low %v12507_v33, %v12538_v19  ;;  %v8915_v54 = vpack.i.bf16 %v5332_v29, %v5196_v55 }
 0x7b8   : > { %v4108_v60 = vcombine.low %v12557_v48, %v12536_v6  ;;  %v5315_v8 = vcombine.high %v5249_v49, %v5265_v1  ;;  %v12581_v17 = vrot.slane %v4091_v22, %v9790_v51  ;;  %v8960_v18 = vpack.i.bf16 %v4110_v57, %v3974_v21 }
 0x7b9   : > { %v4111_v58 = vcombine.high %v4066_v40, %v4098_v4  ;;  %v12586_v20 = vrot.slane %v5354_v50, %v9595_v47  ;;  %v5386_v32 = vcombine.low %v12554_v63, %v12583_v7  ;;  %8916 = vrot.lane.b32.xlu0 %v8915_v54, %s9246_s13  ;;  %v3972_v55 = vcombine.low %v12496_v23, %v12549_v38  ;;  %v14911_v54 = vld [vmem:[#allocation98_spill] sm:$0xff] }
 0x7ba   : > { %v14908_v45 = vcombine.high %v14899_v56, %v14900_v42  ;;  %v5283_v61 = vcombine.high %v5217_v43, %v5233_v53  ;;  %v5314_v5 = vcombine.low %v5249_v49, %v5265_v1  ;;  %v4073_v4 = vrot.slane %v4059_v41, %v9790_v51  ;;  %8961 = vrot.lane.b32.xlu1 %v8960_v18, %s9247_s14  ;;  %v12612_v56 = vpop.permute.xlu0 %2986  ;;  %v12617_v57 = vpop.permute.xlu1 %2982 }
 0x7bb   : > { %v5333_v40 = vcombine.high %v12519_v14, %v12499_v39  ;;  %v12604_v37 = vrot.slane %v5338_v13, %v9595_v47  ;;  %v12607_v22 = vrot.slane %v5370_v26, %v9595_v47  ;;  %v12610_v52 = vrot.slane %v5386_v32, %v9595_v47 }
 0x7bc   : > { %v12597_v29 = vrot.slane %v14908_v45, %v9790_v51  ;;  %v8925_v42 = vpack.i.bf16 %v4108_v60, %v3972_v55  ;;  %v12615_v1 = vrot.slane %v5315_v8, %v9790_v51  ;;  %v8970_v50 = vpack.i.bf16 %v4111_v58, %v3975_v62  ;;  %v14910_v62 = vld [vmem:[#allocation94_spill] sm:$0xff] }
 0x7bd   : > { %v14909_v39 = vcombine.high %v14896_v0, %v14897_v35  ;;  %v4112_v21 = vcombine.low %v4073_v4, %v12581_v17  ;;  %v5282_v49 = vcombine.low %v5217_v43, %v5233_v53  ;;  %v5402_v41 = vcombine.low %v12604_v37, %v12586_v20  ;;  %v14912_v43 = vld [vmem:[#allocation103_spill] sm:$0xff]  ;;  %v14913_v53 = vld [vmem:[#allocation20_spill] sm:$0xff] }
 0x7be   : > { %v5434_v13 = vcombine.low %v12607_v22, %v12610_v52  ;;  %8926 = vrot.lane.b32.xlu0 %v8925_v42, %s9246_s13  ;;  %v5197_v26 = vcombine.high %v12308_v34, %v12360_v12  ;;  %v5146_v60 = vcombine.low %v14911_v54, %v14910_v62  ;;  %v12634_v0 = vrot.slane %v5283_v61, %v9790_v51  ;;  %v2995_v32 = vpop.permute.xlu0 %2994  ;;  %v2991_v45 = vpop.permute.xlu1 %2990 }
 0x7bf   : > { %v3937_v14 = vrot.slane %v14909_v39, %v9790_v51  ;;  %8971 = vrot.lane.b32.xlu1 %v8970_v50, %s9251_s30  ;;  %v14914_v8 = vcombine.high %v14912_v43, %v14913_v53  ;;  %v5322_v58 = vrot.slane %v5314_v5, %v9790_v51  ;;  %v4109_v12 = vcombine.high %v12557_v48, %v12536_v6 }
 0x7c0   : > { %v8935_v55 = vpack.i.bf16 %v5333_v40, %v5197_v26  ;;  %v12646_v34 = vrot.slane %v5434_v13, %v9790_v51  ;;  %v14915_v42 = vcombine.high %v14911_v54, %v14910_v62  ;;  %v5337_v39 = vcombine.high %v12634_v0, %v12615_v1 }
 0x7c1   : > { %v3976_v35 = vcombine.low %v3937_v14, %v12597_v29  ;;  %v5193_v18 = vrot.slane %v14914_v8, %v9790_v51  ;;  %v5290_v5 = vrot.slane %v5282_v49, %v9790_v51  ;;  %v3973_v6 = vcombine.high %v12496_v23, %v12549_v38 }
 0x7c2   : > { %v5161_v50 = vrot.slane %v14915_v42, %v9790_v51  ;;  %8936 = vrot.lane.b32.xlu0 %v8935_v55, %s9250_s8  ;;  %v14916_v48 = vcombine.low %v14912_v43, %v14913_v53  ;;  %v5154_v26 = vrot.slane %v5146_v60, %v9790_v51  ;;  %v4130_v49 = vcombine.low %v12617_v57, %v2991_v45  ;;  %v3003_v62 = vpop.permute.xlu0 %3002  ;;  %v2999_v38 = vpop.permute.xlu1 %2998 }
 0x7c3   : > { %v8980_v61 = vpack.i.bf16 %v4112_v21, %v3976_v35  ;;  %v12663_v21 = vrot.slane %v5402_v41, %v9790_v51  ;;  %v8945_v54 = vpack.i.bf16 %v4109_v12, %v3973_v6  ;;  %v5334_v35 = vcombine.low %v5290_v5, %v5322_v58 }
 0x7c4   : > { %v5186_v40 = vrot.slane %v14916_v48, %v9790_v51  ;;  %v5201_v13 = vcombine.high %v5161_v50, %v5193_v18  ;;  %v4113_v43 = vcombine.high %v4073_v4, %v12581_v17  ;;  %v4114_v41 = vcombine.low %v12576_v24, %v12612_v56 }
 0x7c5   : > { %8981 = vrot.lane.b32.xlu1 %v8980_v61, %s9248_s20  ;;  %v3977_v60 = vcombine.high %v3937_v14, %v12597_v29  ;;  %v5335_v55 = vcombine.high %v5290_v5, %v5322_v58  ;;  %v4138_v12 = vrot.slane %v4130_v49, %v9595_v47  ;;  %v4146_v61 = vcombine.low %v2995_v32, %v3003_v62 }
 0x7c6   : > { %v8985_v8 = vpack.i.bf16 %v5337_v39, %v5201_v13  ;;  %8946 = vrot.lane.b32.xlu0 %v8945_v54, %s9250_s8  ;;  %v5198_v53 = vcombine.low %v5154_v26, %v5186_v40  ;;  %v12677_v42 = vpop.permute.xlu0 %8716  ;;  %v3007_v39 = vpop.permute.xlu1 %3006  ;;  %v5199_v17 = vcombine.high %v5154_v26, %v5186_v40  ;;  %v4122_v4 = vrot.slane %v4114_v41, %v9595_v47 }
 0x7c7   : > { %v8990_v48 = vpack.i.bf16 %v4113_v43, %v3977_v60  ;;  %v4162_v13 = vcombine.low %v2999_v38, %v3007_v39  ;;  %v4163_v23 = vcombine.high %v2999_v38, %v3007_v39  ;;  %v4131_v54 = vcombine.high %v12617_v57, %v2991_v45 }
 0x7c8   : > { %v8955_v6 = vpack.i.bf16 %v5334_v35, %v5198_v53  ;;  %v8965_v29 = vpack.i.bf16 %v5335_v55, %v5199_v17  ;;  %v5336_v14 = vcombine.low %v12634_v0, %v12615_v1  ;;  %v4179_v58 = vcombine.high %v4122_v4, %v4138_v12 }
 0x7c9   : > { %8986 = vrot.lane.b32.xlu1 %v8985_v8, %s9252_s11  ;;  %v4147_v5 = vcombine.high %v2995_v32, %v3003_v62  ;;  %v4154_v49 = vrot.slane %v4146_v61, %v9595_v47  ;;  %v4170_v40 = vrot.slane %v4162_v13, %v9595_v47  ;;  %v5200_v38 = vcombine.low %v5161_v50, %v5193_v18 }
 0x7ca   : > { %8956 = vrot.lane.b32.xlu0 %v8955_v6, %s9247_s14  ;;  %v12687_v26 = vpop.permute.xlu0 %8726  ;;  %v12689_v35 = vpop.permute.xlu1 %8721  ;;  %v4115_v57 = vcombine.high %v12576_v24, %v12612_v56  ;;  %v4177_v45 = vrot.slane %v4163_v23, %v9595_v47  ;;  %v4178_v1 = vcombine.low %v4122_v4, %v4138_v12  ;;  %v4145_v32 = vrot.slane %v4131_v54, %v9595_v47 }
 0x7cb   : > { %v4210_v8 = vcombine.low %v4154_v49, %v4170_v40  ;;  %v4211_v43 = vcombine.high %v4154_v49, %v4170_v40  ;;  %v8975_v0 = vpack.i.bf16 %v5336_v14, %v5200_v38  ;;  %v4161_v62 = vrot.slane %v4147_v5, %v9595_v47 }
 0x7cc   : > { %v4193_v53 = vrot.slane %v4179_v58, %v9790_v51  ;;  %v4129_v56 = vrot.slane %v4115_v57, %v9595_v47  ;;  %v12709_v55 = vrot.slane %v4178_v1, %v9790_v51  ;;  %v5387_v12 = vcombine.high %v12554_v63, %v12583_v7 }
 0x7cd   : > { %8991 = vrot.lane.b32.xlu1 %v8990_v48, %s9252_s11  ;;  %v4225_v18 = vrot.slane %v4211_v43, %v9790_v51  ;;  %v12704_v24 = vrot.slane %v4210_v8, %v9790_v51  ;;  %v4226_v23 = vcombine.low %v4161_v62, %v4177_v45  ;;  %v5435_v61 = vcombine.high %v12607_v22, %v12610_v52 }
 0x7ce   : > { %8966 = vrot.lane.b32.xlu0 %v8965_v29, %s9251_s30  ;;  %v12697_v41 = vpop.permute.xlu0 %8736  ;;  %v12701_v50 = vpop.permute.xlu1 %8731  ;;  %v4194_v6 = vcombine.low %v4129_v56, %v4145_v32  ;;  %v5467_v48 = vcombine.high %v12663_v21, %v12646_v34  ;;  %v5355_v17 = vcombine.high %v12467_v9, %v12512_v59  ;;  %v5403_v63 = vcombine.high %v12604_v37, %v12586_v20 }
 0x7cf   : > { %v4244_v60 = vcombine.low %v4193_v53, %v4225_v18  ;;  %v4242_v13 = vcombine.low %v12709_v55, %v12704_v24  ;;  %v5371_v7 = vcombine.high %v12507_v33, %v12538_v19  ;;  %v4245_v22 = vcombine.high %v4193_v53, %v4225_v18 }
 0x7d0   : > { %v4234_v52 = vrot.slane %v4226_v23, %v9790_v51  ;;  %v5339_v54 = vcombine.high %v12429_v36, %v12462_v10  ;;  %v5401_v9 = vrot.slane %v5387_v12, %v9595_v47  ;;  %v4243_v59 = vcombine.high %v12709_v55, %v12704_v24 }
 0x7d1   : > { %5535 = vrot.lane.b32.xlu1 %v4244_v60, %s9246_s13  ;;  %v4202_v20 = vrot.slane %v4194_v6, %v9790_v51  ;;  %v5449_v37 = vrot.slane %v5435_v61, %v9790_v51  ;;  %v5369_v33 = vrot.slane %v5355_v17, %v9595_v47  ;;  %v5385_v29 = vrot.slane %v5371_v7, %v9595_v47 }
 0x7d2   : > { %8976 = vrot.lane.b32.xlu0 %v8975_v0, %s9248_s20  ;;  %v12716_v39 = vpop.permute.xlu0 %8746  ;;  %v12722_v4 = vpop.permute.xlu1 %8741  ;;  %v4227_v14 = vcombine.high %v4161_v62, %v4177_v45  ;;  %v5417_v10 = vrot.slane %v5403_v63, %v9790_v51  ;;  %v5353_v5 = vrot.slane %v5339_v54, %v9595_v47  ;;  %v4195_v40 = vcombine.high %v4129_v56, %v4145_v32 }
 0x7d3   : > { %v4246_v36 = vcombine.low %v4202_v20, %v4234_v52  ;;  %v5450_v49 = vcombine.low %v5385_v29, %v5401_v9  ;;  %v5451_v57 = vcombine.high %v5385_v29, %v5401_v9  ;;  %v4247_v45 = vcombine.high %v4202_v20, %v4234_v52  ;;  %v14917_v29 = vld [vmem:[#allocation46_spill] sm:$0xff] }
 0x7d4   : > { %v5468_v38 = vcombine.low %v5417_v10, %v5449_v37  ;;  %v5418_v43 = vcombine.low %v5353_v5, %v5369_v33  ;;  %v4241_v1 = vrot.slane %v4227_v14, %v9790_v51  ;;  %v5419_v0 = vcombine.high %v5353_v5, %v5369_v33  ;;  %v14918_v14 = vld [vmem:[#allocation18_spill] sm:$0xff] }
 0x7d5   : > { %5571 = vrot.lane.b32.xlu1 %v4245_v22, %s9250_s8  ;;  %v5469_v53 = vcombine.high %v5417_v10, %v5449_v37  ;;  %v4209_v32 = vrot.slane %v4195_v40, %v9790_v51  ;;  %v5458_v18 = vrot.slane %v5450_v49, %v9790_v51  ;;  %v12762_v23 = vrot.slane %v5451_v57, %v9790_v51  ;;  %v14920_v49 = vld [vmem:[#allocation49_spill] sm:$0xff] }
 0x7d6   : > { %5751 = vrot.lane.b32.xlu0 %v5467_v48, %s9249_s10  ;;  %v12741_v19 = vpop.permute.xlu1 %8751  ;;  %v12744_v58 = vpop.permute.xlu0 %8756  ;;  %v5426_v12 = vrot.slane %v5418_v43, %v9790_v51  ;;  %v8718_v61 = vunpack.i.l.bf16 %v12677_v42  ;;  %v12768_v6 = vrot.slane %v5419_v0, %v9790_v51  ;;  %v8719_v48 = vunpack.i.h.bf16 %v12677_v42  ;;  %v14921_v40 = vld [vmem:[#allocation69_spill] sm:$0xff] }
 0x7d7   : > { %v4248_v60 = vcombine.low %v4209_v32, %v4241_v1  ;;  %v8729_v7 = vunpack.i.h.bf16 %v12687_v26  ;;  %v8728_v22 = vunpack.i.l.bf16 %v12687_v26  ;;  %v8724_v52 = vunpack.i.h.bf16 %v12689_v35 }
 0x7d8   : > { %v5470_v17 = vcombine.low %v5426_v12, %v5458_v18  ;;  %v5471_v63 = vcombine.high %v5426_v12, %v5458_v18  ;;  %v5472_v9 = vcombine.low %v12768_v6, %v12762_v23  ;;  %v8739_v20 = vunpack.i.h.bf16 %v12697_v41  ;;  %v14923_v18 = vld [vmem:[#allocation78_spill] sm:$0xff] }
 0x7d9   : > { %5607 = vrot.lane.b32.xlu1 %v4246_v36, %s9247_s14  ;;  %v8738_v42 = vunpack.i.l.bf16 %v12697_v41  ;;  %v4249_v33 = vcombine.high %v4209_v32, %v4241_v1  ;;  %v14919_v26 = vcombine.low %v14917_v29, %v14918_v14  ;;  %v8734_v10 = vunpack.i.h.bf16 %v12701_v50 }
 0x7da   : > { %5499 = vrot.lane.b32.xlu0 %v4243_v59, %s9249_s10  ;;  %v12750_v8 = vpop.permute.xlu1 %8761  ;;  %v12754_v62 = vpop.permute.xlu0 %8766  ;;  %v8723_v59 = vunpack.i.l.bf16 %v12689_v35  ;;  %v8733_v5 = vunpack.i.l.bf16 %v12701_v50  ;;  %v5473_v35 = vcombine.high %v12768_v6, %v12762_v23  ;;  %v14922_v41 = vcombine.low %v14920_v49, %v14921_v40  ;;  %v14924_v23 = vld [vmem:[#allocation79_spill] sm:$0xff] }
 0x7db   : > { %v6041_v36 = vsel %vm2001_vm3, %v14919_v26, %v8718_v61  ;;  %v8749_v57 = vunpack.i.h.bf16 %v12716_v39  ;;  %v8748_v43 = vunpack.i.l.bf16 %v12716_v39  ;;  %v8764_v50 = vunpack.i.h.bf16 %v12750_v8  ;;  %v14926_v61 = vld [vmem:[#allocation57_spill] sm:$0xff] }
 0x7dc   : > { %v8763_v0 = vunpack.i.l.bf16 %v12750_v8  ;;  %v9256_v32 = vmov 3   ;;  %v14927_v39 = vld [vmem:[#allocation53_spill] sm:$0xff]  ;;  %v8744_v14 = vunpack.i.h.bf16 %v12722_v4 }
 0x7dd   : > { %5643 = vrot.lane.b32.xlu1 %v4247_v45, %s9251_s30  ;;  %v6050_v45 = vsel %vm2007_vm4, %v6041_v36, %v8728_v22  ;;  %8995 = vset.pattern.permute.xlu0 %v9256_v32  ;;  %v14928_v6 = vcombine.low %v14926_v61, %v14927_v39 }
 0x7de   : > { %5787 = vrot.lane.b32.xlu0 %v5468_v38, %s9246_s13  ;;  %v12759_v56 = vpop.permute.xlu1 %8771  ;;  %v12780_v37 = vpop.permute.xlu0 %8776  ;;  %v6042_v38 = vsel %vm2001_vm3, %v14922_v41, %v8719_v48 }
 0x7df   : > { %v6051_v1 = vsel %vm2007_vm4, %v6042_v38, %v8729_v7  ;;  %v5978_v48 = vsel %vm2001_vm3, %v14928_v6, %v8723_v59  ;;  %v8773_v49 = vunpack.i.l.bf16 %v12759_v56 }
 0x7e0   : > { %v6060_v7 = vsel %vm2013_vm5, %v6051_v1, %v8739_v20  ;;  %v5987_v8 = vsel %vm2007_vm4, %v5978_v48, %v8733_v5  ;;  %v8754_v20 = vunpack.i.h.bf16 %v12741_v19 }
 0x7e1   : > { %5679 = vrot.lane.b32.xlu1 %v4248_v60, %s9248_s20  ;;  %v14925_v60 = vcombine.low %v14923_v18, %v14924_v23 }
 0x7e2   : > { %5823 = vrot.lane.b32.xlu0 %v5469_v53, %s9250_s8  ;;  %v8782_v54 = vpop.permute.xlu1 %8781  ;;  %v12817_v26 = vpop.permute.xlu0 %8786 }
 0x7e3   : > { %v5979_v12 = vsel %vm2001_vm3, %v14925_v60, %v8724_v52  ;;  %v8783_v29 = vunpack.i.l.bf16 %v8782_v54  ;;  %v8743_v52 = vunpack.i.l.bf16 %v12722_v4 }
 0x7e4   : > { %v5988_v22 = vsel %vm2007_vm4, %v5979_v12, %v8734_v10 }
 0x7e5   : > { %5715 = vrot.lane.b32.xlu1 %v4249_v33, %s9252_s11  ;;  %v8784_v33 = vunpack.i.h.bf16 %v8782_v54  ;;  %v8774_v54 = vunpack.i.h.bf16 %v12759_v56 }
 0x7e6   : > { %5859 = vrot.lane.b32.xlu0 %v5470_v17, %s9247_s14  ;;  %v8792_v53 = vpop.permute.xlu1 %8791  ;;  %v6059_v17 = vsel %vm2013_vm5, %v6050_v45, %v8738_v42  ;;  %v6069_v42 = vsel %vm2019_vm6, %v6060_v7, %v8749_v57  ;;  %v5997_v45 = vsel %vm2013_vm5, %v5988_v22, %v8744_v14  ;;  %v8797_v18 = vpop.permute.xlu0 %8796  ;;  %v8759_v14 = vunpack.i.h.bf16 %v12744_v58 }
 0x7e7   : > { %v6068_v59 = vsel %vm2019_vm6, %v6059_v17, %v8748_v43  ;;  %v6078_v10 = vsel %vm2025_vm7, %v6069_v42, %v8764_v50  ;;  %v8794_v41 = vunpack.i.h.bf16 %v8792_v53  ;;  %v8793_v38 = vunpack.i.l.bf16 %v8792_v53 }
 0x7e8   : > { %v6077_v5 = vsel %vm2025_vm7, %v6068_v59, %v8763_v0  ;;  %v6087_v43 = vsel %vm2031_vm8, %v6078_v10, %v8784_v33  ;;  %v6006_v0 = vsel %vm2019_vm6, %v5997_v45, %v8754_v20  ;;  %v8769_v59 = vunpack.i.h.bf16 %v12754_v62 }
 0x7e9   : > { %v6086_v57 = vsel %vm2031_vm8, %v6077_v5, %v8783_v29  ;;  %v6015_v12 = vsel %vm2025_vm7, %v6006_v0, %v8774_v54  ;;  %v8768_v42 = vunpack.i.l.bf16 %v12754_v62  ;;  %v8789_v5 = vunpack.i.h.bf16 %v12817_v26  ;;  %v14938_v0 = vld [vmem:[#allocation64_spill] sm:$0xff] }
 0x7ea   : > { %5895 = vrot.lane.b32.xlu0 %v5471_v63, %s9251_s30  ;;  %v8753_v63 = vunpack.i.l.bf16 %v12741_v19  ;;  %v5996_v19 = vsel %vm2013_vm5, %v5987_v8, %v8743_v52  ;;  %v6024_v39 = vsel %vm2031_vm8, %v6015_v12, %v8794_v41  ;;  %v8807_v8 = vpop.permute.xlu0 %8806  ;;  %v8758_v52 = vunpack.i.l.bf16 %v12744_v58 }
 0x7eb   : > { %v8788_v10 = vunpack.i.l.bf16 %v12817_v26  ;;  %v8799_v54 = vunpack.i.h.bf16 %v8797_v18 }
 0x7ec   : > { %v8802_v36 = vpop.permute.xlu1 %8801  ;;  %v6005_v56 = vsel %vm2019_vm6, %v5996_v19, %v8753_v63  ;;  %v8779_v63 = vunpack.i.h.bf16 %v12780_v37 }
 0x7ed   : > { %v8804_v4 = vunpack.i.h.bf16 %v8802_v36  ;;  %v8803_v40 = vunpack.i.l.bf16 %v8802_v36  ;;  %v6014_v60 = vsel %vm2025_vm7, %v6005_v56, %v8773_v49  ;;  %v8778_v36 = vunpack.i.l.bf16 %v12780_v37  ;;  %v14935_v37 = vld [vmem:[#allocation60_spill] sm:$0xff] }
 0x7ee   : > { %5931 = vrot.lane.b32.xlu0 %v5472_v9, %s9248_s20  ;;  %v6023_v61 = vsel %vm2031_vm8, %v6014_v60, %v8793_v38  ;;  %v8817_v29 = vpop.permute.xlu0 %8816  ;;  %v8798_v49 = vunpack.i.l.bf16 %v8797_v18  ;;  %v14932_v38 = vld [vmem:[#allocation85_spill] sm:$0xff] }
 0x7ef   : > { %v6095_v1 = vsel %vm2037_vm9, %v6086_v57, %v8803_v40  ;;  %v6096_v50 = vsel %vm2037_vm9, %v6087_v43, %v8804_v4  ;;  %v14929_v4 = vld [vmem:[#allocation58_spill] sm:$0xff]  ;;  %v8819_v19 = vunpack.i.h.bf16 %v8817_v29  ;;  %v8818_v45 = vunpack.i.l.bf16 %v8817_v29 }
 0x7f0   : > { %v8812_v32 = vpop.permute.xlu1 %8811  ;;  %v8450_v9 = vpack.c.bf16 %v6096_v50, %v6095_v1  ;;  %v14930_v40 = vld [vmem:[#allocation54_spill] sm:$0xff]  ;;  %v14936_v50 = vld [vmem:[#allocation55_spill] sm:$0xff] }
 0x7f1   : > { %v8814_v53 = vunpack.i.h.bf16 %v8812_v32  ;;  %v8813_v23 = vunpack.i.l.bf16 %v8812_v32  ;;  %v14931_v41 = vcombine.low %v14929_v4, %v14930_v40  ;;  %v14933_v57 = vld [vmem:[#allocation86_spill] sm:$0xff]  ;;  %v14937_v56 = vcombine.low %v14935_v37, %v14936_v50  ;;  %v14939_v32 = vld [vmem:[#allocation47_spill] sm:$0xff] }
 0x7f2   : > { %5967 = vrot.lane.b32.xlu0 %v5473_v35, %s9252_s11  ;;  %8451 = vmatprep.subr.bf16.mxu1 %v8450_v9  ;;  %v12848_v35 = vld [vmem:[%s14284_s3] sm:$0xff]  ;;  %v14934_v43 = vcombine.low %v14932_v38, %v14933_v57  ;;  %v12867_v1 = vpop.permute.xlu0 %8826  ;;  %v14940_v9 = vcombine.low %v14938_v0, %v14939_v32 }
 0x7f3   : > { %v6032_v6 = vsel %vm2037_vm9, %v6023_v61, %v8813_v23  ;;  %v6033_v48 = vsel %vm2037_vm9, %v6024_v39, %v8814_v53  ;;  %v6044_v58 = vsel %vm2001_vm3, %v14931_v41, %v8759_v14  ;;  %v5981_v26 = vsel %vm2001_vm3, %v14937_v56, %v8769_v59 }
 0x7f4   : > { %v12843_v17 = vpop.permute.xlu1 %8821  ;;  %v8452_v7 = vpack.c.bf16 %v6033_v48, %v6032_v6  ;;  %v6043_v62 = vsel %vm2001_vm3, %v14934_v43, %v8758_v52  ;;  %v5980_v18 = vsel %vm2001_vm3, %v14940_v9, %v8768_v42  ;;  %v6053_v12 = vsel %vm2007_vm4, %v6044_v58, %v8779_v63 }
 0x7f5   : > { %v6052_v61 = vsel %vm2007_vm4, %v6043_v62, %v8778_v36  ;;  %v5989_v39 = vsel %vm2007_vm4, %v5980_v18, %v8788_v10  ;;  %v5990_v6 = vsel %vm2007_vm4, %v5981_v26, %v8789_v5  ;;  %v8809_v52 = vunpack.i.h.bf16 %v8807_v8 }
 0x7f6   : > { %6106 = vperm.xlu0 %8995, %v12848_v35   ;;  %8453 = vmatpush1.bf16.msra.mxu1 %v8452_v7  ;;  %v6061_v48 = vsel %vm2013_vm5, %v6052_v61, %v8798_v49  ;;  %v6062_v7 = vsel %vm2013_vm5, %v6053_v12, %v8799_v54  ;;  %v8808_v59 = vunpack.i.l.bf16 %v8807_v8  ;;  %v8824_v63 = vunpack.i.h.bf16 %v12843_v17 }
 0x7f7   : > { %v6070_v42 = vsel %vm2019_vm6, %v6061_v48, %v8818_v45  ;;  %v8823_v36 = vunpack.i.l.bf16 %v12843_v17  ;;  %v5999_v62 = vsel %vm2013_vm5, %v5990_v6, %v8809_v52  ;;  %v8828_v52 = vunpack.i.l.bf16 %v12867_v1 }
 0x7f8   : > { %v8832_v22 = vpop.permute.xlu1 %8831  ;;  %v5998_v43 = vsel %vm2013_vm5, %v5989_v39, %v8808_v59  ;;  %v6008_v37 = vsel %vm2019_vm6, %v5999_v62, %v8824_v63 }
 0x7f9   : > { %v8834_v53 = vunpack.i.h.bf16 %v8832_v22  ;;  %v8833_v23 = vunpack.i.l.bf16 %v8832_v22  ;;  %v6071_v22 = vsel %vm2019_vm6, %v6062_v7, %v8819_v19 }
 0x7fb   : > { %v6080_v5 = vsel %vm2025_vm7, %v6071_v22, %v8834_v53  ;;  %v6079_v10 = vsel %vm2025_vm7, %v6070_v42, %v8833_v23 }
 0x7fc   : > { %v8842_v33 = vpop.permute.xlu1 %8841 }
 0x7fd   : > { %v8844_v54 = vunpack.i.h.bf16 %v8842_v33  ;;  %v8843_v40 = vunpack.i.l.bf16 %v8842_v33  ;;  %v6007_v33 = vsel %vm2019_vm6, %v5998_v43, %v8823_v36 }
 0x7ff   : > { %v6016_v26 = vsel %vm2025_vm7, %v6007_v33, %v8843_v40  ;;  %v6017_v0 = vsel %vm2025_vm7, %v6008_v37, %v8844_v54 }
 0x800   : > { %v8852_v20 = vpop.permute.xlu1 %8851 }
 0x801   : > { %v8854_v29 = vunpack.i.h.bf16 %v8852_v20  ;;  %v8853_v14 = vunpack.i.l.bf16 %v8852_v20 }
 0x803   : > { %v6088_v38 = vsel %vm2031_vm8, %v6079_v10, %v8853_v14  ;;  %v6089_v57 = vsel %vm2031_vm8, %v6080_v5, %v8854_v29  ;;  %v8829_v14 = vunpack.i.h.bf16 %v12867_v1 }
 0x804   : > { %v8862_v60 = vpop.permute.xlu1 %8861 }
 0x805   : > { %v8864_v8 = vunpack.i.h.bf16 %v8862_v60  ;;  %v8863_v58 = vunpack.i.l.bf16 %v8862_v60 }
 0x806   : > { %v12885_v4 = vpop.permute.xlu0 %8836 }
 0x807   : > { %v6025_v18 = vsel %vm2031_vm8, %v6016_v26, %v8863_v58  ;;  %v6026_v53 = vsel %vm2031_vm8, %v6017_v0, %v8864_v8  ;;  %v8839_v5 = vunpack.i.h.bf16 %v12885_v4  ;;  %v8838_v10 = vunpack.i.l.bf16 %v12885_v4  ;;  %v14942_v8 = vld [vmem:[#allocation23_spill] sm:$0xff]  ;;  %v14943_v58 = vld [vmem:[#allocation30_spill] sm:$0xff]  ;;  %v14949_v26 = vld [vmem:[#allocation48_spill] sm:$0xff] }
 0x808   : > { %v8872_v49 = vpop.permute.xlu1 %8871  ;;  %v14944_v1 = vcombine.low %v14942_v8, %v14943_v58 }
 0x809   : > { %v8874_v20 = vunpack.i.h.bf16 %v8872_v49  ;;  %v8873_v41 = vunpack.i.l.bf16 %v8872_v49 }
 0x80a   : > { %v8847_v17 = vpop.permute.xlu0 %8846 }
 0x80b   : > { %v6097_v19 = vsel %vm2037_vm9, %v6088_v38, %v8873_v41  ;;  %v6098_v45 = vsel %vm2037_vm9, %v6089_v57, %v8874_v20  ;;  %v8849_v59 = vunpack.i.h.bf16 %v8847_v17  ;;  %v8848_v42 = vunpack.i.l.bf16 %v8847_v17 }
 0x80c   : > { %v8882_v50 = vpop.permute.xlu1 %8881  ;;  %v8454_v56 = vpack.c.bf16 %v6098_v45, %v6097_v19  ;;  %v14941_v20 = vcombine.low %v11706_v15, %v11709_v2  ;;  %v6046_v38 = vsel %vm2001_vm3, %v14944_v1, %v8829_v14  ;;  %v14945_v15 = vld [vmem:[#allocation63_spill] sm:$0xff]  ;;  %v14946_v2 = vld [vmem:[#allocation44_spill] sm:$0xff] }
 0x80d   : > { %v8884_v32 = vunpack.i.h.bf16 %v8882_v50  ;;  %v8883_v9 = vunpack.i.l.bf16 %v8882_v50  ;;  %v6055_v62 = vsel %vm2007_vm4, %v6046_v38, %v8849_v59  ;;  %v14947_v33 = vcombine.low %v14945_v15, %v14946_v2 }
 0x80e   : > { %8455 = vmatprep.subr.bf16.mxu1 %v8454_v56  ;;  %v8857_v23 = vpop.permute.xlu0 %8856  ;;  %v6045_v41 = vsel %vm2001_vm3, %v14941_v20, %v8828_v52  ;;  %v14948_v56 = vld [vmem:[#allocation42_spill] sm:$0xff] }
 0x80f   : > { %v6034_v60 = vsel %vm2037_vm9, %v6025_v18, %v8883_v9  ;;  %v6035_v12 = vsel %vm2037_vm9, %v6026_v53, %v8884_v32  ;;  %v8859_v57 = vunpack.i.h.bf16 %v8857_v23  ;;  %v8858_v43 = vunpack.i.l.bf16 %v8857_v23 }
 0x810   : > { %v8892_v61 = vpop.permute.xlu1 %8891  ;;  %v8456_v39 = vpack.c.bf16 %v6035_v12, %v6034_v60  ;;  %v6054_v17 = vsel %vm2007_vm4, %v6045_v41, %v8848_v42  ;;  %v5982_v50 = vsel %vm2001_vm3, %v14947_v33, %v8838_v10  ;;  %v14950_v0 = vcombine.low %v14948_v56, %v14949_v26 }
 0x811   : > { %v5991_v23 = vsel %vm2007_vm4, %v5982_v50, %v8858_v43  ;;  %v8894_v59 = vunpack.i.h.bf16 %v8892_v61  ;;  %v8893_v42 = vunpack.i.l.bf16 %v8892_v61 }
 0x812   : > { %8457 = vmatpush1.bf16.msra.mxu1 %v8456_v39  ;;  %v8867_v6 = vpop.permute.xlu0 %8866  ;;  %v5983_v32 = vsel %vm2001_vm3, %v14950_v0, %v8839_v5 }
 0x813   : > { %v8869_v22 = vunpack.i.h.bf16 %v8867_v6  ;;  %v8868_v63 = vunpack.i.l.bf16 %v8867_v6  ;;  %v5992_v60 = vsel %vm2007_vm4, %v5983_v32, %v8859_v57 }
 0x814   : > { %v8902_v48 = vpop.permute.xlu1 %8901 }
 0x815   : > { %v6063_v45 = vsel %vm2013_vm5, %v6054_v17, %v8868_v63  ;;  %v6064_v37 = vsel %vm2013_vm5, %v6055_v62, %v8869_v22  ;;  %v8904_v12 = vunpack.i.h.bf16 %v8902_v48  ;;  %v8903_v39 = vunpack.i.l.bf16 %v8902_v48 }
 0x817   : > { %v8877_v7 = vpop.permute.xlu0 %8876 }
 0x818   : > { %v8912_v29 = vpop.permute.xlu1 %8911  ;;  %v8879_v4 = vunpack.i.h.bf16 %v8877_v7  ;;  %v8878_v19 = vunpack.i.l.bf16 %v8877_v7 }
 0x819   : > { %v8914_v5 = vunpack.i.h.bf16 %v8912_v29  ;;  %v8913_v10 = vunpack.i.l.bf16 %v8912_v29 }
 0x81a   : > { %v6000_v6 = vsel %vm2013_vm5, %v5991_v23, %v8878_v19  ;;  %v6001_v7 = vsel %vm2013_vm5, %v5992_v60, %v8879_v4 }
 0x81b   : > { %v8887_v36 = vpop.permute.xlu0 %8886  ;;  %v6010_v48 = vsel %vm2019_vm6, %v6001_v7, %v8894_v59 }
 0x81c   : > { %v8889_v49 = vunpack.i.h.bf16 %v8887_v36  ;;  %v8888_v54 = vunpack.i.l.bf16 %v8887_v36  ;;  %v8922_v40 = vpop.permute.xlu1 %8921  ;;  %v6019_v17 = vsel %vm2025_vm7, %v6010_v48, %v8914_v5 }
 0x81d   : > { %v8924_v14 = vunpack.i.h.bf16 %v8922_v40  ;;  %v8923_v52 = vunpack.i.l.bf16 %v8922_v40 }
 0x81e   : > { %v6072_v9 = vsel %vm2019_vm6, %v6063_v45, %v8888_v54  ;;  %v6073_v18 = vsel %vm2019_vm6, %v6064_v37, %v8889_v49  ;;  %v6009_v54 = vsel %vm2019_vm6, %v6000_v6, %v8893_v42 }
 0x81f   : > { %v12935_v22 = vpop.permute.xlu0 %8896  ;;  %v6081_v63 = vsel %vm2025_vm7, %v6072_v9, %v8903_v39  ;;  %v6082_v36 = vsel %vm2025_vm7, %v6073_v18, %v8904_v12  ;;  %v6018_v62 = vsel %vm2025_vm7, %v6009_v54, %v8913_v10  ;;  %v14951_v39 = vcombine.low %v14895_v3, %v14894_v46 }
 0x820   : > { %v8932_v53 = vpop.permute.xlu1 %8931  ;;  %v6090_v40 = vsel %vm2031_vm8, %v6081_v63, %v8923_v52  ;;  %v6091_v61 = vsel %vm2031_vm8, %v6082_v36, %v8924_v14 }
 0x821   : > { %v8934_v8 = vunpack.i.h.bf16 %v8932_v53  ;;  %v8933_v58 = vunpack.i.l.bf16 %v8932_v53 }
 0x823   : > { %v6027_v45 = vsel %vm2031_vm8, %v6018_v62, %v8933_v58  ;;  %v6028_v37 = vsel %vm2031_vm8, %v6019_v17, %v8934_v8 }
 0x824   : > { %v8942_v49 = vpop.permute.xlu1 %8941 }
 0x825   : > { %v8944_v20 = vunpack.i.h.bf16 %v8942_v49  ;;  %v8943_v41 = vunpack.i.l.bf16 %v8942_v49 }
 0x827   : > { %v8907_v1 = vpop.permute.xlu0 %8906  ;;  %v6099_v38 = vsel %vm2037_vm9, %v6090_v40, %v8943_v41  ;;  %v6100_v57 = vsel %vm2037_vm9, %v6091_v61, %v8944_v20  ;;  %v8899_v20 = vunpack.i.h.bf16 %v12935_v22  ;;  %v8898_v41 = vunpack.i.l.bf16 %v12935_v22 }
 0x828   : > { %v8952_v43 = vpop.permute.xlu1 %8951  ;;  %v8458_v29 = vpack.c.bf16 %v6100_v57, %v6099_v38  ;;  %v8909_v9 = vunpack.i.h.bf16 %v8907_v1  ;;  %v8908_v18 = vunpack.i.l.bf16 %v8907_v1 }
 0x829   : > { %v8954_v4 = vunpack.i.h.bf16 %v8952_v43  ;;  %v8953_v19 = vunpack.i.l.bf16 %v8952_v43 }
 0x82a   : > { %8459 = vmatprep.subr.bf16.mxu1 %v8458_v29  ;;  %v5984_v6 = vsel %vm2001_vm3, %v14951_v39, %v8908_v18  ;;  %v5985_v7 = vsel %vm2001_vm3, %v4106_v27, %v8909_v9 }
 0x82b   : > { %v8917_v15 = vpop.permute.xlu0 %8916  ;;  %v6036_v2 = vsel %vm2037_vm9, %v6027_v45, %v8953_v19  ;;  %v6037_v33 = vsel %vm2037_vm9, %v6028_v37, %v8954_v4 }
 0x82c   : > { %v8962_v50 = vpop.permute.xlu1 %8961  ;;  %v8460_v56 = vpack.c.bf16 %v6037_v33, %v6036_v2  ;;  %v8919_v43 = vunpack.i.h.bf16 %v8917_v15  ;;  %v8918_v29 = vunpack.i.l.bf16 %v8917_v15  ;;  %v14952_v33 = vcombine.low %v14890_v31, %v14889_v30 }
 0x82d   : > { %v8964_v42 = vunpack.i.h.bf16 %v8962_v50  ;;  %v8963_v63 = vunpack.i.l.bf16 %v8962_v50  ;;  %v6048_v15 = vsel %vm2001_vm3, %v5330_v28, %v8899_v20 }
 0x82e   : > { %8461 = vmatpush1.bf16.msra.mxu1 %v8460_v56  ;;  %v6047_v50 = vsel %vm2001_vm3, %v14952_v33, %v8898_v41 }
 0x830   : > { %v8927_v26 = vpop.permute.xlu0 %8926 }
 0x831   : > { %v8972_v0 = vpop.permute.xlu1 %8971  ;;  %v8929_v23 = vunpack.i.h.bf16 %v8927_v26  ;;  %v8928_v60 = vunpack.i.l.bf16 %v8927_v26 }
 0x832   : > { %v8974_v10 = vunpack.i.h.bf16 %v8972_v0  ;;  %v8973_v49 = vunpack.i.l.bf16 %v8972_v0  ;;  %v6057_v0 = vsel %vm2007_vm4, %v6048_v15, %v8919_v43  ;;  %v6104_v43 = vld [vmem:[#allocation9] sm:$0xff] }
 0x833   : > { %v5993_v36 = vsel %vm2007_vm4, %v5984_v6, %v8928_v60  ;;  %v5994_v5 = vsel %vm2007_vm4, %v5985_v7, %v8929_v23 }
 0x834   : > { %v8937_v32 = vpop.permute.xlu0 %8936 }
 0x835   : > { %v8939_v62 = vunpack.i.h.bf16 %v8937_v32  ;;  %v8938_v17 = vunpack.i.l.bf16 %v8937_v32  ;;  %v6056_v32 = vsel %vm2007_vm4, %v6047_v50, %v8918_v29 }
 0x837   : > { %v8982_v53 = vpop.permute.xlu1 %8981  ;;  %v6065_v9 = vsel %vm2013_vm5, %v6056_v32, %v8938_v17  ;;  %v6066_v18 = vsel %vm2013_vm5, %v6057_v0, %v8939_v62 }
 0x838   : > { %v8947_v12 = vpop.permute.xlu0 %8946  ;;  %v8984_v54 = vunpack.i.h.bf16 %v8982_v53  ;;  %v8983_v48 = vunpack.i.l.bf16 %v8982_v53 }
 0x839   : > { %v8949_v14 = vunpack.i.h.bf16 %v8947_v12  ;;  %v8948_v52 = vunpack.i.l.bf16 %v8947_v12 }
 0x83b   : > { %v8987_v59 = vpop.permute.xlu1 %8986  ;;  %v6002_v46 = vsel %vm2013_vm5, %v5993_v36, %v8948_v52  ;;  %v6003_v3 = vsel %vm2013_vm5, %v5994_v5, %v8949_v14 }
 0x83c   : > { %v6011_v25 = vsel %vm2019_vm6, %v6002_v46, %v8963_v63  ;;  %v6012_v16 = vsel %vm2019_vm6, %v6003_v3, %v8964_v42  ;;  %v8957_v27 = vpop.permute.xlu0 %8956  ;;  %v8989_v44 = vunpack.i.h.bf16 %v8987_v59  ;;  %v8988_v11 = vunpack.i.l.bf16 %v8987_v59 }
 0x83d   : > { %v6020_v58 = vsel %vm2025_vm7, %v6011_v25, %v8973_v49  ;;  %v6021_v40 = vsel %vm2025_vm7, %v6012_v16, %v8974_v10  ;;  %v8959_v45 = vunpack.i.h.bf16 %v8957_v27  ;;  %v8958_v37 = vunpack.i.l.bf16 %v8957_v27 }
 0x83e   : > { %v6029_v38 = vsel %vm2031_vm8, %v6020_v58, %v8983_v48  ;;  %v6030_v57 = vsel %vm2031_vm8, %v6021_v40, %v8984_v54  ;;  %v14953_v27 = vcombine.low %v12663_v21, %v12646_v34 }
 0x83f   : > { %v8992_v8 = vpop.permute.xlu1 %8991  ;;  %v6074_v31 = vsel %vm2019_vm6, %v6065_v9, %v8958_v37  ;;  %v6075_v30 = vsel %vm2019_vm6, %v6066_v18, %v8959_v45 }
 0x840   : > { %v8994_v61 = vunpack.i.h.bf16 %v8992_v8  ;;  %v8993_v1 = vunpack.i.l.bf16 %v8992_v8  ;;  %v8967_v4 = vpop.permute.xlu0 %8966 }
 0x841   : > { %v8969_v56 = vunpack.i.h.bf16 %v8967_v4  ;;  %v8968_v26 = vunpack.i.l.bf16 %v8967_v4 }
 0x842   : > { %v6038_v19 = vsel %vm2037_vm9, %v6029_v38, %v8993_v1  ;;  %v6039_v22 = vsel %vm2037_vm9, %v6030_v57, %v8994_v61 }
 0x843   : > { %v8464_v2 = vpack.c.bf16 %v6039_v22, %v6038_v19  ;;  %v6083_v28 = vsel %vm2025_vm7, %v6074_v31, %v8968_v26  ;;  %v6084_v12 = vsel %vm2025_vm7, %v6075_v30, %v8969_v56  ;;  %v5536_v39 = vpop.permute.xlu1 %5535  ;;  %v9257_v30 = vmov 4  }
 0x844   : > { %v8977_v53 = vpop.permute.xlu0 %8976  ;;  %8996 = vset.pattern.permute.xlu1 %v9257_v30 }
 0x845   : > { %v8979_v23 = vunpack.i.h.bf16 %v8977_v53  ;;  %v8978_v60 = vunpack.i.l.bf16 %v8977_v53 }
 0x847   : > { %v6092_v6 = vsel %vm2031_vm8, %v6083_v28, %v8978_v60  ;;  %v6093_v7 = vsel %vm2031_vm8, %v6084_v12, %v8979_v23  ;;  %v5572_v36 = vpop.permute.xlu1 %5571  ;;  %v9258_v23 = vmov 5  }
 0x848   : > { %v5752_v14 = vpop.permute.xlu0 %5751  ;;  %v6101_v52 = vsel %vm2037_vm9, %v6092_v6, %v8988_v11  ;;  %v6102_v42 = vsel %vm2037_vm9, %v6093_v7, %v8989_v44  ;;  %8997 = vset.pattern.permute.xlu0 %v9258_v23 }
 0x849   : > { %v8462_v63 = vpack.c.bf16 %v6102_v42, %v6101_v52  ;;  %v6049_v20 = vsel %vm2001_vm3, %v14953_v27, %v5752_v14 }
 0x84b   : > { %8463 = vmatprep.subr.bf16.mxu1 %v8462_v63  ;;  %v5608_v10 = vpop.permute.xlu1 %5607 }
 0x84c   : > { %v5500_v5 = vpop.permute.xlu0 %5499  ;;  %8465 = vmatpush1.bf16.msra.mxu1 %v8464_v2 }
 0x84d   : > { %v5986_v54 = vsel %vm2001_vm3, %v4242_v13, %v5500_v5  ;;  %vm8007_vm3 = vcmask 458112  }
 0x84e   : > { %v5995_v25 = vsel %vm2007_vm4, %v5986_v54, %v5536_v39 }
 0x84f   : > { %v5644_v46 = vpop.permute.xlu1 %5643  ;;  %v6004_v41 = vsel %vm2013_vm5, %v5995_v25, %v5572_v36 }
 0x850   : > { %v5788_v59 = vpop.permute.xlu0 %5787  ;;  %v6013_v55 = vsel %vm2019_vm6, %v6004_v41, %v5608_v10 }
 0x851   : > { %v6058_v8 = vsel %vm2007_vm4, %v6049_v20, %v5788_v59  ;;  %v6022_v1 = vsel %vm2025_vm7, %v6013_v55, %v5644_v46  ;;  %v14954_v20 = vld [vmem:[#allocation33_spill] sm:$0xff]  ;;  %v14955_v55 = vld [vmem:[#allocation32_spill] sm:$0xff]  ;;  %vm8014_vm4 = vcmask 523712  }
 0x853   : > { %v5680_v16 = vpop.permute.xlu1 %5679 }
 0x854   : > { %v5824_v49 = vpop.permute.xlu0 %5823  ;;  %v6031_v38 = vsel %vm2031_vm8, %v6022_v1, %v5680_v16 }
 0x855   : > { %v6067_v40 = vsel %vm2013_vm5, %v6058_v8, %v5824_v49  ;;  %vm8021_vm5 = vcmask 589312  }
 0x857   : > { %v5716_v13 = vpop.permute.xlu1 %5715 }
 0x858   : > { %v5860_v3 = vpop.permute.xlu0 %5859  ;;  %v6040_v29 = vsel %vm2037_vm9, %v6031_v38, %v5716_v13 }
 0x859   : > { %v6076_v24 = vsel %vm2019_vm6, %v6067_v40, %v5860_v3  ;;  %vm8028_vm6 = vcmask 654912  }
 0x85c   : > { %v5896_v48 = vpop.permute.xlu0 %5895 }
 0x85d   : > { %v6085_v61 = vsel %vm2025_vm7, %v6076_v24, %v5896_v48  ;;  %vm8035_vm7 = vcmask 720512  }
 0x860   : > { %v5932_v58 = vpop.permute.xlu0 %5931 }
 0x861   : > { %v6094_v34 = vsel %vm2031_vm8, %v6085_v61, %v5932_v58  ;;  %vm8042_vm8 = vcmask 786112  }
 0x864   : > { %v5968_v21 = vpop.permute.xlu0 %5967 }
 0x865   : > { %v6103_v57 = vsel %vm2037_vm9, %v6094_v34, %v5968_v21  ;;  %vm8049_vm9 = vcmask 851712  }
 0x866   : > { %6129 = vmatprep.subr.mxu1 %v6103_v57 }
 0x867   : > { %6130 = vmatpush1.msra.mxu1 %v6040_v29 }
 0x868   : > { %8436 = vmatmul.mubr.msk.f32.vlgmr.msra.gmra.mrb[0].mxu1 %vm6109_vm12, %v6104_v43  ;;  %vm8070_vm12 = vcmask 1048512  }
 0x875   : > { %v6107_v62 = vpop.permute.xlu0 %6106 }
 0x93b   : > { %v6179_v17 = vpop.f32.mrb[0].mxu1 }
 0x93c   : > { %v6180_v4 = vadd.f32 %v6179_v17, %v6107_v62  ;;  %v6181_v19 = vpop.f32.mrb[1].mxu1 }
 0x93d   : > { %v6182_v22 = vadd.f32 %v6181_v19, %v6107_v62 }
 0x93f   : > { %v6184_v45 = vadd.f32 %v6182_v22, %v6180_v4 }
 0x941   : > { %6185 = vadd.xlane.f32.xlu1 %v6184_v45 }
 0x952   : > { %6219 = vperm.xlu1 %8996, %v12848_v35  }
 0x9ce   : > { %v6186_v37 = vpop.xlane.xlu1 %6185 }
 0x9cf   : > { %v6187_v2 = vrot.slane %v6186_v37, 4 }
 0x9d1   : > { %v6188_v33 = vadd.f32 %v6187_v2, %v6186_v37 }
 0x9d2   : > { %v6220_v42 = vpop.permute.xlu1 %6219 }
 0x9d3   : > { %v6189_v50 = vrot.slane %v6188_v33, 2 }
 0x9d5   : > { %v6190_v15 = vadd.f32 %v6189_v50, %v6188_v33 }
 0x9d7   : > { %v6191_v56 = vrot.slane %v6190_v15, 1 }
 0x9d9   : > { %v6192_v26 = vadd.f32 %v6191_v56, %v6190_v15 }
 0x9db   : > { %8472 = vpush %v6192_v26 }
 0xa0c   : > { %s8473_s10 = spop %8472 }
 0xa0d   : > { %s6194_s8 = smul.f32 0.00048828125, %s8473_s10 }
 0xa0f   : > { %v6195_v0 = vstv %s6194_s8 }
 0xa10   : > { %v6196_v32 = vsub.f32 %v6180_v4, %v6195_v0  ;;  %v6197_v9 = vsub.f32 %v6182_v22, %v6195_v0 }
 0xa12   : > { %v6198_v18 = vmul.f32 %v6196_v32, %v6196_v32  ;;  %v6199_v53 = vmul.f32 %v6197_v9, %v6197_v9 }
 0xa14   : > { %v6200_v31 = vadd.f32 %v6199_v53, %v6198_v18 }
 0xa16   : > { %6201 = vadd.xlane.f32.xlu0 %v6200_v31 }
 0xa2c   : > { %6225 = vperm.xlu0 %8997, %v12848_v35  }
 0xaa3   : > { %v6202_v60 = vpop.xlane.xlu0 %6201 }
 0xaa4   : > { %v6203_v44 = vrot.slane %v6202_v60, 4 }
 0xaa6   : > { %v6204_v11 = vadd.f32 %v6203_v44, %v6202_v60 }
 0xaa8   : > { %v6205_v28 = vrot.slane %v6204_v11, 2 }
 0xaaa   : > { %v6206_v12 = vadd.f32 %v6205_v28, %v6204_v11 }
 0xaab   : > { %v6226_v36 = vpop.permute.xlu0 %6225 }
 0xaac   : > { %v6207_v39 = vrot.slane %v6206_v12, 1 }
 0xaae   : > { %v6208_v6 = vadd.f32 %v6207_v39, %v6206_v12 }
 0xab0   : > { %8474 = vpush %v6208_v6 }
 0xae1   : > { %s8475_s30 = spop %8474 }
 0xae2   : > { %s6210_s22 = smul.f32 0.00048828125, %s8475_s30  ;;  %s14237_s30 = scalar_lea.hbm %s14285_s4, %s8438_s6 }
 0xae4   : > { %s6211_s5 = sadd.f32 1e-05, %s6210_s22  ;;  %s9163_s22 = scalar_lea.vmem %s14239_s29, 64 }
 0xae5   : > { %p9164_p8 = scmp.ne.s32.totalorder %s14239_s29, %s9163_s22 }
 0xae6   : > { %v6212_v7 = vstv %s6211_s5  ;;  %s9265_s5 = smov [#allocation10]  }
 0xae7   : > { %9070 = vrsqrt.f32 %v6212_v7  ;;  %p9165_p5 = pnand %p9164_p8, %p15008_p4 }
 0xae9   : > { %p9166_p10 = pneg %p9165_p5 }
 0xaf1   : > { %v9071_v14 = vpop.eup %9070 }
 0xaf2   : > { %8476 = vpush %v9071_v14 }
 0xb23   : > { %s8477_s23 = spop %8476 }
 0xb24   : > { %v6215_v52 = vstv %s8477_s23  ;;  %s9167_s23 = sshll.u32 %s9265_s5, 4  ;;  %s9168_s23 = int_to_ptr.vmem [resolvable:$false] %s9167_s23 }
 0xb25   : > { %v6216_v63 = vmul.f32 %v6215_v52, %v6196_v32  ;;  %v6217_v35 = vmul.f32 %v6215_v52, %v6197_v9  ;;  %p9170_p2 = scmp.lt.s32.totalorder %s14239_s29, %s9168_s23 }
 0xb27   : > { %v6222_v5 = vmul.f32 %v6220_v42, %v6216_v63  ;;  %v6223_v59 = vmul.f32 %v6220_v42, %v6217_v35 }
 0xb29   : > { %v6228_v10 = vadd.f32 %v6226_v36, %v6222_v5  ;;  %v6229_v49 = vadd.f32 %v6226_v36, %v6223_v59 }
 0xb2b   : > { %v6232_v46 = vmul.f32 0.70710677, %v6228_v10  ;;  %v6233_v3 = vmul.f32 0.70710677, %v6229_v49  ;;  %v6230_v48 = vmul.f32 0.5, %v6228_v10  ;;  %v6231_v40 = vmul.f32 0.5, %v6229_v49 }
 0xb2d   : > { %9072 = verf.f32 %v6232_v46 }
 0xb2e   : > { %9074 = verf.f32 %v6233_v3 }
 0xb37   : > { %v9073_v54 = vpop.eup %9072 }
 0xb38   : > { %v6236_v25 = vadd.f32 1.0, %v9073_v54  ;;  %v9075_v27 = vpop.eup %9074 }
 0xb39   : > { %v6237_v8 = vadd.f32 1.0, %v9075_v27 }
 0xb3a   : > { %v6238_v16 = vmul.f32 %v6236_v25, %v6230_v48 }
 0xb3b   : > { %v6239_v24 = vmul.f32 %v6237_v8, %v6231_v40 }
 0xb3c   : > { %v6240_v41 = vadd.f32 %v6238_v16, %v14954_v20 }
 0xb3d   : > { %v6241_v13 = vadd.f32 %v6239_v24, %v14955_v55 }
 0xb3e   : > { %v6242_v58 = vmul.f32 0.7072136, %v6240_v41 }
 0xb3f   : > { %v6243_v61 = vmul.f32 0.7072136, %v6241_v13 }
 0xb40   : > { %6245 = vrot.lane.b32.xlu1 %v6242_v58, %s9248_s20 }
 0xb44   : > { %6248 = vrot.lane.b32.xlu1 %v6242_v58, %s9247_s14 }
 0xb48   : > { %6251 = vrot.lane.b32.xlu1 %v6242_v58, %s9246_s13 }
 0xb4c   : > { %6255 = vrot.lane.b32.xlu1 %v6243_v61, %s9248_s20  ;;  %s9262_s20 = smov 118  }
 0xb50   : > { %6258 = vrot.lane.b32.xlu1 %v6243_v61, %s9247_s14  ;;  %s9260_s14 = smov 122  }
 0xb54   : > { %6261 = vrot.lane.b32.xlu1 %v6243_v61, %s9246_s13  ;;  %s9259_s13 = smov 124  }
 0xbb2   : > { %v6246_v1 = vpop.permute.xlu1 %6245 }
 0xbb6   : > { %v6249_v34 = vpop.permute.xlu1 %6248 }
 0xbb7   : > { %v6264_v29 = vcombine.low %v6242_v58, %v6249_v34  ;;  %v6265_v56 = vcombine.high %v6242_v58, %v6249_v34 }
 0xbb9   : > { %v6272_v19 = vrot.slane %v6264_v29, %v9595_v47  ;;  %v6279_v23 = vrot.slane %v6265_v56, %v9595_v47 }
 0xbba   : > { %v6252_v21 = vpop.permute.xlu1 %6251 }
 0xbbb   : > { %v6280_v57 = vcombine.low %v6246_v1, %v6252_v21  ;;  %v6281_v37 = vcombine.high %v6246_v1, %v6252_v21 }
 0xbbd   : > { %v6288_v62 = vrot.slane %v6280_v57, %v9595_v47  ;;  %v6295_v9 = vrot.slane %v6281_v37, %v9595_v47 }
 0xbbe   : > { %v6256_v38 = vpop.permute.xlu1 %6255 }
 0xbbf   : > { %v6328_v2 = vcombine.low %v6272_v19, %v6288_v62  ;;  %v6329_v18 = vcombine.high %v6272_v19, %v6288_v62  ;;  %v6344_v12 = vcombine.low %v6279_v23, %v6295_v9  ;;  %v6345_v42 = vcombine.high %v6279_v23, %v6295_v9 }
 0xbc1   : > { %v6336_v31 = vrot.slane %v6328_v2, %v9790_v51  ;;  %v6343_v39 = vrot.slane %v6329_v18, %v9790_v51  ;;  %v6352_v63 = vrot.slane %v6344_v12, %v9790_v51  ;;  %v6359_v59 = vrot.slane %v6345_v42, %v9790_v51 }
 0xbc2   : > { %v6259_v43 = vpop.permute.xlu1 %6258 }
 0xbc3   : > { %v6296_v17 = vcombine.low %v6243_v61, %v6259_v43  ;;  %v6297_v33 = vcombine.high %v6243_v61, %v6259_v43 }
 0xbc5   : > { %v6304_v50 = vrot.slane %v6296_v17, %v9595_v47  ;;  %v6311_v53 = vrot.slane %v6297_v33, %v9595_v47 }
 0xbc6   : > { %v6262_v4 = vpop.permute.xlu1 %6261 }
 0xbc7   : > { %v6312_v22 = vcombine.low %v6256_v38, %v6262_v4  ;;  %v6313_v45 = vcombine.high %v6256_v38, %v6262_v4 }
 0xbc9   : > { %v6320_v15 = vrot.slane %v6312_v22, %v9595_v47  ;;  %v6327_v26 = vrot.slane %v6313_v45, %v9595_v47 }
 0xbcb   : > { %v6360_v0 = vcombine.low %v6304_v50, %v6320_v15  ;;  %v6361_v32 = vcombine.high %v6304_v50, %v6320_v15  ;;  %v6376_v60 = vcombine.low %v6311_v53, %v6327_v26  ;;  %v6377_v6 = vcombine.high %v6311_v53, %v6327_v26 }
 0xbcd   : > { %v6368_v30 = vrot.slane %v6360_v0, %v9790_v51  ;;  %v6375_v28 = vrot.slane %v6361_v32, %v9790_v51  ;;  %v6384_v52 = vrot.slane %v6376_v60, %v9790_v51  ;;  %v6391_v5 = vrot.slane %v6377_v6, %v9790_v51 }
 0xbcf   : > { %v6393_v44 = vcombine.high %v6336_v31, %v6368_v30  ;;  %v6392_v11 = vcombine.low %v6336_v31, %v6368_v30  ;;  %v6395_v7 = vcombine.high %v6343_v39, %v6375_v28  ;;  %v6394_v14 = vcombine.low %v6343_v39, %v6375_v28 }
 0xbd0   : > { %v6397_v35 = vcombine.high %v6352_v63, %v6384_v52  ;;  %v6396_v36 = vcombine.low %v6352_v63, %v6384_v52  ;;  %v6399_v10 = vcombine.high %v6359_v59, %v6391_v5  ;;  %v6398_v49 = vcombine.low %v6359_v59, %v6391_v5 }
 0xbd1   : > { %6410 = vrot.lane.b32.xlu0 %v6393_v44, %s9252_s11  ;;  %6408 = vrot.lane.b32.xlu1 %v6392_v11, %s9252_s11 }
 0xbd5   : > { %6414 = vrot.lane.b32.xlu0 %v6395_v7, %s9252_s11  ;;  %6412 = vrot.lane.b32.xlu1 %v6394_v14, %s9252_s11 }
 0xbd9   : > { %6418 = vrot.lane.b32.xlu0 %v6397_v35, %s9252_s11  ;;  %6416 = vrot.lane.b32.xlu1 %v6396_v36, %s9252_s11 }
 0xbdd   : > { %6422 = vrot.lane.b32.xlu0 %v6399_v10, %s9252_s11  ;;  %6420 = vrot.lane.b32.xlu1 %v6398_v49, %s9252_s11  ;;  %s9263_s11 = smov 116  }
 0xc43   : > { %v6411_v46 = vpop.permute.xlu0 %6410  ;;  %v6409_v3 = vpop.permute.xlu1 %6408 }
 0xc44   : > { %v13047_v54 = vmax.f32 %v6393_v44, %v6411_v46  ;;  %v13049_v48 = vmax.f32 %v6392_v11, %v6409_v3 }
 0xc46   : > { %6450 = vrot.lane.b32.xlu0 %v13047_v54, %s9244_s7  ;;  %6448 = vrot.lane.b32.xlu1 %v13049_v48, %s9244_s7 }
 0xc47   : > { %v6415_v25 = vpop.permute.xlu0 %6414  ;;  %v6413_v16 = vpop.permute.xlu1 %6412 }
 0xc48   : > { %v13055_v27 = vmax.f32 %v6395_v7, %v6415_v25  ;;  %v13057_v20 = vmax.f32 %v6394_v14, %v6413_v16 }
 0xc4a   : > { %6454 = vrot.lane.b32.xlu0 %v13055_v27, %s9244_s7  ;;  %6452 = vrot.lane.b32.xlu1 %v13057_v20, %s9244_s7 }
 0xc4b   : > { %v6419_v41 = vpop.permute.xlu0 %6418  ;;  %v6417_v8 = vpop.permute.xlu1 %6416 }
 0xc4c   : > { %v13063_v58 = vmax.f32 %v6397_v35, %v6419_v41  ;;  %v13065_v40 = vmax.f32 %v6396_v36, %v6417_v8 }
 0xc4e   : > { %6458 = vrot.lane.b32.xlu0 %v13063_v58, %s9244_s7  ;;  %6456 = vrot.lane.b32.xlu1 %v13065_v40, %s9244_s7 }
 0xc4f   : > { %v6423_v24 = vpop.permute.xlu0 %6422  ;;  %v6421_v55 = vpop.permute.xlu1 %6420 }
 0xc50   : > { %v13071_v13 = vmax.f32 %v6399_v10, %v6423_v24  ;;  %v13073_v61 = vmax.f32 %v6398_v49, %v6421_v55 }
 0xc52   : > { %6462 = vrot.lane.b32.xlu0 %v13071_v13, %s9244_s7  ;;  %6460 = vrot.lane.b32.xlu1 %v13073_v61, %s9244_s7  ;;  %s9261_s7 = smov 120  }
 0xc56   : > { %6474 = vrot.lane.b32.xlu0 %v13047_v54, %s9259_s13  ;;  %6472 = vrot.lane.b32.xlu1 %v13049_v48, %s9259_s13 }
 0xc5a   : > { %6478 = vrot.lane.b32.xlu0 %v13055_v27, %s9259_s13  ;;  %6476 = vrot.lane.b32.xlu1 %v13057_v20, %s9259_s13 }
 0xc5e   : > { %6482 = vrot.lane.b32.xlu0 %v13063_v58, %s9259_s13  ;;  %6480 = vrot.lane.b32.xlu1 %v13065_v40, %s9259_s13 }
 0xc62   : > { %6486 = vrot.lane.b32.xlu0 %v13071_v13, %s9259_s13  ;;  %6484 = vrot.lane.b32.xlu1 %v13073_v61, %s9259_s13  ;;  %s9169_s13 = scalar_lea.vmem %s9168_s23, 128 }
 0xc63   : > { %p9171_p0 = scmp.lt.s32.totalorder %s9169_s13, %s9163_s22 }
 0xc65   : > { %p9172_p9 = por %p9171_p0, %p9170_p2 }
 0xc66   : > { %6498 = vrot.lane.b32.xlu0 %v13047_v54, %s9260_s14  ;;  %6496 = vrot.lane.b32.xlu1 %v13049_v48, %s9260_s14 }
 0xc67   : > { %p9173_p6 = pnand %p9172_p9, %p9166_p10 }
 0xc6a   : > { %6502 = vrot.lane.b32.xlu0 %v13055_v27, %s9260_s14  ;;  %6500 = vrot.lane.b32.xlu1 %v13057_v20, %s9260_s14 }
 0xc6e   : > { %6506 = vrot.lane.b32.xlu0 %v13063_v58, %s9260_s14  ;;  %6504 = vrot.lane.b32.xlu1 %v13065_v40, %s9260_s14 }
 0xc72   : > { %6510 = vrot.lane.b32.xlu0 %v13071_v13, %s9260_s14  ;;  %6508 = vrot.lane.b32.xlu1 %v13073_v61, %s9260_s14 }
 0xc76   : > { %6522 = vrot.lane.b32.xlu0 %v13047_v54, %s9261_s7  ;;  %6520 = vrot.lane.b32.xlu1 %v13049_v48, %s9261_s7 }
 0xc7a   : > { %6526 = vrot.lane.b32.xlu0 %v13055_v27, %s9261_s7  ;;  %6524 = vrot.lane.b32.xlu1 %v13057_v20, %s9261_s7 }
 0xc7e   : > { %6530 = vrot.lane.b32.xlu0 %v13063_v58, %s9261_s7  ;;  %6528 = vrot.lane.b32.xlu1 %v13065_v40, %s9261_s7 }
 0xc82   : > { %6534 = vrot.lane.b32.xlu0 %v13071_v13, %s9261_s7  ;;  %6532 = vrot.lane.b32.xlu1 %v13073_v61, %s9261_s7 }
 0xc86   : > { %6546 = vrot.lane.b32.xlu0 %v13047_v54, %s9262_s20  ;;  %6544 = vrot.lane.b32.xlu1 %v13049_v48, %s9262_s20 }
 0xc8a   : > { %6550 = vrot.lane.b32.xlu0 %v13055_v27, %s9262_s20  ;;  %6548 = vrot.lane.b32.xlu1 %v13057_v20, %s9262_s20 }
 0xc8e   : > { %6554 = vrot.lane.b32.xlu0 %v13063_v58, %s9262_s20  ;;  %6552 = vrot.lane.b32.xlu1 %v13065_v40, %s9262_s20 }
 0xc92   : > { %6558 = vrot.lane.b32.xlu0 %v13071_v13, %s9262_s20  ;;  %6556 = vrot.lane.b32.xlu1 %v13073_v61, %s9262_s20 }
 0xc96   : > { %6570 = vrot.lane.b32.xlu0 %v13047_v54, %s9263_s11  ;;  %6568 = vrot.lane.b32.xlu1 %v13049_v48, %s9263_s11 }
 0xc9a   : > { %6574 = vrot.lane.b32.xlu0 %v13055_v27, %s9263_s11  ;;  %6572 = vrot.lane.b32.xlu1 %v13057_v20, %s9263_s11 }
 0xc9e   : > { %6578 = vrot.lane.b32.xlu0 %v13063_v58, %s9263_s11  ;;  %6576 = vrot.lane.b32.xlu1 %v13065_v40, %s9263_s11 }
 0xca2   : > { %6596 = vrot.lane.b32.xlu0 %v13057_v20, %s9264_s25  ;;  %6592 = vrot.lane.b32.xlu1 %v13049_v48, %s9264_s25 }
 0xca6   : > { %6580 = vrot.lane.b32.xlu0 %v13073_v61, %s9263_s11  ;;  %6600 = vrot.lane.b32.xlu1 %v13065_v40, %s9264_s25 }
 0xcaa   : > { %6594 = vrot.lane.b32.xlu0 %v13047_v54, %s9264_s25  ;;  %6604 = vrot.lane.b32.xlu1 %v13073_v61, %s9264_s25 }
 0xcae   : > { %6602 = vrot.lane.b32.xlu0 %v13063_v58, %s9264_s25  ;;  %6598 = vrot.lane.b32.xlu1 %v13055_v27, %s9264_s25 }
 0xcb2   : > { %6606 = vrot.lane.b32.xlu0 %v13071_v13, %s9264_s25  ;;  %6582 = vrot.lane.b32.xlu1 %v13071_v13, %s9263_s11 }
 0xcb8   : > { %v13127_v1 = vpop.permute.xlu0 %6450  ;;  %v13129_v34 = vpop.permute.xlu1 %6448 }
 0xcbc   : > { %v13131_v21 = vpop.permute.xlu0 %6454  ;;  %v13133_v38 = vpop.permute.xlu1 %6452 }
 0xcc0   : > { %v13135_v57 = vpop.permute.xlu0 %6458  ;;  %v13137_v43 = vpop.permute.xlu1 %6456 }
 0xcc4   : > { %v13139_v29 = vpop.permute.xlu0 %6462  ;;  %v13141_v62 = vpop.permute.xlu1 %6460 }
 0xcc8   : > { %v6475_v17 = vpop.permute.xlu0 %6474  ;;  %v6473_v4 = vpop.permute.xlu1 %6472 }
 0xcc9   : > { %v6752_v11 = vcombine.low %v13047_v54, %v6475_v17  ;;  %v6753_v28 = vcombine.high %v13047_v54, %v6475_v17  ;;  %v6616_v12 = vcombine.low %v13049_v48, %v6473_v4  ;;  %v6617_v39 = vcombine.high %v13049_v48, %v6473_v4 }
 0xccb   : > { %v13179_v52 = vrot.slane %v6752_v11, %v9595_v47  ;;  %v13182_v42 = vrot.slane %v6753_v28, %v9595_v47  ;;  %v6624_v63 = vrot.slane %v6616_v12, %v9595_v47  ;;  %v13187_v36 = vrot.slane %v6617_v39, %v9595_v47 }
 0xccc   : > { %v6479_v19 = vpop.permute.xlu0 %6478  ;;  %v6477_v22 = vpop.permute.xlu1 %6476 }
 0xccd   : > { %v7024_v14 = vcombine.low %v13055_v27, %v6479_v19  ;;  %v7025_v5 = vcombine.high %v13055_v27, %v6479_v19  ;;  %v6888_v59 = vcombine.low %v13057_v20, %v6477_v22  ;;  %v6889_v10 = vcombine.high %v13057_v20, %v6477_v22 }
 0xccf   : > { %v13201_v16 = vrot.slane %v7024_v14, %v9595_v47  ;;  %v13215_v17 = vrot.slane %v6888_v59, %v9595_v47  ;;  %v13218_v4 = vrot.slane %v6889_v10, %v9595_v47 }
 0xcd0   : > { %v6483_v45 = vpop.permute.xlu0 %6482  ;;  %v6481_v37 = vpop.permute.xlu1 %6480 }
 0xcd1   : > { %v7296_v49 = vcombine.low %v13063_v58, %v6483_v45  ;;  %v7297_v46 = vcombine.high %v13063_v58, %v6483_v45  ;;  %v7160_v27 = vcombine.low %v13065_v40, %v6481_v37  ;;  %v7161_v41 = vcombine.high %v13065_v40, %v6481_v37 }
 0xcd3   : > { %v13226_v19 = vrot.slane %v7297_v46, %v9595_v47 }
 0xcd4   : > { %v6487_v2 = vpop.permute.xlu0 %6486  ;;  %v13143_v33 = vpop.permute.xlu1 %6484 }
 0xcd5   : > { %v7568_v20 = vcombine.low %v13071_v13, %v6487_v2  ;;  %v7569_v8 = vcombine.high %v13071_v13, %v6487_v2  ;;  %v7432_v58 = vcombine.low %v13073_v61, %v13143_v33  ;;  %v7433_v40 = vcombine.high %v13073_v61, %v13143_v33 }
 0xcd6   : > { %v13223_v13 = vrot.slane %v7296_v49, %v9595_v47  ;;  %v13237_v2 = vrot.slane %v7160_v27, %v9595_v47  ;;  %v13240_v61 = vrot.slane %v7161_v41, %v9595_v47 }
 0xcd7   : > { %v13243_v33 = vrot.slane %v7568_v20, %v9595_v47  ;;  %v13251_v11 = vrot.slane %v7432_v58, %v9595_v47  ;;  %v13257_v39 = vrot.slane %v7433_v40, %v9595_v47 }
 0xcd8   : > { %v6499_v50 = vpop.permute.xlu0 %6498  ;;  %v6497_v15 = vpop.permute.xlu1 %6496 }
 0xcd9   : > { %v6632_v35 = vcombine.low %v13129_v34, %v6497_v15  ;;  %v6768_v3 = vcombine.low %v13127_v1, %v6499_v50  ;;  %v6633_v54 = vcombine.high %v13129_v34, %v6497_v15  ;;  %v6769_v24 = vcombine.high %v13127_v1, %v6499_v50 }
 0xcda   : > { %v13212_v34 = vrot.slane %v7025_v5, %v9595_v47  ;;  %v13248_v15 = vrot.slane %v7569_v8, %v9595_v47 }
 0xcdb   : > { %v6640_v55 = vrot.slane %v6632_v35, %v9595_v47  ;;  %v13229_v1 = vrot.slane %v6768_v3, %v9595_v47  ;;  %v6647_v22 = vrot.slane %v6633_v54, %v9595_v47  ;;  %v13254_v28 = vrot.slane %v6769_v24, %v9595_v47 }
 0xcdc   : > { %v13145_v56 = vpop.permute.xlu0 %6502  ;;  %v13147_v26 = vpop.permute.xlu1 %6500 }
 0xcdd   : > { %v7040_v50 = vcombine.low %v13131_v21, %v13145_v56  ;;  %v6680_v12 = vcombine.low %v6624_v63, %v6640_v55  ;;  %v6681_v14 = vcombine.high %v6624_v63, %v6640_v55  ;;  %v7041_v35 = vcombine.high %v13131_v21, %v13145_v56 }
 0xcde   : > { %v6904_v5 = vcombine.low %v13133_v38, %v13147_v26  ;;  %v6816_v59 = vcombine.low %v13179_v52, %v13229_v1  ;;  %v6696_v10 = vcombine.low %v13187_v36, %v6647_v22  ;;  %v6697_v49 = vcombine.high %v13187_v36, %v6647_v22 }
 0xcdf   : > { %v6905_v46 = vcombine.high %v13133_v38, %v13147_v26  ;;  %v6817_v21 = vcombine.high %v13179_v52, %v13229_v1  ;;  %v13276_v56 = vrot.slane %v7040_v50, %v9595_v47  ;;  %v6832_v36 = vcombine.low %v13182_v42, %v13254_v28 }
 0xce0   : > { %v13149_v0 = vpop.permute.xlu0 %6506  ;;  %v13151_v32 = vpop.permute.xlu1 %6504  ;;  %v6833_v38 = vcombine.high %v13182_v42, %v13254_v28  ;;  %v13289_v52 = vrot.slane %v6680_v12, %v9790_v51  ;;  %v13292_v41 = vrot.slane %v7041_v35, %v9595_v47  ;;  %v6912_v20 = vrot.slane %v6904_v5, %v9595_v47 }
 0xce1   : > { %v7312_v63 = vcombine.low %v13135_v57, %v13149_v0  ;;  %v7313_v27 = vcombine.high %v13135_v57, %v13149_v0  ;;  %v7176_v26 = vcombine.low %v13137_v43, %v13151_v32  ;;  %v7177_v57 = vcombine.high %v13137_v43, %v13151_v32 }
 0xce2   : > { %v13298_v0 = vrot.slane %v6681_v14, %v9790_v51  ;;  %v13301_v8 = vrot.slane %v6905_v46, %v9595_v47  ;;  %v13310_v55 = vrot.slane %v6696_v10, %v9790_v51  ;;  %v13313_v40 = vrot.slane %v6697_v49, %v9790_v51 }
 0xce3   : > { %v7088_v43 = vcombine.low %v13201_v16, %v13276_v56  ;;  %v13318_v32 = vrot.slane %v7312_v63, %v9595_v47  ;;  %v13321_v1 = vrot.slane %v7313_v27, %v9595_v47  ;;  %v7089_v50 = vcombine.high %v13201_v16, %v13276_v56 }
 0xce4   : > { %v13153_v9 = vpop.permute.xlu0 %6510  ;;  %v13155_v18 = vpop.permute.xlu1 %6508  ;;  %v7184_v28 = vrot.slane %v7176_v26, %v9595_v47  ;;  %v6952_v10 = vcombine.low %v13215_v17, %v6912_v20  ;;  %v7191_v49 = vrot.slane %v7177_v57, %v9595_v47  ;;  %v6953_v16 = vcombine.high %v13215_v17, %v6912_v20 }
 0xce5   : > { %v7448_v42 = vcombine.low %v13141_v62, %v13155_v18  ;;  %14956 = vst [vmem:[#allocation27_spill] sm:$0xff] %v13321_v1  ;;  %v7584_v22 = vcombine.low %v13139_v29, %v13153_v9  ;;  %v7585_v12 = vcombine.high %v13139_v29, %v13153_v9  ;;  %v7449_v14 = vcombine.high %v13141_v62, %v13155_v18 }
 0xce6   : > { %v6968_v46 = vcombine.low %v13218_v4, %v13301_v8  ;;  %v6969_v29 = vcombine.high %v13218_v4, %v13301_v8  ;;  %v7360_v56 = vcombine.low %v13223_v13, %v13318_v32  ;;  %v7361_v63 = vcombine.high %v13223_v13, %v13318_v32 }
 0xce7   : > { %v7456_v62 = vrot.slane %v7448_v42, %v9595_v47  ;;  %v7376_v17 = vcombine.low %v13226_v19, %v13321_v1  ;;  %v7592_v27 = vrot.slane %v7584_v22, %v9595_v47  ;;  %v7224_v26 = vcombine.low %v13237_v2, %v7184_v28 }
 0xce8   : > { %v13157_v53 = vpop.permute.xlu0 %6522  ;;  %v13159_v31 = vpop.permute.xlu1 %6520  ;;  %v13359_v20 = vrot.slane %v7585_v12, %v9595_v47  ;;  %v7463_v57 = vrot.slane %v7449_v14, %v9595_v47  ;;  %v7225_v8 = vcombine.high %v13237_v2, %v7184_v28  ;;  %v7240_v42 = vcombine.low %v13240_v61, %v7191_v49 }
 0xce9   : > { %v7241_v13 = vcombine.high %v13240_v61, %v7191_v49  ;;  %v13366_v32 = vrot.slane %v6816_v59, %v9790_v51  ;;  %v7496_v22 = vcombine.low %v13251_v11, %v7456_v62  ;;  %v7497_v4 = vcombine.high %v13251_v11, %v7456_v62 }
 0xcea   : > { %v13375_v12 = vrot.slane %v6817_v21, %v9790_v51  ;;  %v13378_v2 = vrot.slane %v6832_v36, %v9790_v51  ;;  %v7632_v28 = vcombine.low %v13243_v33, %v7592_v27  ;;  %v13386_v11 = vrot.slane %v6833_v38, %v9790_v51 }
 0xceb   : > { %v7633_v14 = vcombine.high %v13243_v33, %v7592_v27  ;;  %v7512_v49 = vcombine.low %v13257_v39, %v7463_v57  ;;  %v7513_v36 = vcombine.high %v13257_v39, %v7463_v57  ;;  %v13396_v1 = vrot.slane %v6952_v10, %v9790_v51 }
 0xcec   : > { %v13161_v30 = vpop.permute.xlu0 %6526  ;;  %v13163_v23 = vpop.permute.xlu1 %6524  ;;  %v13402_v38 = vrot.slane %v7224_v26, %v9790_v51  ;;  %v13407_v27 = vrot.slane %v7225_v8, %v9790_v51  ;;  %v13410_v39 = vrot.slane %v7496_v22, %v9790_v51  ;;  %v13413_v57 = vrot.slane %v6968_v46, %v9790_v51 }
 0xced   : > { %v13416_v10 = vrot.slane %v7497_v4, %v9790_v51  ;;  %v13421_v62 = vrot.slane %v7240_v42, %v9790_v51  ;;  %v13424_v21 = vrot.slane %v6969_v29, %v9790_v51  ;;  %v13427_v8 = vrot.slane %v7512_v49, %v9790_v51 }
 0xcee   : > { %14957 = vst [vmem:[#allocation43_spill] sm:$0xff] %v13413_v57  ;;  %v13430_v22 = vrot.slane %v7241_v13, %v9790_v51  ;;  %v13433_v46 = vrot.slane %v7088_v43, %v9790_v51  ;;  %v13436_v4 = vrot.slane %v7513_v36, %v9790_v51  ;;  %v13443_v29 = vrot.slane %v7360_v56, %v9790_v51 }
 0xcef   : > { %14958 = vst [vmem:[#allocation41_spill] sm:$0xff] %v13424_v21  ;;  %14959 = vst [vmem:[#allocation35_spill] sm:$0xff] %v13427_v8  ;;  %v13446_v49 = vrot.slane %v7089_v50, %v9790_v51  ;;  %v13453_v57 = vrot.slane %v7632_v28, %v9790_v51  ;;  %v14967_v28 = vcombine.low %v13212_v34, %v13292_v41 }
 0xcf0   : > { %v13165_v60 = vpop.permute.xlu0 %6530  ;;  %v13167_v44 = vpop.permute.xlu1 %6528  ;;  %14960 = vst [vmem:[#allocation81_spill] sm:$0xff] %v13430_v22  ;;  %14961 = vst [vmem:[#allocation77_spill] sm:$0xff] %v13433_v46 }
 0xcf1   : > { %14962 = vst [vmem:[#allocation24_spill] sm:$0xff] %v13436_v4  ;;  %14963 = vst [vmem:[#allocation80_spill] sm:$0xff] %v13443_v29  ;;  %v13456_v4 = vrot.slane %v7361_v63, %v9790_v51  ;;  %v13472_v63 = vrot.slane %v7633_v14, %v9790_v51 }
 0xcf2   : > { %14964 = vst [vmem:[#allocation76_spill] sm:$0xff] %v13446_v49  ;;  %14965 = vst [vmem:[#allocation71_spill] sm:$0xff] %v13453_v57  ;;  %v13469_v57 = vrot.slane %v14967_v28, %v9790_v51 }
 0xcf3   : > { %14966 = vst [vmem:[#allocation104_spill] sm:$0xff] %v13456_v4  ;;  %14969 = vst [vmem:[#allocation22_spill] sm:$0xff] %v13472_v63 }
 0xcf4   : > { %v13173_v6 = vpop.permute.xlu0 %6534  ;;  %v13175_v7 = vpop.permute.xlu1 %6532  ;;  %14968 = vst [vmem:[#allocation97_spill] sm:$0xff] %v13469_v57 }
 0xcf8   : > { %v13196_v48 = vpop.permute.xlu0 %6546  ;;  %v13198_v25 = vpop.permute.xlu1 %6544 }
 0xcfc   : > { %v13232_v45 = vpop.permute.xlu0 %6550  ;;  %v13234_v37 = vpop.permute.xlu1 %6548 }
 0xd00   : > { %v13269_v3 = vpop.permute.xlu0 %6554  ;;  %v13271_v54 = vpop.permute.xlu1 %6552 }
 0xd04   : > { %v13305_v58 = vpop.permute.xlu0 %6558  ;;  %v13307_v24 = vpop.permute.xlu1 %6556 }
 0xd08   : > { %v13344_v9 = vpop.permute.xlu0 %6570  ;;  %v13346_v18 = vpop.permute.xlu1 %6568 }
 0xd09   : > { %v6785_v13 = vcombine.high %v13157_v53, %v13344_v9  ;;  %v6648_v43 = vcombine.low %v13159_v31, %v13346_v18  ;;  %v6649_v56 = vcombine.high %v13159_v31, %v13346_v18  ;;  %v13475_v31 = vrot.slane %v7376_v17, %v9790_v51 }
 0xd0b   : > { %14970 = vst [vmem:[#allocation21_spill] sm:$0xff] %v13475_v31  ;;  %v6656_v14 = vrot.slane %v6648_v43, %v9595_v47 }
 0xd0c   : > { %v13370_v5 = vpop.permute.xlu0 %6574  ;;  %v13372_v35 = vpop.permute.xlu1 %6572 }
 0xd0d   : > { %v7056_v61 = vcombine.low %v13161_v30, %v13370_v5  ;;  %v7057_v59 = vcombine.high %v13161_v30, %v13370_v5  ;;  %v13399_v30 = vrot.slane %v6953_v16, %v9790_v51  ;;  %v6921_v42 = vcombine.high %v13163_v23, %v13372_v35 }
 0xd0f   : > { %v13503_v43 = vrot.slane %v7056_v61, %v9595_v47  ;;  %v13506_v63 = vrot.slane %v7057_v59, %v9595_v47 }
 0xd10   : > { %v6579_v33 = vpop.permute.xlu0 %6578  ;;  %v13404_v5 = vpop.permute.xlu1 %6576 }
 0xd11   : > { %v7328_v16 = vcombine.low %v13165_v60, %v6579_v33  ;;  %v7329_v26 = vcombine.high %v13165_v60, %v6579_v33  ;;  %v6784_v60 = vcombine.low %v13157_v53, %v13344_v9  ;;  %v6920_v9 = vcombine.low %v13163_v23, %v13372_v35 }
 0xd12   : > { %v7193_v17 = vcombine.high %v13167_v44, %v13404_v5 }
 0xd13   : > { %v13478_v18 = vrot.slane %v6784_v60, %v9595_v47 }
 0xd14   : > { %v6597_v36 = vpop.permute.xlu0 %6596  ;;  %v6593_v33 = vpop.permute.xlu1 %6592  ;;  %v13521_v61 = vrot.slane %v7193_v17, %v9595_v47 }
 0xd15   : > { %v6937_v50 = vcombine.high %v13234_v37, %v6597_v36  ;;  %v6664_v49 = vcombine.low %v13198_v25, %v6593_v33  ;;  %v6665_v53 = vcombine.high %v13198_v25, %v6593_v33  ;;  %v13481_v25 = vrot.slane %v6921_v42, %v9595_v47 }
 0xd16   : > { %v13488_v33 = vrot.slane %v6785_v13, %v9595_v47  ;;  %v6663_v42 = vrot.slane %v6649_v56, %v9595_v47  ;;  %v13512_v56 = vrot.slane %v7328_v16, %v9595_v47 }
 0xd17   : > { %v13484_v23 = vrot.slane %v6937_v50, %v9595_v47  ;;  %v6672_v35 = vrot.slane %v6664_v49, %v9595_v47  ;;  %v6679_v28 = vrot.slane %v6665_v53, %v9595_v47  ;;  %v6936_v50 = vcombine.low %v13234_v37, %v6597_v36 }
 0xd18   : > { %v13494_v60 = vpop.permute.xlu0 %6580  ;;  %v6601_v31 = vpop.permute.xlu1 %6600  ;;  %v13509_v53 = vrot.slane %v6920_v9, %v9595_v47  ;;  %v13518_v49 = vrot.slane %v7329_v26, %v9595_v47 }
 0xd19   : > { %v6712_v57 = vcombine.low %v6656_v14, %v6672_v35  ;;  %v6713_v36 = vcombine.high %v6656_v14, %v6672_v35  ;;  %v7209_v13 = vcombine.high %v13271_v54, %v6601_v31  ;;  %v6728_v59 = vcombine.low %v6663_v42, %v6679_v28 }
 0xd1a   : > { %v7465_v9 = vcombine.high %v13175_v7, %v13494_v60  ;;  %v13528_v16 = vrot.slane %v6936_v50, %v9595_v47  ;;  %v6729_v37 = vcombine.high %v6663_v42, %v6679_v28  ;;  %v7208_v14 = vcombine.low %v13271_v54, %v6601_v31 }
 0xd1b   : > { %v13531_v35 = vrot.slane %v7209_v13, %v9595_v47  ;;  %v6720_v26 = vrot.slane %v6712_v57, %v9790_v51  ;;  %v6727_v57 = vrot.slane %v6713_v36, %v9790_v51  ;;  %v6736_v13 = vrot.slane %v6728_v59, %v9790_v51 }
 0xd1c   : > { %v6595_v4 = vpop.permute.xlu0 %6594  ;;  %v13525_v29 = vpop.permute.xlu1 %6604  ;;  %v13547_v54 = vrot.slane %v7465_v9, %v9595_v47  ;;  %v13561_v9 = vrot.slane %v7208_v14, %v9595_v47  ;;  %v13569_v8 = vrot.slane %v6729_v37, %v9790_v51 }
 0xd1d   : > { %v6800_v17 = vcombine.low %v13196_v48, %v6595_v4  ;;  %v6801_v46 = vcombine.high %v13196_v48, %v6595_v4  ;;  %v7481_v22 = vcombine.high %v13307_v24, %v13525_v29  ;;  %v6745_v42 = vcombine.high %v13289_v52, %v6720_v26 }
 0xd1e   : > { %v6744_v36 = vcombine.low %v13289_v52, %v6720_v26 }
 0xd1f   : > { %v13550_v31 = vrot.slane %v6800_v17, %v9595_v47  ;;  %v13553_v48 = vrot.slane %v7481_v22, %v9595_v47  ;;  %v13564_v17 = vrot.slane %v6801_v46, %v9595_v47  ;;  %v7480_v22 = vcombine.low %v13307_v24, %v13525_v29 }
 0xd20   : > { %v6603_v4 = vpop.permute.xlu0 %6602  ;;  %v6599_v50 = vpop.permute.xlu1 %6598  ;;  %v7708_v29 = vsel %vm7704_vm13, %v6745_v42, -inf  ;;  %v7705_v37 = vsel %vm7704_vm13, %v6744_v36, -inf  ;;  %v6748_v36 = vcombine.low %v13310_v55, %v6736_v13 }
 0xd21   : > { %v7344_v28 = vcombine.low %v13269_v3, %v6603_v4  ;;  %v7345_v21 = vcombine.high %v13269_v3, %v6603_v4  ;;  %v6848_v59 = vcombine.low %v13478_v18, %v13550_v31  ;;  %v6849_v3 = vcombine.high %v13478_v18, %v13550_v31  ;;  %7709 = vmax.xlane.f32.xlu0 %v7708_v29 }
 0xd22   : > { %7706 = vmax.xlane.f32.xlu1 %v7705_v37  ;;  %v7072_v18 = vcombine.low %v13232_v45, %v6599_v50  ;;  %v7073_v31 = vcombine.high %v13232_v45, %v6599_v50 }
 0xd23   : > { %v13580_v46 = vrot.slane %v7344_v28, %v9595_v47  ;;  %v13583_v24 = vrot.slane %v7345_v21, %v9595_v47  ;;  %v6746_v28 = vcombine.low %v13298_v0, %v6727_v57  ;;  %v6747_v21 = vcombine.high %v13298_v0, %v6727_v57 }
 0xd24   : > { %v6607_v14 = vpop.permute.xlu0 %6606  ;;  %v6583_v26 = vpop.permute.xlu1 %6582  ;;  %v13599_v29 = vrot.slane %v7072_v18, %v9595_v47  ;;  %v13602_v45 = vrot.slane %v7073_v31, %v9595_v47 }
 0xd25   : > { %v7616_v4 = vcombine.low %v13305_v58, %v6607_v14  ;;  %v7617_v50 = vcombine.high %v13305_v58, %v6607_v14  ;;  %v7600_v42 = vcombine.low %v13173_v6, %v6583_v26  ;;  %v7601_v52 = vcombine.high %v13173_v6, %v6583_v26 }
 0xd26   : > { %v7120_v18 = vcombine.low %v13503_v43, %v13599_v29  ;;  %v7121_v31 = vcombine.high %v13503_v43, %v13599_v29  ;;  %v7711_v0 = vsel %vm7704_vm13, %v6746_v28, -inf  ;;  %v7714_v57 = vsel %vm7704_vm13, %v6747_v21, -inf }
 0xd27   : > { %v13606_v37 = vrot.slane %v7616_v4, %v9595_v47  ;;  %v13621_v4 = vrot.slane %v7617_v50, %v9595_v47  ;;  %v13626_v6 = vrot.slane %v7600_v42, %v9595_v47  ;;  %7712 = vmax.xlane.f32.xlu0 %v7711_v0  ;;  %7715 = vmax.xlane.f32.xlu1 %v7714_v57 }
 0xd28   : > { %v13629_v26 = vrot.slane %v7601_v52, %v9595_v47  ;;  %v6749_v58 = vcombine.high %v13310_v55, %v6736_v13  ;;  %v6864_v50 = vcombine.low %v13488_v33, %v13564_v17  ;;  %v7488_v14 = vrot.slane %v7480_v22, %v9595_v47 }
 0xd29   : > { %v7664_v28 = vcombine.low %v13626_v6, %v13606_v37  ;;  %v6865_v42 = vcombine.high %v13488_v33, %v13564_v17  ;;  %v6750_v13 = vcombine.low %v13313_v40, %v13569_v8  ;;  %v7717_v22 = vsel %vm7704_vm13, %v6748_v36, -inf }
 0xd2a   : > { %v7720_v0 = vsel %vm7704_vm13, %v6749_v58, -inf  ;;  %v6751_v57 = vcombine.high %v13313_v40, %v13569_v8  ;;  %v6856_v21 = vrot.slane %v6848_v59, %v9790_v51  ;;  %v14971_v33 = vcombine.low %v13167_v44, %v13404_v5 }
 0xd2b   : > { %v14972_v55 = vcombine.low %v13175_v7, %v13494_v60  ;;  %7718 = vmax.xlane.f32.xlu0 %v7717_v22  ;;  %7721 = vmax.xlane.f32.xlu1 %v7720_v0  ;;  %v6863_v36 = vrot.slane %v6849_v3, %v9790_v51  ;;  %v6984_v58 = vcombine.low %v13509_v53, %v13528_v16  ;;  %v7723_v3 = vsel %vm7704_vm13, %v6750_v13, -inf }
 0xd2c   : > { %v7200_v17 = vrot.slane %v14971_v33, %v9595_v47  ;;  %v6985_v40 = vcombine.high %v13509_v53, %v13528_v16  ;;  %v6872_v8 = vrot.slane %v6864_v50, %v9790_v51  ;;  %v14973_v44 = vcombine.high %v13212_v34, %v13292_v41 }
 0xd2d   : > { %v7472_v52 = vrot.slane %v14972_v55, %v9595_v47  ;;  %v6879_v59 = vrot.slane %v6865_v42, %v9790_v51  ;;  %v7726_v55 = vsel %vm7704_vm13, %v6751_v57, -inf  ;;  %v6880_v53 = vcombine.low %v13366_v32, %v6856_v21 }
 0xd2e   : > { %v13671_v5 = vrot.slane %v14973_v44, %v9790_v51  ;;  %v7256_v47 = vcombine.low %v7200_v17, %v13561_v9  ;;  %v6881_v16 = vcombine.high %v13366_v32, %v6856_v21  ;;  %v6882_v34 = vcombine.low %v13375_v12, %v6863_v36  ;;  %v14975_v32 = vld [vmem:[#allocation27_spill] sm:$0xff] }
 0xd2f   : > { %v7528_v7 = vcombine.low %v7472_v52, %v7488_v14  ;;  %v7529_v60 = vcombine.high %v7472_v52, %v7488_v14  ;;  %7724 = vmax.xlane.f32.xlu0 %v7723_v3  ;;  %7727 = vmax.xlane.f32.xlu1 %v7726_v55  ;;  %v6883_v41 = vcombine.high %v13375_v12, %v6863_v36 }
 0xd30   : > { %v14974_v14 = vcombine.low %v13248_v15, %v13359_v20  ;;  %v7257_v42 = vcombine.high %v7200_v17, %v13561_v9  ;;  %v6884_v52 = vcombine.low %v13378_v2, %v6872_v8  ;;  %v6992_v13 = vrot.slane %v6984_v58, %v9790_v51 }
 0xd31   : > { %v14976_v21 = vcombine.high %v13226_v19, %v14975_v32  ;;  %v6885_v12 = vcombine.high %v13378_v2, %v6872_v8  ;;  %v6886_v0 = vcombine.low %v13386_v11, %v6879_v59  ;;  %v6999_v57 = vrot.slane %v6985_v40, %v9790_v51 }
 0xd32   : > { %v13685_v50 = vrot.slane %v14974_v14, %v9790_v51  ;;  %v13700_v33 = vrot.slane %v7528_v7, %v9790_v51  ;;  %v7729_v9 = vsel %vm7704_vm13, %v6880_v53, -inf  ;;  %v7732_v17 = vsel %vm7704_vm13, %v6881_v16, -inf }
 0xd33   : > { %v13694_v22 = vrot.slane %v14976_v21, %v9790_v51  ;;  %v7264_v36 = vrot.slane %v7256_v47, %v9790_v51  ;;  %v13706_v58 = vrot.slane %v7529_v60, %v9790_v51  ;;  %7730 = vmax.xlane.f32.xlu0 %v7729_v9  ;;  %7733 = vmax.xlane.f32.xlu1 %v7732_v17  ;;  %v7735_v19 = vsel %vm7704_vm13, %v6882_v34, -inf }
 0xd34   : > { %v7738_v2 = vsel %vm7704_vm13, %v6883_v41, -inf  ;;  %v6887_v40 = vcombine.high %v13386_v11, %v6879_v59  ;;  %v14977_v8 = vcombine.high %v13248_v15, %v13359_v20  ;;  %v7741_v7 = vsel %vm7704_vm13, %v6884_v52, -inf }
 0xd35   : > { %v7016_v47 = vcombine.low %v13396_v1, %v6992_v13  ;;  %v7560_v60 = vcombine.low %v13410_v39, %v13700_v33  ;;  %v7561_v3 = vcombine.high %v13410_v39, %v13700_v33  ;;  %v7744_v55 = vsel %vm7704_vm13, %v6885_v12, -inf }
 0xd36   : > { %v13715_v44 = vrot.slane %v14977_v8, %v9790_v51  ;;  %v7017_v11 = vcombine.high %v13396_v1, %v6992_v13  ;;  %v7018_v59 = vcombine.low %v13399_v30, %v6999_v57  ;;  %v13727_v15 = vrot.slane %v7257_v42, %v9790_v51 }
 0xd37   : > { %v7747_v20 = vsel %vm7704_vm13, %v6886_v0, -inf  ;;  %v7288_v53 = vcombine.low %v13402_v38, %v7264_v36  ;;  %v14978_v16 = vcombine.low %v13481_v25, %v13484_v23  ;;  %v7562_v41 = vcombine.low %v13416_v10, %v13706_v58  ;;  %7736 = vmax.xlane.f32.xlu0 %v7735_v19  ;;  %7739 = vmax.xlane.f32.xlu1 %v7738_v2  ;;  %v14983_v2 = vld [vmem:[#allocation41_spill] sm:$0xff] }
 0xd38   : > { %v7750_v1 = vsel %vm7704_vm13, %v6887_v40, -inf  ;;  %v7289_v14 = vcombine.high %v13402_v38, %v7264_v36  ;;  %v14979_v42 = vcombine.low %v13521_v61, %v13531_v35  ;;  %v7563_v13 = vcombine.high %v13416_v10, %v13706_v58 }
 0xd39   : > { %v13735_v34 = vrot.slane %v14978_v16, %v9790_v51  ;;  %v7753_v32 = vsel %vm7704_vm13, %v7016_v47, -inf  ;;  %v7019_v21 = vcombine.high %v13399_v30, %v6999_v57  ;;  %v14980_v12 = vcombine.high %v13481_v25, %v13484_v23  ;;  %v14982_v25 = vld [vmem:[#allocation35_spill] sm:$0xff] }
 0xd3a   : > { %v13745_v52 = vrot.slane %v14979_v42, %v9790_v51  ;;  %v14981_v38 = vcombine.low %v13547_v54, %v13553_v48  ;;  %v7756_v17 = vsel %vm7704_vm13, %v7017_v11, -inf  ;;  %v7759_v36 = vsel %vm7704_vm13, %v7018_v59, -inf }
 0xd3b   : > { %v13755_v0 = vrot.slane %v14980_v12, %v9790_v51  ;;  %v7290_v19 = vcombine.low %v13407_v27, %v13727_v15  ;;  %v7801_v57 = vsel %vm7704_vm13, %v7288_v53, -inf  ;;  %v14984_v8 = vcombine.high %v13521_v61, %v13531_v35  ;;  %7742 = vmax.xlane.f32.xlu0 %v7741_v7  ;;  %7745 = vmax.xlane.f32.xlu1 %v7744_v55  ;;  %v14985_v7 = vld [vmem:[#allocation81_spill] sm:$0xff] }
 0xd3c   : > { %v7552_v9 = vrot.slane %v14981_v38, %v9790_v51  ;;  %v7293_v30 = vcombine.high %v13421_v62, %v13745_v52  ;;  %v13776_v11 = vsel %vm7704_vm13, %v7289_v14, -inf  ;;  %v7128_v16 = vrot.slane %v7120_v18, %v9790_v51  ;;  %v14986_v12 = vld [vmem:[#allocation77_spill] sm:$0xff] }
 0xd3d   : > { %v7023_v40 = vcombine.high %v14983_v2, %v13755_v0  ;;  %v7287_v47 = vrot.slane %v14984_v8, %v9790_v51  ;;  %v13787_v42 = vsel %vm7704_vm13, %v7019_v21, -inf  ;;  %v14987_v18 = vcombine.high %v13547_v54, %v13553_v48 }
 0xd3e   : > { %v7564_v23 = vcombine.low %v14982_v25, %v7552_v9  ;;  %v13779_v59 = vsel %vm7704_vm13, %v7293_v30, -inf  ;;  %v7565_v53 = vcombine.high %v14982_v25, %v7552_v9  ;;  %v7152_v38 = vcombine.low %v14986_v12, %v7128_v16 }
 0xd3f   : > { %v13793_v35 = vsel %vm7704_vm13, %v7023_v40, -inf  ;;  %v7294_v55 = vcombine.low %v14985_v7, %v7287_v47  ;;  %v7295_v9 = vcombine.high %v14985_v7, %v7287_v47  ;;  %v7559_v21 = vrot.slane %v14987_v18, %v9790_v51  ;;  %7748 = vmax.xlane.f32.xlu0 %v7747_v20  ;;  %7751 = vmax.xlane.f32.xlu1 %v7750_v1  ;;  %v14989_v47 = vld [vmem:[#allocation24_spill] sm:$0xff] }
 0xd40   : > { %v13790_v61 = vsel %vm7704_vm13, %v7564_v23, -inf  ;;  %v13797_v14 = vsel %vm7704_vm13, %v7565_v53, -inf  ;;  %v7153_v25 = vcombine.high %v14986_v12, %v7128_v16  ;;  %v14988_v23 = vcombine.low %v13512_v56, %v13580_v46  ;;  %v14991_v18 = vld [vmem:[#allocation76_spill] sm:$0xff] }
 0xd41   : > { %v13806_v30 = vsel %vm7704_vm13, %v7294_v55, -inf  ;;  %v7135_v8 = vrot.slane %v7121_v31, %v9790_v51  ;;  %v13818_v54 = vsel %vm7704_vm13, %v7152_v38, -inf  ;;  %v13821_v48 = vsel %vm7704_vm13, %v7295_v9, -inf  ;;  %v14990_v55 = vld [vmem:[#allocation80_spill] sm:$0xff] }
 0xd42   : > { %v7400_v40 = vrot.slane %v14988_v23, %v9790_v51  ;;  %v7566_v53 = vcombine.low %v14989_v47, %v7559_v21  ;;  %v7567_v16 = vcombine.high %v14989_v47, %v7559_v21  ;;  %v13826_v7 = vsel %vm7704_vm13, %v7153_v25, -inf  ;;  %v14993_v47 = vld [vmem:[#allocation71_spill] sm:$0xff] }
 0xd43   : > { %v7154_v43 = vcombine.low %v14991_v18, %v7135_v8  ;;  %v7672_v1 = vrot.slane %v7664_v28, %v9790_v51  ;;  %v7155_v38 = vcombine.high %v14991_v18, %v7135_v8  ;;  %v14992_v23 = vcombine.high %v13512_v56, %v13580_v46  ;;  %7754 = vmax.xlane.f32.xlu0 %v7753_v32 }
 0xd44   : > { %v7424_v12 = vcombine.low %v14990_v55, %v7400_v40  ;;  %v7425_v29 = vcombine.high %v14990_v55, %v7400_v40  ;;  %v13832_v31 = vsel %vm7704_vm13, %v7566_v53, -inf  ;;  %v13835_v20 = vsel %vm7704_vm13, %v7567_v16, -inf  ;;  %7757 = vmax.xlane.f32.xlu1 %v7756_v17 }
 0xd45   : > { %v13846_v21 = vsel %vm7704_vm13, %v7154_v43, -inf  ;;  %v7407_v40 = vrot.slane %v14992_v23, %v9790_v51  ;;  %v7696_v28 = vcombine.low %v14993_v47, %v7672_v1  ;;  %v13857_v8 = vsel %vm7704_vm13, %v7155_v38, -inf  ;;  %v14998_v38 = vld [vmem:[#allocation97_spill] sm:$0xff] }
 0xd46   : > { %v13843_v9 = vsel %vm7704_vm13, %v7424_v12, -inf  ;;  %v13849_v25 = vsel %vm7704_vm13, %v7425_v29, -inf  ;;  %v7697_v53 = vcombine.high %v14993_v47, %v7672_v1  ;;  %v14994_v16 = vcombine.low %v13506_v63, %v13602_v45  ;;  %v14995_v12 = vld [vmem:[#allocation104_spill] sm:$0xff] }
 0xd47   : > { %v7426_v18 = vcombine.low %v14995_v12, %v7407_v40  ;;  %v7427_v43 = vcombine.high %v14995_v12, %v7407_v40  ;;  %v14996_v56 = vcombine.high %v13626_v6, %v13606_v37  ;;  %v14997_v32 = vcombine.low %v13518_v49, %v13583_v24  ;;  %v14999_v6 = vld [vmem:[#allocation22_spill] sm:$0xff]  ;;  %v15000_v12 = vld [vmem:[#allocation21_spill] sm:$0xff]  ;;  %7760 = vmax.xlane.f32.xlu0 %v7759_v36 }
 0xd48   : > { %v7144_v55 = vrot.slane %v14994_v16, %v9790_v51  ;;  %v13875_v29 = vsel %vm7704_vm13, %v7696_v28, -inf  ;;  %v13878_v1 = vsel %vm7704_vm13, %v7697_v53, -inf  ;;  %7802 = vmax.xlane.f32.xlu1 %v7801_v57  ;;  %v15002_v57 = vcombine.low %v13629_v26, %v13621_v4 }
 0xd49   : > { %v7679_v46 = vrot.slane %v14996_v56, %v9790_v51  ;;  %v7416_v17 = vrot.slane %v14997_v32, %v9790_v51  ;;  %v13883_v47 = vsel %vm7704_vm13, %v7426_v18, -inf  ;;  %v13886_v37 = vsel %vm7704_vm13, %v7427_v43, -inf }
 0xd4a   : > { %v7156_v23 = vcombine.low %v14998_v38, %v7144_v55  ;;  %v7157_v40 = vcombine.high %v14998_v38, %v7144_v55  ;;  %v15001_v18 = vcombine.high %v13506_v63, %v13602_v45  ;;  %v15003_v45 = vcombine.high %v13518_v49, %v13583_v24 }
 0xd4b   : > { %v7698_v16 = vcombine.low %v14999_v6, %v7679_v46  ;;  %v7428_v56 = vcombine.low %v15000_v12, %v7416_v17  ;;  %v7699_v55 = vcombine.high %v14999_v6, %v7679_v46  ;;  %v7429_v36 = vcombine.high %v15000_v12, %v7416_v17  ;;  %7805 = vmax.xlane.f32.xlu0 %v13776_v11 }
 0xd4c   : > { %v13891_v28 = vsel %vm7704_vm13, %v7156_v23, -inf  ;;  %v13894_v53 = vsel %vm7704_vm13, %v7157_v40, -inf  ;;  %v7151_v43 = vrot.slane %v15001_v18, %v9790_v51  ;;  %v7688_v23 = vrot.slane %v15002_v57, %v9790_v51  ;;  %7763 = vmax.xlane.f32.xlu1 %v13787_v42  ;;  %v15005_v42 = vld [vmem:[#allocation43_spill] sm:$0xff] }
 0xd4d   : > { %v13902_v32 = vsel %vm7704_vm13, %v7698_v16, -inf  ;;  %v13905_v38 = vsel %vm7704_vm13, %v7428_v56, -inf  ;;  %v13913_v46 = vsel %vm7704_vm13, %v7699_v55, -inf  ;;  %v7423_v6 = vrot.slane %v15003_v45, %v9790_v51 }
 0xd4e   : > { %v7158_v40 = vcombine.low %v13671_v5, %v7151_v43  ;;  %v7159_v63 = vcombine.high %v13671_v5, %v7151_v43  ;;  %v13922_v16 = vsel %vm7704_vm13, %v7429_v36, -inf  ;;  %v7700_v17 = vcombine.low %v13685_v50, %v7688_v23 }
 0xd4f   : > { %v7701_v12 = vcombine.high %v13685_v50, %v7688_v23  ;;  %v15004_v56 = vcombine.high %v13629_v26, %v13621_v4  ;;  %v7430_v24 = vcombine.low %v13694_v22, %v7423_v6  ;;  %v7431_v18 = vcombine.high %v13694_v22, %v7423_v6 }
 0xd50   : > { %v7795_v5 = vsel %vm7704_vm13, %v7158_v40, -inf  ;;  %v7798_v49 = vsel %vm7704_vm13, %v7159_v63, -inf  ;;  %v7885_v43 = vsel %vm7704_vm13, %v7700_v17, -inf  ;;  %v7807_v4 = vsel %vm7704_vm13, %v7290_v19, -inf }
 0xd51   : > { %v7695_v55 = vrot.slane %v15004_v56, %v9790_v51  ;;  %v7888_v50 = vsel %vm7704_vm13, %v7701_v12, -inf  ;;  %v7843_v26 = vsel %vm7704_vm13, %v7430_v24, -inf  ;;  %v7846_v11 = vsel %vm7704_vm13, %v7431_v18, -inf  ;;  %7808 = vmax.xlane.f32.xlu0 %v7807_v4 }
 0xd52   : > { %v7849_v22 = vsel %vm7704_vm13, %v7560_v60, -inf  ;;  %v7020_v57 = vcombine.low %v15005_v42, %v13735_v34  ;;  %v7852_v19 = vsel %vm7704_vm13, %v7561_v3, -inf  ;;  %v7291_v63 = vcombine.high %v13407_v27, %v13727_v15 }
 0xd53   : > { %v7702_v36 = vcombine.low %v13715_v44, %v7695_v55  ;;  %v7703_v51 = vcombine.high %v13715_v44, %v7695_v55  ;;  %7850 = vmax.xlane.f32.xlu1 %v7849_v22  ;;  %v7855_v45 = vsel %vm7704_vm13, %v7562_v41, -inf  ;;  %v7021_v6 = vcombine.high %v15005_v42, %v13735_v34  ;;  %v15007_v41 = vld [vmem:[#allocation14_spill] sm:$0xff] }
 0xd54   : > { %v7765_v40 = vsel %vm7704_vm13, %v7020_v57, -inf  ;;  %v7810_v60 = vsel %vm7704_vm13, %v7291_v63, -inf  ;;  %v7292_v39 = vcombine.low %v13421_v62, %v13745_v52  ;;  %v7022_v3 = vcombine.low %v14983_v2, %v13755_v0 }
 0xd55   : > { %v7891_v23 = vsel %vm7704_vm13, %v7702_v36, -inf  ;;  %v7894_v44 = vsel %vm7704_vm13, %v7703_v51, -inf  ;;  %7853 = vmax.xlane.f32.xlu0 %v7852_v19  ;;  %v7768_v33 = vsel %vm7704_vm13, %v7021_v6, -inf  ;;  %v7858_v15 = vsel %vm7704_vm13, %v7563_v13, -inf }
 0xd56   : > { %v7813_v27 = vsel %vm7704_vm13, %v7292_v39, -inf  ;;  %v7771_v34 = vsel %vm7704_vm13, %v7022_v3, -inf  ;;  %v15006_v62 = vlaneseq  ;;  %vm8309_vm13 = vcmask 1041409  }
 0xd57   : > { %7766 = vmax.xlane.f32.xlu1 %v7765_v40 }
 0xd58   : > { %v14004_v10 = vand.u32 127, %v15006_v62 }
 0xd59   : > { %7811 = vmax.xlane.f32.xlu0 %v7810_v60 }
 0xd5a   : > { %v7967_v58 = vadd.s32 4294967288, %v14004_v10  ;;  %v14012_v13 = vsub.s32 %v14004_v10, %v15007_v41  ;;  %v7974_v0 = vadd.s32 4294967280, %v14004_v10  ;;  %v7981_v2 = vadd.s32 4294967272, %v14004_v10 }
 0xd5b   : > { %7856 = vmax.xlane.f32.xlu1 %v7855_v45  ;;  %v8023_v56 = vadd.s32 4294967224, %v14004_v10  ;;  %v8037_v4 = vadd.s32 4294967208, %v14004_v10  ;;  %v8051_v63 = vadd.s32 4294967192, %v14004_v10  ;;  %v8065_v62 = vadd.s32 4294967176, %v14004_v10 }
 0xd5c   : > { %v14008_v52 = vsub.s32 %v7967_v58, %v15007_v41 }
 0xd5d   : > { %7769 = vmax.xlane.f32.xlu0 %v7768_v33  ;;  %v14058_v51 = vsub.s32 %v8023_v56, %v15007_v41  ;;  %v14070_v40 = vsub.s32 %v8037_v4, %v15007_v41 }
 0xd5f   : > { %7814 = vmax.xlane.f32.xlu1 %v7813_v27  ;;  %v8058_v27 = vadd.s32 4294967184, %v14004_v10 }
 0xd61   : > { %7859 = vmax.xlane.f32.xlu0 %v7858_v15 }
 0xd63   : > { %7772 = vmax.xlane.f32.xlu1 %v7771_v34  ;;  %v14082_v34 = vsub.s32 %v8051_v63, %v15007_v41 }
 0xd65   : > { %7817 = vmax.xlane.f32.xlu0 %v13779_v59 }
 0xd67   : > { %7862 = vmax.xlane.f32.xlu1 %v13790_v61 }
 0xd69   : > { %7775 = vmax.xlane.f32.xlu0 %v13793_v35 }
 0xd6b   : > { %7820 = vmax.xlane.f32.xlu1 %v13806_v30  ;;  %v7988_v30 = vadd.s32 4294967264, %v14004_v10 }
 0xd6d   : > { %7865 = vmax.xlane.f32.xlu0 %v13797_v14 }
 0xd6f   : > { %7778 = vmax.xlane.f32.xlu1 %v13818_v54 }
 0xd71   : > { %7823 = vmax.xlane.f32.xlu0 %v13821_v48  ;;  %v14021_v48 = vsub.s32 %v7974_v0, %v15007_v41 }
 0xd73   : > { %7868 = vmax.xlane.f32.xlu1 %v13832_v31  ;;  %v7995_v31 = vadd.s32 4294967256, %v14004_v10 }
 0xd75   : > { %7781 = vmax.xlane.f32.xlu0 %v13826_v7  ;;  %v14024_v7 = vsub.s32 %v7981_v2, %v15007_v41 }
 0xd77   : > { %7826 = vmax.xlane.f32.xlu1 %v13843_v9 }
 0xd79   : > { %7871 = vmax.xlane.f32.xlu0 %v13835_v20 }
 0xd7b   : > { %7784 = vmax.xlane.f32.xlu1 %v13846_v21  ;;  %v14028_v21 = vsub.s32 %v7988_v30, %v15007_v41  ;;  %v14093_v30 = vsub.s32 %v8065_v62, %v15007_v41 }
 0xd7d   : > { %7829 = vmax.xlane.f32.xlu0 %v13849_v25  ;;  %v8002_v25 = vadd.s32 4294967248, %v14004_v10 }
 0xd7f   : > { %7874 = vmax.xlane.f32.xlu1 %v13875_v29 }
 0xd81   : > { %7787 = vmax.xlane.f32.xlu0 %v13857_v8 }
 0xd83   : > { %7832 = vmax.xlane.f32.xlu1 %v13883_v47  ;;  %v8009_v47 = vadd.s32 4294967240, %v14004_v10 }
 0xd85   : > { %7877 = vmax.xlane.f32.xlu0 %v13878_v1  ;;  %v14034_v1 = vsub.s32 %v7995_v31, %v15007_v41  ;;  %v14046_v12 = vsub.s32 %v8009_v47, %v15007_v41 }
 0xd87   : > { %7790 = vmax.xlane.f32.xlu1 %v13891_v28 }
 0xd89   : > { %7835 = vmax.xlane.f32.xlu0 %v13886_v37 }
 0xd8b   : > { %7880 = vmax.xlane.f32.xlu1 %v13902_v32 }
 0xd8d   : > { %7793 = vmax.xlane.f32.xlu0 %v13894_v53 }
 0xd8f   : > { %7838 = vmax.xlane.f32.xlu1 %v13905_v38  ;;  %v14040_v38 = vsub.s32 %v8002_v25, %v15007_v41 }
 0xd91   : > { %7883 = vmax.xlane.f32.xlu0 %v13913_v46  ;;  %v8016_v46 = vadd.s32 4294967232, %v14004_v10 }
 0xd93   : > { %7796 = vmax.xlane.f32.xlu1 %v7795_v5  ;;  %v14052_v18 = vsub.s32 %v8016_v46, %v15007_v41 }
 0xd95   : > { %7841 = vmax.xlane.f32.xlu0 %v13922_v16 }
 0xd97   : > { %7886 = vmax.xlane.f32.xlu1 %v7885_v43  ;;  %v8030_v43 = vadd.s32 4294967216, %v14004_v10 }
 0xd99   : > { %7799 = vmax.xlane.f32.xlu0 %v7798_v49  ;;  %v14064_v57 = vsub.s32 %v8030_v43, %v15007_v41 }
 0xd9b   : > { %7844 = vmax.xlane.f32.xlu1 %v7843_v26 }
 0xd9d   : > { %7889 = vmax.xlane.f32.xlu0 %v7888_v50 }
 0xd9f   : > { %7847 = vmax.xlane.f32.xlu1 %v7846_v11 }
 0xda1   : > { %7892 = vmax.xlane.f32.xlu0 %v7891_v23  ;;  %v8044_v23 = vadd.s32 4294967200, %v14004_v10 }
 0xda3   : > { %7895 = vmax.xlane.f32.xlu1 %v7894_v44  ;;  %v14076_v33 = vsub.s32 %v8044_v23, %v15007_v41 }
 0xdae   : > { %v7710_v59 = vpop.xlane.xlu0 %7709 }
 0xdaf   : > { %v7707_v61 = vpop.xlane.xlu1 %7706  ;;  %v7971_v35 = vrot.slane %v7710_v59, %v14008_v52 }
 0xdb0   : > { %v7966_v14 = vrot.slane %v7707_v61, %v14012_v13 }
 0xdb2   : > { %v7973_v54 = vsel %vm7972_vm14, %v7971_v35, %v7966_v14  ;;  %v14090_v14 = vsub.s32 %v8058_v27, %v15007_v41 }
 0xdb4   : > { %v7713_v20 = vpop.xlane.xlu0 %7712  ;;  %v7716_v9 = vpop.xlane.xlu1 %7715 }
 0xdb5   : > { %v7978_v8 = vrot.slane %v7713_v20, %v14021_v48  ;;  %v7985_v29 = vrot.slane %v7716_v9, %v14024_v7 }
 0xdb7   : > { %v7980_v37 = vsel %vm7979_vm15, %v7978_v8, %v7973_v54 }
 0xdb8   : > { %v7987_v28 = vsel %vm7986_vm0, %v7985_v29, %v7980_v37  ;;  %v7719_v53 = vpop.xlane.xlu0 %7718  ;;  %v7722_v32 = vpop.xlane.xlu1 %7721 }
 0xdb9   : > { %v7992_v16 = vrot.slane %v7719_v53, %v14028_v21  ;;  %v7999_v17 = vrot.slane %v7722_v32, %v14034_v1 }
 0xdbb   : > { %v7994_v55 = vsel %vm7993_vm1, %v7992_v16, %v7987_v28 }
 0xdbc   : > { %v8001_v5 = vsel %vm8000_vm2, %v7999_v17, %v7994_v55  ;;  %v7725_v49 = vpop.xlane.xlu0 %7724  ;;  %v7728_v24 = vpop.xlane.xlu1 %7727 }
 0xdbd   : > { %v8006_v50 = vrot.slane %v7725_v49, %v14040_v38  ;;  %v8013_v36 = vrot.slane %v7728_v24, %v14046_v12 }
 0xdbf   : > { %v8008_v26 = vsel %vm8007_vm3, %v8006_v50, %v8001_v5 }
 0xdc0   : > { %v8015_v11 = vsel %vm8014_vm4, %v8013_v36, %v8008_v26  ;;  %v7731_v22 = vpop.xlane.xlu0 %7730  ;;  %v7734_v42 = vpop.xlane.xlu1 %7733 }
 0xdc1   : > { %v8020_v44 = vrot.slane %v7731_v22, %v14052_v18  ;;  %v8027_v19 = vrot.slane %v7734_v42, %v14058_v51 }
 0xdc3   : > { %v8022_v60 = vsel %vm8021_vm5, %v8020_v44, %v8015_v11 }
 0xdc4   : > { %v8029_v45 = vsel %vm8028_vm6, %v8027_v19, %v8022_v60  ;;  %v7737_v6 = vpop.xlane.xlu0 %7736  ;;  %v7740_v39 = vpop.xlane.xlu1 %7739 }
 0xdc5   : > { %v8034_v3 = vrot.slane %v7737_v6, %v14064_v57  ;;  %v8041_v15 = vrot.slane %v7740_v39, %v14070_v40 }
 0xdc7   : > { %v8036_v58 = vsel %vm8035_vm7, %v8034_v3, %v8029_v45 }
 0xdc8   : > { %v8043_v0 = vsel %vm8042_vm8, %v8041_v15, %v8036_v58  ;;  %v7743_v2 = vpop.xlane.xlu0 %7742  ;;  %v7746_v59 = vpop.xlane.xlu1 %7745 }
 0xdc9   : > { %v8048_v61 = vrot.slane %v7743_v2, %v14076_v33  ;;  %v8055_v35 = vrot.slane %v7746_v59, %v14082_v34 }
 0xdcb   : > { %v8050_v10 = vsel %vm8049_vm9, %v8048_v61, %v8043_v0 }
 0xdcc   : > { %v8057_v54 = vsel %vm8056_vm10, %v8055_v35, %v8050_v10  ;;  %v7749_v31 = vpop.xlane.xlu0 %7748  ;;  %v7752_v20 = vpop.xlane.xlu1 %7751 }
 0xdcd   : > { %v8062_v9 = vrot.slane %v7749_v31, %v14090_v14  ;;  %v8069_v25 = vrot.slane %v7752_v20, %v14093_v30 }
 0xdcf   : > { %v8064_v8 = vsel %vm8063_vm11, %v8062_v9, %v8057_v54 }
 0xdd0   : > { %v14101_v29 = vsel %vm8070_vm12, %v8069_v25, %v8064_v8  ;;  %v7755_v47 = vpop.xlane.xlu0 %7754 }
 0xdd1   : > { %v7758_v41 = vpop.xlane.xlu1 %7757  ;;  %v8075_v37 = vrot.slane %v7755_v47, %v14012_v13 }
 0xdd2   : > { %v8079_v28 = vrot.slane %v7758_v41, %v14008_v52 }
 0xdd4   : > { %v8080_v53 = vsel %vm7972_vm14, %v8079_v28, %v8075_v37  ;;  %v7761_v32 = vpop.xlane.xlu0 %7760 }
 0xdd5   : > { %v7803_v46 = vpop.xlane.xlu1 %7802  ;;  %v8084_v16 = vrot.slane %v7761_v32, %v14021_v48 }
 0xdd6   : > { %v8154_v5 = vrot.slane %v7803_v46, %v14012_v13 }
 0xdd7   : > { %v8085_v17 = vsel %vm7979_vm15, %v8084_v16, %v8080_v53 }
 0xdd8   : > { %v7806_v56 = vpop.xlane.xlu0 %7805 }
 0xdd9   : > { %v7764_v55 = vpop.xlane.xlu1 %7763  ;;  %v8158_v49 = vrot.slane %v7806_v56, %v14008_v52 }
 0xdda   : > { %v8089_v24 = vrot.slane %v7764_v55, %v14024_v7 }
 0xddb   : > { %v8159_v43 = vsel %vm7972_vm14, %v8158_v49, %v8154_v5 }
 0xddc   : > { %v8090_v50 = vsel %vm7986_vm0, %v8089_v24, %v8085_v17 }
 0xdde   : > { %v7809_v36 = vpop.xlane.xlu0 %7808 }
 0xddf   : > { %v8163_v26 = vrot.slane %v7809_v36, %v14021_v48 }
 0xde0   : > { %v7851_v4 = vpop.xlane.xlu1 %7850 }
 0xde1   : > { %v8164_v11 = vsel %vm7979_vm15, %v8163_v26, %v8159_v43  ;;  %v8233_v53 = vrot.slane %v7851_v4, %v14012_v13 }
 0xde2   : > { %v7854_v22 = vpop.xlane.xlu0 %7853 }
 0xde3   : > { %v8237_v41 = vrot.slane %v7854_v22, %v14008_v52 }
 0xde4   : > { %v7767_v42 = vpop.xlane.xlu1 %7766 }
 0xde5   : > { %v8094_v37 = vrot.slane %v7767_v42, %v14028_v21  ;;  %v8238_v55 = vsel %vm7972_vm14, %v8237_v41, %v8233_v53  ;;  %vm8311_vm14 = vcmask 1042434  }
 0xde6   : > { %v7812_v23 = vpop.xlane.xlu0 %7811 }
 0xde7   : > { %v8168_v28 = vrot.slane %v7812_v23, %v14024_v7  ;;  %v8095_v49 = vsel %vm7993_vm1, %v8094_v37, %v8090_v50 }
 0xde8   : > { %v7857_v44 = vpop.xlane.xlu1 %7856 }
 0xde9   : > { %v8242_v32 = vrot.slane %v7857_v44, %v14021_v48  ;;  %v8169_v24 = vsel %vm7986_vm0, %v8168_v28, %v8164_v11 }
 0xdea   : > { %v7770_v19 = vpop.xlane.xlu0 %7769 }
 0xdeb   : > { %v8099_v17 = vrot.slane %v7770_v19, %v14034_v1  ;;  %v8243_v43 = vsel %vm7979_vm15, %v8242_v32, %v8238_v55  ;;  %vm8313_vm15 = vcmask 1043459  }
 0xdec   : > { %v7815_v63 = vpop.xlane.xlu1 %7814 }
 0xded   : > { %v8173_v56 = vrot.slane %v7815_v63, %v14028_v21  ;;  %v8100_v42 = vsel %vm8000_vm2, %v8099_v17, %v8095_v49 }
 0xdee   : > { %v7860_v60 = vpop.xlane.xlu0 %7859 }
 0xdef   : > { %v8247_v5 = vrot.slane %v7860_v60, %v14024_v7  ;;  %v8174_v50 = vsel %vm7993_vm1, %v8173_v56, %v8169_v24 }
 0xdf0   : > { %v7773_v45 = vpop.xlane.xlu1 %7772 }
 0xdf1   : > { %v8104_v52 = vrot.slane %v7773_v45, %v14040_v38  ;;  %v8248_v44 = vsel %vm7986_vm0, %v8247_v5, %v8243_v43 }
 0xdf2   : > { %v7818_v6 = vpop.xlane.xlu0 %7817 }
 0xdf3   : > { %v8178_v13 = vrot.slane %v7818_v6, %v14034_v1 }
 0xdf4   : > { %v7863_v39 = vpop.xlane.xlu1 %7862 }
 0xdf5   : > { %v8252_v36 = vrot.slane %v7863_v39, %v14028_v21  ;;  %v8105_v21 = vsel %vm8007_vm3, %v8104_v52, %v8100_v42  ;;  %v8179_v60 = vsel %vm8000_vm2, %v8178_v13, %v8174_v50 }
 0xdf6   : > { %v7776_v27 = vpop.xlane.xlu0 %7775 }
 0xdf7   : > { %v8109_v48 = vrot.slane %v7776_v27, %v14046_v12  ;;  %v8253_v39 = vsel %vm7993_vm1, %v8252_v36, %v8248_v44 }
 0xdf8   : > { %v7821_v3 = vpop.xlane.xlu1 %7820 }
 0xdf9   : > { %v8183_v4 = vrot.slane %v7821_v3, %v14040_v38  ;;  %v8110_v45 = vsel %vm8014_vm4, %v8109_v48, %v8105_v21 }
 0xdfa   : > { %v7866_v15 = vpop.xlane.xlu0 %7865 }
 0xdfb   : > { %v8257_v11 = vrot.slane %v7866_v15, %v14034_v1  ;;  %v8184_v27 = vsel %vm8007_vm3, %v8183_v4, %v8179_v60 }
 0xdfc   : > { %v7779_v62 = vpop.xlane.xlu1 %7778 }
 0xdfd   : > { %v8114_v26 = vrot.slane %v7779_v62, %v14052_v18 }
 0xdfe   : > { %v7824_v58 = vpop.xlane.xlu0 %7823 }
 0xdff   : > { %v8188_v19 = vrot.slane %v7824_v58, %v14046_v12  ;;  %v8115_v3 = vsel %vm8021_vm5, %v8114_v26, %v8110_v45 }
 0xe00   : > { %v14115_v0 = vpop.xlane.xlu1 %7868 }
 0xe01   : > { %v8262_v53 = vrot.slane %v14115_v0, %v14040_v38 }
 0xe02   : > { %v7782_v2 = vpop.xlane.xlu0 %7781 }
 0xe03   : > { %v8119_v23 = vrot.slane %v7782_v2, %v14058_v51  ;;  %v8258_v2 = vsel %vm8000_vm2, %v8257_v11, %v8253_v39 }
 0xe04   : > { %v14117_v59 = vpop.xlane.xlu1 %7826 }
 0xe05   : > { %v8193_v6 = vrot.slane %v14117_v59, %v14052_v18 }
 0xe06   : > { %v14119_v61 = vpop.xlane.xlu0 %7871 }
 0xe08   : > { %v7785_v35 = vpop.xlane.xlu1 %7784 }
 0xe09   : > { %v8124_v63 = vrot.slane %v7785_v35, %v14064_v57  ;;  %v8120_v35 = vsel %vm8028_vm6, %v8119_v23, %v8115_v3 }
 0xe0a   : > { %v14121_v10 = vpop.xlane.xlu0 %7829 }
 0xe0b   : > { %v8198_v41 = vrot.slane %v14121_v10, %v14058_v51  ;;  %v8125_v37 = vsel %vm8035_vm7, %v8124_v63, %v8120_v35 }
 0xe0c   : > { %v14123_v54 = vpop.xlane.xlu1 %7874 }
 0xe0d   : > { %v8272_v56 = vrot.slane %v14123_v54, %v14052_v18 }
 0xe0e   : > { %v7788_v31 = vpop.xlane.xlu0 %7787 }
 0xe0f   : > { %v8129_v1 = vrot.slane %v7788_v31, %v14070_v40  ;;  %v8189_v31 = vsel %vm8014_vm4, %v8188_v19, %v8184_v27 }
 0xe10   : > { %v14125_v20 = vpop.xlane.xlu1 %7832  ;;  %v8194_v32 = vsel %vm8021_vm5, %v8193_v6, %v8189_v31 }
 0xe11   : > { %v8203_v28 = vrot.slane %v14125_v20, %v14064_v57  ;;  %v8130_v17 = vsel %vm8042_vm8, %v8129_v1, %v8125_v37  ;;  %v8199_v5 = vsel %vm8028_vm6, %v8198_v41, %v8194_v32 }
 0xe12   : > { %v14127_v9 = vpop.xlane.xlu0 %7877 }
 0xe13   : > { %v8277_v18 = vrot.slane %v14127_v9, %v14058_v51 }
 0xe14   : > { %v7791_v25 = vpop.xlane.xlu1 %7790 }
 0xe15   : > { %v8134_v15 = vrot.slane %v7791_v25, %v14076_v33 }
 0xe16   : > { %v14129_v8 = vpop.xlane.xlu0 %7835 }
 0xe17   : > { %v8208_v10 = vrot.slane %v14129_v8, %v14070_v40  ;;  %v8135_v20 = vsel %vm8049_vm9, %v8134_v15, %v8130_v17 }
 0xe18   : > { %v14131_v47 = vpop.xlane.xlu1 %7880 }
 0xe19   : > { %v8282_v13 = vrot.slane %v14131_v47, %v14064_v57 }
 0xe1a   : > { %v7794_v46 = vpop.xlane.xlu0 %7793 }
 0xe1b   : > { %v8139_v59 = vrot.slane %v7794_v46, %v14082_v34  ;;  %v8267_v46 = vrot.slane %v14119_v61, %v14046_v12  ;;  %v8204_v12 = vsel %vm8035_vm7, %v8203_v28, %v8199_v5 }
 0xe1c   : > { %v14138_v16 = vpop.xlane.xlu1 %7838  ;;  %v8209_v24 = vsel %vm8042_vm8, %v8208_v10, %v8204_v12 }
 0xe1d   : > { %v8213_v55 = vrot.slane %v14138_v16, %v14076_v33  ;;  %v8140_v52 = vsel %vm8056_vm10, %v8139_v59, %v8135_v20  ;;  %v8263_v16 = vsel %vm8007_vm3, %v8262_v53, %v8258_v2 }
 0xe1e   : > { %v14153_v22 = vpop.xlane.xlu0 %7883  ;;  %v8268_v43 = vsel %vm8014_vm4, %v8267_v46, %v8263_v16 }
 0xe1f   : > { %v8214_v36 = vsel %vm8049_vm9, %v8213_v55, %v8209_v24  ;;  %v8287_v51 = vrot.slane %v14153_v22, %v14070_v40 }
 0xe20   : > { %v7797_v7 = vpop.xlane.xlu1 %7796 }
 0xe21   : > { %v8144_v25 = vrot.slane %v7797_v7, %v14090_v14  ;;  %v8273_v7 = vsel %vm8021_vm5, %v8272_v56, %v8268_v43 }
 0xe22   : > { %v7842_v62 = vpop.xlane.xlu0 %7841  ;;  %v8278_v50 = vsel %vm8028_vm6, %v8277_v18, %v8273_v7 }
 0xe23   : > { %v8218_v8 = vrot.slane %v7842_v62, %v14082_v34  ;;  %v8145_v61 = vsel %vm8063_vm11, %v8144_v25, %v8140_v52  ;;  %v8283_v22 = vsel %vm8035_vm7, %v8282_v13, %v8278_v50 }
 0xe24   : > { %v7887_v58 = vpop.xlane.xlu1 %7886  ;;  %v8288_v23 = vsel %vm8042_vm8, %v8287_v51, %v8283_v22 }
 0xe25   : > { %v8219_v57 = vsel %vm8056_vm10, %v8218_v8, %v8214_v36  ;;  %v8292_v47 = vrot.slane %v7887_v58, %v14076_v33 }
 0xe26   : > { %v7800_v38 = vpop.xlane.xlu0 %7799 }
 0xe27   : > { %v8149_v49 = vrot.slane %v7800_v38, %v14093_v30  ;;  %v8293_v33 = vsel %vm8049_vm9, %v8292_v47, %v8288_v23 }
 0xe28   : > { %v7845_v0 = vpop.xlane.xlu1 %7844 }
 0xe29   : > { %v8223_v54 = vrot.slane %v7845_v0, %v14090_v14  ;;  %v8150_v48 = vsel %vm8070_vm12, %v8149_v49, %v8145_v61 }
 0xe2a   : > { %v8310_v9 = vsel %vm8309_vm13, %v8150_v48, %v14101_v29  ;;  %v7890_v4 = vpop.xlane.xlu0 %7889 }
 0xe2b   : > { %v8224_v11 = vsel %vm8063_vm11, %v8223_v54, %v8219_v57  ;;  %v8297_v40 = vrot.slane %v7890_v4, %v14082_v34 }
 0xe2c   : > { %v7848_v26 = vpop.xlane.xlu1 %7847 }
 0xe2d   : > { %v8228_v42 = vrot.slane %v7848_v26, %v14093_v30  ;;  %v8298_v34 = vsel %vm8056_vm10, %v8297_v40, %v8293_v33 }
 0xe2e   : > { %v7893_v21 = vpop.xlane.xlu0 %7892 }
 0xe2f   : > { %v8229_v29 = vsel %vm8070_vm12, %v8228_v42, %v8224_v11  ;;  %v8302_v63 = vrot.slane %v7893_v21, %v14090_v14 }
 0xe30   : > { %v8312_v44 = vsel %vm8311_vm14, %v8229_v29, %v8310_v9  ;;  %v7896_v19 = vpop.xlane.xlu1 %7895 }
 0xe31   : > { %v8307_v60 = vrot.slane %v7896_v19, %v14093_v30  ;;  %v8303_v45 = vsel %vm8063_vm11, %v8302_v63, %v8298_v34 }
 0xe33   : > { %v8308_v6 = vsel %vm8070_vm12, %v8307_v60, %v8303_v45 }
 0xe34   : > { %v8314_v14 = vsel %vm8313_vm15, %v8308_v6, %v8312_v44 }
 0xe35   : > { %8316 = vst [vmem:[%s240_s26] sm:$0xf] %v8314_v14 }
 0xe36   : > { %9176 = shalt.err (!%p9173_p6)
}
 0xe37   : > { %s9177_s9 = scalar_lea.hbm %s14237_s30, 64  ;;  %s9181_s20 = scalar_lea.hbm %s14285_s4, 128 }
 0xe38   : > { %p9178_p12 = scmp.ne.s32.totalorder %s14237_s30, %s9177_s9  ;;  %p9182_p11 = scmp.lt.u32.totalorder %s14237_s30, %s14285_s4 }
 0xe39   : > { %p9183_p7 = scmp.lt.u32.totalorder %s9181_s20, %s9177_s9  ;;  %p9185_p8 = scmp.lt.u32.totalorder %s9177_s9, %s14237_s30 }
 0xe3a   : > { %p9179_p13 = pnand %p9178_p12, %p15008_p4 }
 0xe3b   : > { %p9184_p3 = por %p9183_p7, %p9182_p11 }
 0xe3c   : > { %p9180_p1 = pneg %p9179_p13 }
 0xe3d   : > { %p9186_p5 = por %p9185_p8, %p9184_p3 }
 0xe3f   : > { %p9187_p10 = pnand %p9186_p5, %p9180_p1 }
 0xe41   : > { %9190 = shalt.err (!%p9187_p10)
}
 0xe42   : > { %8488 = dma.vmem_to_hbm [thread:$0]  (%p15008_p4), %s14239_s29, 64, %s14237_s30, %s8318_s19  }
 0xe43 PF: > { %s8343_s12 = sand.u32 1, %s9221_s15   ;;  %p15009_p2 = scmp.ne.s32.totalorder %s14530_s28, 0 }
 0xe44   : > { %p15010_p0 = scmp.ge.s32.totalorder %s9233_s18, 2  ;;  %s8344_s6 = scalar_lea.sflag [#allocation6], %s8343_s12 }
 0xe46   : > { %p8502_p9 = pnand %p15010_p0, %p15009_p2 }
 0xe48   : > { %9216 = dma.done.wait (!%p8502_p9), %s8344_s6, 64  }
 0xe49   : > { %9218 = vsyncadd (!%p8502_p9), %s8344_s6, 4294967232  ;;  %p18_p6 = scmp.ge.s32.totalorder %s9316_s21, 4   ;;  %s15011_s15 = smov %s9225_s16 }
 0xe4a   : > { %s15012_s16 = smov %s9229_s17  ;;  %s15013_s17 = smov %s9328_s24 }
 0xe4b   : > { %s15014_s18 = smov %s9316_s21  ;;  %20 = sbr.rel (!%p18_p6) target bundleno = 6 (0x6), region = 89 }
 0xe52   :  { %8349 = vsyncpa [#allocation5], 1 }
 0xe53   :  { %8351 = vsyncpa [#allocation5 + $0x1], 1 }
 0xe54   :  { %8352 = vsyncpa [#allocation8], 1 }
 0xe55   :  { %8353 = vsyncpa [#allocation6], 1 }
 0xe56   :  { %8355 = vsyncpa [#allocation6 + $0x1], 1 }

</bundles_post_ra>
